<compile_context>
chip_gen: v6e
topology: v6e:2x2x1
jax: 0.10.0
libtpu: 0.0.40
codegen_flags: <defaults>
</compile_context>

<pallas_src>
import jax
import jax.numpy as jnp
from jax.experimental import pallas as pl
from jax.experimental.pallas import tpu as pltpu

# ---------------- synthetic small config (shapes implied by the module) ----------------
B, S = 2, 8                  # batch, sequence length
CHAR_LEN = 8                 # chars per word
WORD_DIM = 16
CHAR_DIM = 8
POS_DIM = 8
NUM_WORDS = 128              # vocab size (= BiLinear out_features = num_words)
NUM_CHARS = 32
NUM_POS = 12
NUM_FILTERS = 16
KERNEL_SIZE = 3              # cfg_p.window
T_OUT = CHAR_LEN + KERNEL_SIZE - 1   # Conv1d(padding=k-1) output length
HIDDEN = 32                  # LSTM hidden per direction (output dim = 2*HIDDEN)
ARC_SPACE = 16               # hard-coded in module __init__
TYPE_SPACE = 16              # hard-coded in module __init__
DIM_ENC = WORD_DIM + NUM_FILTERS + POS_DIM   # cat([word, char_cnn, pos])
UNK_ID = 0
MINUS_INF = -1.0e8
PRIVACY_POS = (1, 2)         # synthetic is_privacy_term: pos tags considered private

WEIGHT_KEYS = (
    'conv_w_big', 'conv_b',
    'wih_cat', 'b_cat', 'whh_f', 'whh_b',
    'proj_w', 'proj_b',
    'biaf_u', 'biaf_wd', 'biaf_we_row', 'biaf_b',
    'bil_u_flat', 'bil_wl', 'bil_wr', 'bil_b',
)


# ---------------------------------------------------------------------------------------
# Fused kernel (one batch element per grid step)
# ---------------------------------------------------------------------------------------
def fused_generator_kernel(
        word_ref, char_ref, pos_ref, mcol_ref, mrow_ref,
        convw_ref, convb_ref,
        wih_ref, bih_ref, whhf_ref, whhb_ref,
        projw_ref, projb_ref,
        u_arc_ref, wd_ref, we_row_ref, b_arc_ref,
        bilu_ref, wl_ref, wr_ref, b_bil_ref,
        out_ref, rnn_sc):
    word = word_ref[0]            # [S, WORD_DIM]
    char_flat = char_ref[0]       # [S, CHAR_LEN*CHAR_DIM]
    pos = pos_ref[0]              # [S, POS_DIM]
    m_col = mcol_ref[0]           # [S, 1]
    m_row = mrow_ref[0]           # [1, S]

    # ---- char CNN: one matmul against tap-unrolled weights, max over time, tanh ----
    conv_all = jnp.dot(char_flat, convw_ref[...],
                       preferred_element_type=jnp.float32)            # [S, T_OUT*F]
    cmax = conv_all[:, 0:NUM_FILTERS]
    for t in range(1, T_OUT):
        cmax = jnp.maximum(cmax, conv_all[:, t * NUM_FILTERS:(t + 1) * NUM_FILTERS])
    char_feat = jnp.tanh(cmax + convb_ref[...])                        # [S, F]

    # ---- BiLSTM input projection hoisted out of the recurrence (both directions) ----
    # enc_in = cat([word, char_feat, pos]); the concat is folded into row-blocks of W_ih
    # so no in-kernel lane concat is needed.  bih already contains b_ih + b_hh for f|b.
    wih = wih_ref[...]                                                 # [DIM_ENC, 8H]
    gates_in = (
        jnp.dot(word, wih[0:WORD_DIM], preferred_element_type=jnp.float32)
        + jnp.dot(char_feat, wih[WORD_DIM:WORD_DIM + NUM_FILTERS],
                  preferred_element_type=jnp.float32)
        + jnp.dot(pos, wih[WORD_DIM + NUM_FILTERS:DIM_ENC],
                  preferred_element_type=jnp.float32)
        + bih_ref[...])                                                # [S, 8H]

    whh_f = whhf_ref[...]
    whh_b = whhb_ref[...]
    H = HIDDEN

    def cell(pre, h, c, whh):
        # pre = precomputed x @ W_ih + b ; gate order i, f, g, o (PyTorch)
        g = pre + jnp.dot(h, whh, preferred_element_type=jnp.float32)  # [1, 4H]
        i = jax.nn.sigmoid(g[:, 0 * H:1 * H])
        f = jax.nn.sigmoid(g[:, 1 * H:2 * H])
        cc = jnp.tanh(g[:, 2 * H:3 * H])
        o = jax.nn.sigmoid(g[:, 3 * H:4 * H])
        c_new = f * c + i * cc
        h_new = o * jnp.tanh(c_new)
        return h_new, c_new

    # Masked step semantics (VarMaskedFastLSTM): h = m*cell(x,h) + (1-m)*h, same for c.
    # fwd and bwd are independent recurrences -> interleaved in one fully-unrolled loop.
    hf = jnp.zeros((1, H), jnp.float32); cf = jnp.zeros((1, H), jnp.float32)
    hb = jnp.zeros((1, H), jnp.float32); cb = jnp.zeros((1, H), jnp.float32)
    for t in range(S):
        tb = S - 1 - t
        mf = m_col[t:t + 1, :]
        mb = m_col[tb:tb + 1, :]
        hf_new, cf_new = cell(gates_in[t:t + 1, 0:4 * H], hf, cf, whh_f)
        hb_new, cb_new = cell(gates_in[tb:tb + 1, 4 * H:8 * H], hb, cb, whh_b)
        hf = mf * hf_new + (1.0 - mf) * hf
        cf = mf * cf_new + (1.0 - mf) * cf
        hb = mb * hb_new + (1.0 - mb) * hb
        cb = mb * cb_new + (1.0 - mb) * cb
        rnn_sc[t:t + 1, 0:H] = hf          # concatenated [fwd | bwd] representation
        rnn_sc[tb:tb + 1, H:2 * H] = hb

    h_all = rnn_sc[...]                                                # [S, 2H]

    # ---- parser head ----
    # arc_h | arc_c | type_h | type_c as ONE fused matmul, then lane slices.
    proj = jnp.dot(h_all, projw_ref[...],
                   preferred_element_type=jnp.float32) + projb_ref[...]  # [S, 64]
    # F.elu(alpha=1); exp(x)-1 kept (proven to lower) rather than expm1.
    proj = jnp.where(proj > 0, proj, jnp.exp(proj) - 1.0)
    arc_h = proj[:, 0:ARC_SPACE]
    arc_c = proj[:, ARC_SPACE:2 * ARC_SPACE]
    type_h = proj[:, 2 * ARC_SPACE:2 * ARC_SPACE + TYPE_SPACE]
    type_c = proj[:, 2 * ARC_SPACE + TYPE_SPACE:2 * ARC_SPACE + 2 * TYPE_SPACE]

    # BiAffine (num_labels == 1): arc_h U arc_c^T + arc_h w_d + w_e arc_c^T + b
    arc_c_t = arc_c.T                                                  # [A, S]
    scores = (jnp.dot(jnp.dot(arc_h, u_arc_ref[...], preferred_element_type=jnp.float32),
                      arc_c_t, preferred_element_type=jnp.float32)
              + jnp.dot(arc_h, wd_ref[...], preferred_element_type=jnp.float32)      # [S,1]
              + jnp.dot(we_row_ref[...], arc_c_t, preferred_element_type=jnp.float32)  # [1,S]
              + b_arc_ref[...])
    scores = scores * m_col * m_row            # BiAffine's internal mask multiplication
    # forward(): additive -1e8 masking on both axes
    out_arc = scores + (1.0 - m_col) * MINUS_INF + (1.0 - m_row) * MINUS_INF

    # softmax over last dim; reciprocal goes to the EUP slot
    z = out_arc - jnp.max(out_arc, axis=-1, keepdims=True)
    e = jnp.exp(z)
    att = e * pl.reciprocal(jnp.sum(e, axis=-1, keepdims=True), approx=True)   # [S,S]

    # aggregated = bmm(att, type_h)
    agg = jnp.dot(att, type_h, preferred_element_type=jnp.float32)             # [S,T]

    # BiLinear(agg, type_c) -> vocab logits.  The T-way bilinear term is one lane-dense
    # matmul against [T, T*V]; the contraction over type_c is 16 vreg-aligned
    # (128-lane) broadcast-multiply-adds (VPU), no extra MXU issues.
    logits = (jnp.dot(agg, wl_ref[...], preferred_element_type=jnp.float32)
              + jnp.dot(type_c, wr_ref[...], preferred_element_type=jnp.float32)
              + b_bil_ref[...])                                                 # [S, V]
    bil = jnp.dot(agg, bilu_ref[...], preferred_element_type=jnp.float32)       # [S, T*V]
    for j in range(TYPE_SPACE):
        logits = logits + type_c[:, j:j + 1] * bil[:, j * NUM_WORDS:(j + 1) * NUM_WORDS]

    # log_softmax over vocab
    zz = logits - jnp.max(logits, axis=-1, keepdims=True)
    lse = jnp.log(jnp.sum(jnp.exp(zz), axis=-1, keepdims=True))
    out_ref[0] = zz - lse


# ---------------------------------------------------------------------------------------
# Parameter init (deterministic, synthetic) with kernel-friendly pre-packing.
# ---------------------------------------------------------------------------------------
def init_params(key):
    ks = jax.random.split(key, 32)

    def nrm(k, shape, scale=0.1):
        return jax.random.normal(k, shape, dtype=jnp.float32) * scale

    p = {}
    p['word_table'] = nrm(ks[0], (NUM_WORDS, WORD_DIM))
    p['char_table'] = nrm(ks[1], (NUM_CHARS, CHAR_DIM))
    p['pos_table'] = nrm(ks[2], (NUM_POS, POS_DIM))

    # Conv1d weight [F, C, K] (torch) -> tap-unrolled big matrix [L*C, T_OUT*F].
    # W_big[l*C + c, t*F + f] = W[f, c, i] with l = t + i - pad (zero-padding folded in).
    conv_w = nrm(ks[3], (NUM_FILTERS, CHAR_DIM, KERNEL_SIZE))
    pad = KERNEL_SIZE - 1
    w_big = jnp.zeros((CHAR_LEN * CHAR_DIM, T_OUT * NUM_FILTERS), jnp.float32)
    for t in range(T_OUT):
        for i in range(KERNEL_SIZE):
            l = t + i - pad
            if 0 <= l < CHAR_LEN:
                w_big = w_big.at[l * CHAR_DIM:(l + 1) * CHAR_DIM,
                                 t * NUM_FILTERS:(t + 1) * NUM_FILTERS].set(conv_w[:, :, i].T)
    p['conv_w_big'] = w_big
    p['conv_b'] = nrm(ks[4], (1, NUM_FILTERS))

    # BiLSTM (single layer). Torch W_ih [4H, D], W_hh [4H, H] -> transpose for x @ W.
    wih_f = jnp.transpose(nrm(ks[5], (4 * HIDDEN, DIM_ENC)))     # [D, 4H]
    whh_f = jnp.transpose(nrm(ks[6], (4 * HIDDEN, HIDDEN)))      # [H, 4H]
    b_f = nrm(ks[7], (1, 4 * HIDDEN)) + nrm(ks[8], (1, 4 * HIDDEN))      # b_ih + b_hh
    wih_b = jnp.transpose(nrm(ks[9], (4 * HIDDEN, DIM_ENC)))
    whh_b = jnp.transpose(nrm(ks[10], (4 * HIDDEN, HIDDEN)))
    b_b = nrm(ks[11], (1, 4 * HIDDEN)) + nrm(ks[12], (1, 4 * HIDDEN))
    p['wih_cat'] = jnp.concatenate([wih_f, wih_b], axis=1)       # [D, 8H]
    p['b_cat'] = jnp.concatenate([b_f, b_b], axis=1)             # [1, 8H]
    p['whh_f'] = whh_f
    p['whh_b'] = whh_b

    # arc / type projections (Linear weights transposed to [in, out]) fused column-wise:
    # [arc_h | arc_c | type_h | type_c]  -> [2H, 64]
    arc_h_w = jnp.transpose(nrm(ks[13], (ARC_SPACE, 2 * HIDDEN)))
    arc_h_b = nrm(ks[14], (1, ARC_SPACE))
    arc_c_w = jnp.transpose(nrm(ks[15], (ARC_SPACE, 2 * HIDDEN)))
    arc_c_b = nrm(ks[16], (1, ARC_SPACE))
    type_h_w = jnp.transpose(nrm(ks[17], (TYPE_SPACE, 2 * HIDDEN)))
    type_h_b = nrm(ks[18], (1, TYPE_SPACE))
    type_c_w = jnp.transpose(nrm(ks[19], (TYPE_SPACE, 2 * HIDDEN)))
    type_c_b = nrm(ks[20], (1, TYPE_SPACE))
    p['proj_w'] = jnp.concatenate([arc_h_w, arc_c_w, type_h_w, type_c_w], axis=1)
    p['proj_b'] = jnp.concatenate([arc_h_b, arc_c_b, type_h_b, type_c_b], axis=1)

    # BiAffine (num_labels = 1)
    p['biaf_u'] = nrm(ks[21], (ARC_SPACE, ARC_SPACE))
    p['biaf_wd'] = nrm(ks[22], (ARC_SPACE, 1))
    p['biaf_we_row'] = nrm(ks[23], (1, ARC_SPACE))
    p['biaf_b'] = nrm(ks[24], (1, 1))

    # BiLinear(type_space, type_space, num_words): U [V, T_i, T_j] -> flat [T_i, T_j*V]
    bil_u = nrm(ks[25], (NUM_WORDS, TYPE_SPACE, TYPE_SPACE))
    p['bil_u_flat'] = jnp.transpose(bil_u, (1, 2, 0)).reshape(TYPE_SPACE,
                                                              TYPE_SPACE * NUM_WORDS)
    p['bil_wl'] = jnp.transpose(nrm(ks[26], (NUM_WORDS, TYPE_SPACE)))   # [T, V]
    p['bil_wr'] = jnp.transpose(nrm(ks[27], (NUM_WORDS, TYPE_SPACE)))   # [T, V]
    p['bil_b'] = nrm(ks[28], (1, NUM_WORDS))

    # parser_emb_weight handed to __init__ (cloned)
    p['parser_emb'] = nrm(ks[29], (NUM_WORDS, WORD_DIM))
    # word -> char lookup table (get_lut)
    p['lut'] = jax.random.randint(ks[30], (NUM_WORDS, CHAR_LEN), 0, NUM_CHARS)
    return p


def _batch_spec(shape):
    nd = len(shape)
    return pl.BlockSpec((1,) + tuple(shape[1:]), lambda b: (b,) + (0,) * (nd - 1))


def _full_spec(shape):
    nd = len(shape)
    return pl.BlockSpec(tuple(shape), lambda b: (0,) * nd)


# ---------------------------------------------------------------------------------------
# Forward glue: embedding gathers -> fused kernel -> sampling / masked-scatter tail.
# ---------------------------------------------------------------------------------------
@jax.jit
def forward(params, inp_word, inp_char, inp_pos, mask, gumbel_key):
    mask = mask.astype(jnp.float32)

    # --- embeddings (glue: gathers) ---
    word = params['word_table'][inp_word]                     # [B,S,WORD_DIM]
    char_e = params['char_table'][inp_char]                   # [B,S,C_LEN,CHAR_DIM]
    pos = params['pos_table'][inp_pos]                        # [B,S,POS_DIM]
    char_flat = char_e.reshape(B, S, CHAR_LEN * CHAR_DIM)     # [B,S,L*C]
    mask_col = mask[:, :, None]                               # [B,S,1]
    mask_row = mask[:, None, :]                               # [B,1,S]

    in_specs = [
        _batch_spec((B, S, WORD_DIM)),
        _batch_spec((B, S, CHAR_LEN * CHAR_DIM)),
        _batch_spec((B, S, POS_DIM)),
        _batch_spec((B, S, 1)),
        _batch_spec((B, 1, S)),
    ] + [_full_spec(params[k].shape) for k in WEIGHT_KEYS]

    gen_log = pl.pallas_call(
        fused_generator_kernel,
        out_shape=jax.ShapeDtypeStruct((B, S, NUM_WORDS), jnp.float32),
        grid=(B,),
        in_specs=in_specs,
        out_specs=pl.BlockSpec((1, S, NUM_WORDS), lambda b: (b, 0, 0)),
        scratch_shapes=[pltpu.VMEM((S, 2 * HIDDEN), jnp.float32)],
        compiler_params=pltpu.CompilerParams(dimension_semantics=("parallel",)),
    )(word, char_flat, pos, mask_col, mask_row,
      *(params[k] for k in WEIGHT_KEYS))

    # --- post-processing tail of forward() (glue: sampling / masked scatter) ---
    gen_flat = gen_log.reshape(B * S, NUM_WORDS)

    # obf_mask via is_privacy_term (synthetic privacy POS tags)
    priv = jnp.zeros_like(inp_pos)
    for t in PRIVACY_POS:
        priv = priv | (inp_pos == t).astype(inp_pos.dtype)
    obf_mask = jnp.where(mask > 0.5, priv, 0)                 # [B,S]
    obf_flat = obf_mask.reshape(-1).astype(jnp.float32)
    n_sel = jnp.maximum(jnp.sum(obf_flat), 1.0)               # guard empty selection
    ent_loss = jnp.sum(obf_flat[:, None] * gen_flat * jnp.exp(gen_flat)) / (n_sel * NUM_WORDS)

    temperature = 1.0                                          # eval mode
    gnoise = jax.random.gumbel(gumbel_key, gen_flat.shape, dtype=jnp.float32)
    relaxed = jax.nn.softmax((gen_flat + gnoise) / temperature, axis=-1)
    sampled_idx = jnp.argmax(relaxed, axis=-1)
    sampled_emb = relaxed @ params['parser_emb']               # [B*S, WORD_DIM]

    orig = inp_word.reshape(-1)
    safe = sampled_idx != orig
    # TODO(synk): torch masked_scatter_ consumes source rows in selection order; rows align
    # one-to-one here so per-row where() gives the intended semantics.
    final_idx = jnp.where(safe, sampled_idx, UNK_ID)
    final_emb = jnp.where(safe[:, None], sampled_emb, params['parser_emb'][UNK_ID][None, :])

    obf_on = obf_flat > 0.5
    obf_word = jnp.where(obf_on, final_idx, orig).reshape(B, S)
    hard_emb = params['parser_emb'][obf_word]                  # [B,S,WORD_DIM]
    obf_word_emb = jnp.where(obf_on.reshape(B, S, 1),
                             final_emb.reshape(B, S, WORD_DIM), hard_emb)
    obf_char = params['lut'][obf_word]                         # [B,S,CHAR_LEN]

    return {'obf_word': obf_word,
            'obf_word_psr_emb': obf_word_emb,
            'obf_char': obf_char,
            'obf_pos': inp_pos,
            'obf_mask': obf_mask.astype(jnp.uint8),
            'ent_loss': ent_loss,
            'gen_log_probs': gen_log}


if __name__ == "__main__":
    key = jax.random.PRNGKey(0)
    pkey, wkey, ckey, poskey, gkey = jax.random.split(key, 5)
    params = init_params(pkey)

    inp_word = jax.random.randint(wkey, (B, S), 0, NUM_WORDS)
    inp_char = jax.random.randint(ckey, (B, S, CHAR_LEN), 0, NUM_CHARS)
    inp_pos = jax.random.randint(poskey, (B, S), 0, NUM_POS)
    inp_pos = inp_pos.at[0, 1].set(1).at[1, 2].set(2)          # ensure some privacy terms
    mask = jnp.ones((B, S), jnp.float32).at[1, 6:].set(0.0)    # partially masked batch 1

    out = forward(params, inp_word, inp_char, inp_pos, mask, gkey)
    jax.tree_util.tree_map(jax.block_until_ready, out)
    print("KERNEL_OK")
</pallas_src>

<mosaic_0001>
module attributes {stable_mosaic.version = 11 : i64} {
  func.func @fused_generator_kernel(%arg0: i32, %arg1: memref<1x8x16xf32, #tpu.memory_space<vmem>>, %arg2: memref<1x8x64xf32, #tpu.memory_space<vmem>>, %arg3: memref<1x8x8xf32, #tpu.memory_space<vmem>>, %arg4: memref<1x8x1xf32, #tpu.memory_space<vmem>>, %arg5: memref<1x1x8xf32, #tpu.memory_space<vmem>>, %arg6: memref<64x160xf32, #tpu.memory_space<vmem>>, %arg7: memref<1x16xf32, #tpu.memory_space<vmem>>, %arg8: memref<40x256xf32, #tpu.memory_space<vmem>>, %arg9: memref<1x256xf32, #tpu.memory_space<vmem>>, %arg10: memref<32x128xf32, #tpu.memory_space<vmem>>, %arg11: memref<32x128xf32, #tpu.memory_space<vmem>>, %arg12: memref<64x64xf32, #tpu.memory_space<vmem>>, %arg13: memref<1x64xf32, #tpu.memory_space<vmem>>, %arg14: memref<16x16xf32, #tpu.memory_space<vmem>>, %arg15: memref<16x1xf32, #tpu.memory_space<vmem>>, %arg16: memref<1x16xf32, #tpu.memory_space<vmem>>, %arg17: memref<1x1xf32, #tpu.memory_space<vmem>>, %arg18: memref<16x2048xf32, #tpu.memory_space<vmem>>, %arg19: memref<16x128xf32, #tpu.memory_space<vmem>>, %arg20: memref<16x128xf32, #tpu.memory_space<vmem>>, %arg21: memref<1x128xf32, #tpu.memory_space<vmem>>, %arg22: memref<1x8x128xf32, #tpu.memory_space<vmem>>, %arg23: memref<8x64xf32, #tpu.memory_space<vmem>>) attributes {dimension_semantics = [#tpu.dimension_semantics<parallel>], iteration_bounds = array<i64: 2>, scalar_prefetch = 0 : i64, scratch_operands = 1 : i64, tpu.core_type = #tpu.core_type<tc>, window_params = [{transform_indices = @transform_0, window_bounds = array<i64: 1, 8, 16>}, {transform_indices = @transform_1, window_bounds = array<i64: 1, 8, 64>}, {transform_indices = @transform_2, window_bounds = array<i64: 1, 8, 8>}, {transform_indices = @transform_3, window_bounds = array<i64: 1, 8, 1>}, {transform_indices = @transform_4, window_bounds = array<i64: 1, 1, 8>}, {pipeline_mode = #tpu.pipeline_mode<synchronous>, transform_indices = @transform_5, window_bounds = array<i64: 64, 160>}, {pipeline_mode = #tpu.pipeline_mode<synchronous>, transform_indices = @transform_6, window_bounds = array<i64: 1, 16>}, {pipeline_mode = #tpu.pipeline_mode<synchronous>, transform_indices = @transform_7, window_bounds = array<i64: 40, 256>}, {pipeline_mode = #tpu.pipeline_mode<synchronous>, transform_indices = @transform_8, window_bounds = array<i64: 1, 256>}, {pipeline_mode = #tpu.pipeline_mode<synchronous>, transform_indices = @transform_9, window_bounds = array<i64: 32, 128>}, {pipeline_mode = #tpu.pipeline_mode<synchronous>, transform_indices = @transform_10, window_bounds = array<i64: 32, 128>}, {pipeline_mode = #tpu.pipeline_mode<synchronous>, transform_indices = @transform_11, window_bounds = array<i64: 64, 64>}, {pipeline_mode = #tpu.pipeline_mode<synchronous>, transform_indices = @transform_12, window_bounds = array<i64: 1, 64>}, {pipeline_mode = #tpu.pipeline_mode<synchronous>, transform_indices = @transform_13, window_bounds = array<i64: 16, 16>}, {pipeline_mode = #tpu.pipeline_mode<synchronous>, transform_indices = @transform_14, window_bounds = array<i64: 16, 1>}, {pipeline_mode = #tpu.pipeline_mode<synchronous>, transform_indices = @transform_15, window_bounds = array<i64: 1, 16>}, {pipeline_mode = #tpu.pipeline_mode<synchronous>, transform_indices = @transform_16, window_bounds = array<i64: 1, 1>}, {pipeline_mode = #tpu.pipeline_mode<synchronous>, transform_indices = @transform_17, window_bounds = array<i64: 16, 2048>}, {pipeline_mode = #tpu.pipeline_mode<synchronous>, transform_indices = @transform_18, window_bounds = array<i64: 16, 128>}, {pipeline_mode = #tpu.pipeline_mode<synchronous>, transform_indices = @transform_19, window_bounds = array<i64: 16, 128>}, {pipeline_mode = #tpu.pipeline_mode<synchronous>, transform_indices = @transform_20, window_bounds = array<i64: 1, 128>}, {transform_indices = @transform_21, window_bounds = array<i64: 1, 8, 128>}]} {
    %c0 = arith.constant 0 : index
    %c0_0 = arith.constant 0 : index
    %c0_1 = arith.constant 0 : index
    %0 = vector.load %arg1[%c0, %c0_0, %c0_1] : memref<1x8x16xf32, #tpu.memory_space<vmem>>, vector<1x8x16xf32>
    %1 = vector.shape_cast %0 : vector<1x8x16xf32> to vector<8x16xf32>
    %c0_2 = arith.constant 0 : index
    %c0_3 = arith.constant 0 : index
    %c0_4 = arith.constant 0 : index
    %2 = vector.load %arg2[%c0_2, %c0_3, %c0_4] : memref<1x8x64xf32, #tpu.memory_space<vmem>>, vector<1x8x64xf32>
    %3 = vector.shape_cast %2 : vector<1x8x64xf32> to vector<8x64xf32>
    %c0_5 = arith.constant 0 : index
    %c0_6 = arith.constant 0 : index
    %c0_7 = arith.constant 0 : index
    %4 = vector.load %arg3[%c0_5, %c0_6, %c0_7] : memref<1x8x8xf32, #tpu.memory_space<vmem>>, vector<1x8x8xf32>
    %5 = vector.shape_cast %4 : vector<1x8x8xf32> to vector<8x8xf32>
    %c0_8 = arith.constant 0 : index
    %c0_9 = arith.constant 0 : index
    %c0_10 = arith.constant 0 : index
    %6 = vector.load %arg4[%c0_8, %c0_9, %c0_10] : memref<1x8x1xf32, #tpu.memory_space<vmem>>, vector<1x8x1xf32>
    %7 = vector.shape_cast %6 : vector<1x8x1xf32> to vector<8x1xf32>
    %c0_11 = arith.constant 0 : index
    %c0_12 = arith.constant 0 : index
    %c0_13 = arith.constant 0 : index
    %8 = vector.load %arg5[%c0_11, %c0_12, %c0_13] : memref<1x1x8xf32, #tpu.memory_space<vmem>>, vector<1x1x8xf32>
    %9 = vector.shape_cast %8 : vector<1x1x8xf32> to vector<1x8xf32>
    %c0_14 = arith.constant 0 : index
    %c0_15 = arith.constant 0 : index
    %10 = vector.load %arg6[%c0_14, %c0_15] : memref<64x160xf32, #tpu.memory_space<vmem>>, vector<64x160xf32>
    %cst = arith.constant dense<0.000000e+00> : vector<8x160xf32>
    %11 = tpu.matmul %3, %10, %cst {dimension_numbers = #tpu.dot_dimension_numbers<[1], [0], [0], [1], [0, 0, 1, 1], [], []>} : vector<8x64xf32>, vector<64x160xf32>, vector<8x160xf32> -> vector<8x160xf32>
    %12 = vector.extract_strided_slice %11 {offsets = [0, 0], sizes = [8, 16], strides = [1, 1]} : vector<8x160xf32> to vector<8x16xf32>
    %13 = vector.extract_strided_slice %11 {offsets = [0, 16], sizes = [8, 16], strides = [1, 1]} : vector<8x160xf32> to vector<8x16xf32>
    %14 = arith.maximumf %12, %13 : vector<8x16xf32>
    %15 = vector.extract_strided_slice %11 {offsets = [0, 32], sizes = [8, 16], strides = [1, 1]} : vector<8x160xf32> to vector<8x16xf32>
    %16 = arith.maximumf %14, %15 : vector<8x16xf32>
    %17 = vector.extract_strided_slice %11 {offsets = [0, 48], sizes = [8, 16], strides = [1, 1]} : vector<8x160xf32> to vector<8x16xf32>
    %18 = arith.maximumf %16, %17 : vector<8x16xf32>
    %19 = vector.extract_strided_slice %11 {offsets = [0, 64], sizes = [8, 16], strides = [1, 1]} : vector<8x160xf32> to vector<8x16xf32>
    %20 = arith.maximumf %18, %19 : vector<8x16xf32>
    %21 = vector.extract_strided_slice %11 {offsets = [0, 80], sizes = [8, 16], strides = [1, 1]} : vector<8x160xf32> to vector<8x16xf32>
    %22 = arith.maximumf %20, %21 : vector<8x16xf32>
    %23 = vector.extract_strided_slice %11 {offsets = [0, 96], sizes = [8, 16], strides = [1, 1]} : vector<8x160xf32> to vector<8x16xf32>
    %24 = arith.maximumf %22, %23 : vector<8x16xf32>
    %25 = vector.extract_strided_slice %11 {offsets = [0, 112], sizes = [8, 16], strides = [1, 1]} : vector<8x160xf32> to vector<8x16xf32>
    %26 = arith.maximumf %24, %25 : vector<8x16xf32>
    %27 = vector.extract_strided_slice %11 {offsets = [0, 128], sizes = [8, 16], strides = [1, 1]} : vector<8x160xf32> to vector<8x16xf32>
    %28 = arith.maximumf %26, %27 : vector<8x16xf32>
    %29 = vector.extract_strided_slice %11 {offsets = [0, 144], sizes = [8, 16], strides = [1, 1]} : vector<8x160xf32> to vector<8x16xf32>
    %30 = arith.maximumf %28, %29 : vector<8x16xf32>
    %c0_16 = arith.constant 0 : index
    %c0_17 = arith.constant 0 : index
    %31 = vector.load %arg7[%c0_16, %c0_17] : memref<1x16xf32, #tpu.memory_space<vmem>>, vector<1x16xf32>
    %32 = vector.broadcast %31 : vector<1x16xf32> to vector<8x16xf32>
    %33 = arith.addf %30, %32 : vector<8x16xf32>
    %34 = math.tanh %33 : vector<8x16xf32>
    %c0_18 = arith.constant 0 : index
    %c0_19 = arith.constant 0 : index
    %35 = vector.load %arg8[%c0_18, %c0_19] : memref<40x256xf32, #tpu.memory_space<vmem>>, vector<40x256xf32>
    %36 = vector.extract_strided_slice %35 {offsets = [0, 0], sizes = [16, 256], strides = [1, 1]} : vector<40x256xf32> to vector<16x256xf32>
    %cst_20 = arith.constant dense<0.000000e+00> : vector<8x256xf32>
    %37 = tpu.matmul %1, %36, %cst_20 {dimension_numbers = #tpu.dot_dimension_numbers<[1], [0], [0], [1], [0, 0, 1, 1], [], []>} : vector<8x16xf32>, vector<16x256xf32>, vector<8x256xf32> -> vector<8x256xf32>
    %38 = vector.extract_strided_slice %35 {offsets = [16, 0], sizes = [16, 256], strides = [1, 1]} : vector<40x256xf32> to vector<16x256xf32>
    %cst_21 = arith.constant dense<0.000000e+00> : vector<8x256xf32>
    %39 = tpu.matmul %34, %38, %cst_21 {dimension_numbers = #tpu.dot_dimension_numbers<[1], [0], [0], [1], [0, 0, 1, 1], [], []>} : vector<8x16xf32>, vector<16x256xf32>, vector<8x256xf32> -> vector<8x256xf32>
    %40 = arith.addf %37, %39 : vector<8x256xf32>
    %41 = vector.extract_strided_slice %35 {offsets = [32, 0], sizes = [8, 256], strides = [1, 1]} : vector<40x256xf32> to vector<8x256xf32>
    %cst_22 = arith.constant dense<0.000000e+00> : vector<8x256xf32>
    %42 = tpu.matmul %5, %41, %cst_22 {dimension_numbers = #tpu.dot_dimension_numbers<[1], [0], [0], [1], [0, 0, 1, 1], [], []>} : vector<8x8xf32>, vector<8x256xf32>, vector<8x256xf32> -> vector<8x256xf32>
    %43 = arith.addf %40, %42 : vector<8x256xf32>
    %c0_23 = arith.constant 0 : index
    %c0_24 = arith.constant 0 : index
    %44 = vector.load %arg9[%c0_23, %c0_24] : memref<1x256xf32, #tpu.memory_space<vmem>>, vector<1x256xf32>
    %45 = vector.broadcast %44 : vector<1x256xf32> to vector<8x256xf32>
    %46 = arith.addf %43, %45 : vector<8x256xf32>
    %c0_25 = arith.constant 0 : index
    %c0_26 = arith.constant 0 : index
    %47 = vector.load %arg10[%c0_25, %c0_26] : memref<32x128xf32, #tpu.memory_space<vmem>>, vector<32x128xf32>
    %c0_27 = arith.constant 0 : index
    %c0_28 = arith.constant 0 : index
    %48 = vector.load %arg11[%c0_27, %c0_28] : memref<32x128xf32, #tpu.memory_space<vmem>>, vector<32x128xf32>
    %cst_29 = arith.constant 0.000000e+00 : f32
    %49 = vector.broadcast %cst_29 : f32 to vector<1x32xf32>
    %cst_30 = arith.constant 0.000000e+00 : f32
    %50 = vector.broadcast %cst_30 : f32 to vector<1x32xf32>
    %cst_31 = arith.constant 0.000000e+00 : f32
    %51 = vector.broadcast %cst_31 : f32 to vector<1x32xf32>
    %cst_32 = arith.constant 0.000000e+00 : f32
    %52 = vector.broadcast %cst_32 : f32 to vector<1x32xf32>
    %53 = vector.extract_strided_slice %7 {offsets = [0, 0], sizes = [1, 1], strides = [1, 1]} : vector<8x1xf32> to vector<1x1xf32>
    %54 = vector.extract_strided_slice %7 {offsets = [7, 0], sizes = [1, 1], strides = [1, 1]} : vector<8x1xf32> to vector<1x1xf32>
    %55 = vector.extract_strided_slice %46 {offsets = [0, 0], sizes = [1, 128], strides = [1, 1]} : vector<8x256xf32> to vector<1x128xf32>
    %cst_33 = arith.constant dense<0.000000e+00> : vector<1x128xf32>
    %56 = tpu.matmul %49, %47, %cst_33 {dimension_numbers = #tpu.dot_dimension_numbers<[1], [0], [0], [1], [0, 0, 1, 1], [], []>} : vector<1x32xf32>, vector<32x128xf32>, vector<1x128xf32> -> vector<1x128xf32>
    %57 = arith.addf %55, %56 : vector<1x128xf32>
    %58 = vector.extract_strided_slice %57 {offsets = [0, 0], sizes = [1, 32], strides = [1, 1]} : vector<1x128xf32> to vector<1x32xf32>
    %59 = arith.negf %58 : vector<1x32xf32>
    %60 = math.exp %59 : vector<1x32xf32>
    %cst_34 = arith.constant 1.000000e+00 : f32
    %61 = vector.broadcast %cst_34 : f32 to vector<1x32xf32>
    %62 = arith.addf %61, %60 : vector<1x32xf32>
    %63 = arith.divf %61, %62 : vector<1x32xf32>
    %64 = vector.extract_strided_slice %57 {offsets = [0, 32], sizes = [1, 32], strides = [1, 1]} : vector<1x128xf32> to vector<1x32xf32>
    %65 = arith.negf %64 : vector<1x32xf32>
    %66 = math.exp %65 : vector<1x32xf32>
    %cst_35 = arith.constant 1.000000e+00 : f32
    %67 = vector.broadcast %cst_35 : f32 to vector<1x32xf32>
    %68 = arith.addf %67, %66 : vector<1x32xf32>
    %69 = arith.divf %67, %68 : vector<1x32xf32>
    %70 = vector.extract_strided_slice %57 {offsets = [0, 64], sizes = [1, 32], strides = [1, 1]} : vector<1x128xf32> to vector<1x32xf32>
    %71 = math.tanh %70 : vector<1x32xf32>
    %72 = vector.extract_strided_slice %57 {offsets = [0, 96], sizes = [1, 32], strides = [1, 1]} : vector<1x128xf32> to vector<1x32xf32>
    %73 = arith.negf %72 : vector<1x32xf32>
    %74 = math.exp %73 : vector<1x32xf32>
    %cst_36 = arith.constant 1.000000e+00 : f32
    %75 = vector.broadcast %cst_36 : f32 to vector<1x32xf32>
    %76 = arith.addf %75, %74 : vector<1x32xf32>
    %77 = arith.divf %75, %76 : vector<1x32xf32>
    %78 = arith.mulf %69, %50 : vector<1x32xf32>
    %79 = arith.mulf %63, %71 : vector<1x32xf32>
    %80 = arith.addf %78, %79 : vector<1x32xf32>
    %81 = math.tanh %80 : vector<1x32xf32>
    %82 = arith.mulf %77, %81 : vector<1x32xf32>
    %83 = vector.extract_strided_slice %46 {offsets = [7, 128], sizes = [1, 128], strides = [1, 1]} : vector<8x256xf32> to vector<1x128xf32>
    %cst_37 = arith.constant dense<0.000000e+00> : vector<1x128xf32>
    %84 = tpu.matmul %51, %48, %cst_37 {dimension_numbers = #tpu.dot_dimension_numbers<[1], [0], [0], [1], [0, 0, 1, 1], [], []>} : vector<1x32xf32>, vector<32x128xf32>, vector<1x128xf32> -> vector<1x128xf32>
    %85 = arith.addf %83, %84 : vector<1x128xf32>
    %86 = vector.extract_strided_slice %85 {offsets = [0, 0], sizes = [1, 32], strides = [1, 1]} : vector<1x128xf32> to vector<1x32xf32>
    %87 = arith.negf %86 : vector<1x32xf32>
    %88 = math.exp %87 : vector<1x32xf32>
    %cst_38 = arith.constant 1.000000e+00 : f32
    %89 = vector.broadcast %cst_38 : f32 to vector<1x32xf32>
    %90 = arith.addf %89, %88 : vector<1x32xf32>
    %91 = arith.divf %89, %90 : vector<1x32xf32>
    %92 = vector.extract_strided_slice %85 {offsets = [0, 32], sizes = [1, 32], strides = [1, 1]} : vector<1x128xf32> to vector<1x32xf32>
    %93 = arith.negf %92 : vector<1x32xf32>
    %94 = math.exp %93 : vector<1x32xf32>
    %cst_39 = arith.constant 1.000000e+00 : f32
    %95 = vector.broadcast %cst_39 : f32 to vector<1x32xf32>
    %96 = arith.addf %95, %94 : vector<1x32xf32>
    %97 = arith.divf %95, %96 : vector<1x32xf32>
    %98 = vector.extract_strided_slice %85 {offsets = [0, 64], sizes = [1, 32], strides = [1, 1]} : vector<1x128xf32> to vector<1x32xf32>
    %99 = math.tanh %98 : vector<1x32xf32>
    %100 = vector.extract_strided_slice %85 {offsets = [0, 96], sizes = [1, 32], strides = [1, 1]} : vector<1x128xf32> to vector<1x32xf32>
    %101 = arith.negf %100 : vector<1x32xf32>
    %102 = math.exp %101 : vector<1x32xf32>
    %cst_40 = arith.constant 1.000000e+00 : f32
    %103 = vector.broadcast %cst_40 : f32 to vector<1x32xf32>
    %104 = arith.addf %103, %102 : vector<1x32xf32>
    %105 = arith.divf %103, %104 : vector<1x32xf32>
    %106 = arith.mulf %97, %52 : vector<1x32xf32>
    %107 = arith.mulf %91, %99 : vector<1x32xf32>
    %108 = arith.addf %106, %107 : vector<1x32xf32>
    %109 = math.tanh %108 : vector<1x32xf32>
    %110 = arith.mulf %105, %109 : vector<1x32xf32>
    %111 = vector.broadcast %53 : vector<1x1xf32> to vector<1x32xf32>
    %112 = arith.mulf %111, %82 : vector<1x32xf32>
    %cst_41 = arith.constant 1.000000e+00 : f32
    %113 = vector.broadcast %cst_41 : f32 to vector<1x1xf32>
    %114 = arith.subf %113, %53 : vector<1x1xf32>
    %115 = vector.broadcast %114 : vector<1x1xf32> to vector<1x32xf32>
    %116 = arith.mulf %115, %49 : vector<1x32xf32>
    %117 = arith.addf %112, %116 : vector<1x32xf32>
    %118 = vector.broadcast %53 : vector<1x1xf32> to vector<1x32xf32>
    %119 = arith.mulf %118, %80 : vector<1x32xf32>
    %cst_42 = arith.constant 1.000000e+00 : f32
    %120 = vector.broadcast %cst_42 : f32 to vector<1x1xf32>
    %121 = arith.subf %120, %53 : vector<1x1xf32>
    %122 = vector.broadcast %121 : vector<1x1xf32> to vector<1x32xf32>
    %123 = arith.mulf %122, %50 : vector<1x32xf32>
    %124 = arith.addf %119, %123 : vector<1x32xf32>
    %125 = vector.broadcast %54 : vector<1x1xf32> to vector<1x32xf32>
    %126 = arith.mulf %125, %110 : vector<1x32xf32>
    %cst_43 = arith.constant 1.000000e+00 : f32
    %127 = vector.broadcast %cst_43 : f32 to vector<1x1xf32>
    %128 = arith.subf %127, %54 : vector<1x1xf32>
    %129 = vector.broadcast %128 : vector<1x1xf32> to vector<1x32xf32>
    %130 = arith.mulf %129, %51 : vector<1x32xf32>
    %131 = arith.addf %126, %130 : vector<1x32xf32>
    %132 = vector.broadcast %54 : vector<1x1xf32> to vector<1x32xf32>
    %133 = arith.mulf %132, %108 : vector<1x32xf32>
    %cst_44 = arith.constant 1.000000e+00 : f32
    %134 = vector.broadcast %cst_44 : f32 to vector<1x1xf32>
    %135 = arith.subf %134, %54 : vector<1x1xf32>
    %136 = vector.broadcast %135 : vector<1x1xf32> to vector<1x32xf32>
    %137 = arith.mulf %136, %52 : vector<1x32xf32>
    %138 = arith.addf %133, %137 : vector<1x32xf32>
    %c0_45 = arith.constant 0 : index
    %c0_46 = arith.constant 0 : index
    %139 = vector.load %arg23[%c0_45, %c0_46] : memref<8x64xf32, #tpu.memory_space<vmem>>, vector<1x32xf32>
    tpu.vector_store %arg23[%c0_45, %c0_46], %117 {strides = array<i32>} : memref<8x64xf32, #tpu.memory_space<vmem>>, vector<1x32xf32>,
    %c7 = arith.constant 7 : index
    %c32 = arith.constant 32 : index
    %140 = vector.load %arg23[%c7, %c32] : memref<8x64xf32, #tpu.memory_space<vmem>>, vector<1x32xf32>
    tpu.vector_store %arg23[%c7, %c32], %131 {strides = array<i32>} : memref<8x64xf32, #tpu.memory_space<vmem>>, vector<1x32xf32>,
    %141 = vector.extract_strided_slice %7 {offsets = [1, 0], sizes = [1, 1], strides = [1, 1]} : vector<8x1xf32> to vector<1x1xf32>
    %142 = vector.extract_strided_slice %7 {offsets = [6, 0], sizes = [1, 1], strides = [1, 1]} : vector<8x1xf32> to vector<1x1xf32>
    %143 = vector.extract_strided_slice %46 {offsets = [1, 0], sizes = [1, 128], strides = [1, 1]} : vector<8x256xf32> to vector<1x128xf32>
    %cst_47 = arith.constant dense<0.000000e+00> : vector<1x128xf32>
    %144 = tpu.matmul %117, %47, %cst_47 {dimension_numbers = #tpu.dot_dimension_numbers<[1], [0], [0], [1], [0, 0, 1, 1], [], []>} : vector<1x32xf32>, vector<32x128xf32>, vector<1x128xf32> -> vector<1x128xf32>
    %145 = arith.addf %143, %144 : vector<1x128xf32>
    %146 = vector.extract_strided_slice %145 {offsets = [0, 0], sizes = [1, 32], strides = [1, 1]} : vector<1x128xf32> to vector<1x32xf32>
    %147 = arith.negf %146 : vector<1x32xf32>
    %148 = math.exp %147 : vector<1x32xf32>
    %cst_48 = arith.constant 1.000000e+00 : f32
    %149 = vector.broadcast %cst_48 : f32 to vector<1x32xf32>
    %150 = arith.addf %149, %148 : vector<1x32xf32>
    %151 = arith.divf %149, %150 : vector<1x32xf32>
    %152 = vector.extract_strided_slice %145 {offsets = [0, 32], sizes = [1, 32], strides = [1, 1]} : vector<1x128xf32> to vector<1x32xf32>
    %153 = arith.negf %152 : vector<1x32xf32>
    %154 = math.exp %153 : vector<1x32xf32>
    %cst_49 = arith.constant 1.000000e+00 : f32
    %155 = vector.broadcast %cst_49 : f32 to vector<1x32xf32>
    %156 = arith.addf %155, %154 : vector<1x32xf32>
    %157 = arith.divf %155, %156 : vector<1x32xf32>
    %158 = vector.extract_strided_slice %145 {offsets = [0, 64], sizes = [1, 32], strides = [1, 1]} : vector<1x128xf32> to vector<1x32xf32>
    %159 = math.tanh %158 : vector<1x32xf32>
    %160 = vector.extract_strided_slice %145 {offsets = [0, 96], sizes = [1, 32], strides = [1, 1]} : vector<1x128xf32> to vector<1x32xf32>
    %161 = arith.negf %160 : vector<1x32xf32>
    %162 = math.exp %161 : vector<1x32xf32>
    %cst_50 = arith.constant 1.000000e+00 : f32
    %163 = vector.broadcast %cst_50 : f32 to vector<1x32xf32>
    %164 = arith.addf %163, %162 : vector<1x32xf32>
    %165 = arith.divf %163, %164 : vector<1x32xf32>
    %166 = arith.mulf %157, %124 : vector<1x32xf32>
    %167 = arith.mulf %151, %159 : vector<1x32xf32>
    %168 = arith.addf %166, %167 : vector<1x32xf32>
    %169 = math.tanh %168 : vector<1x32xf32>
    %170 = arith.mulf %165, %169 : vector<1x32xf32>
    %171 = vector.extract_strided_slice %46 {offsets = [6, 128], sizes = [1, 128], strides = [1, 1]} : vector<8x256xf32> to vector<1x128xf32>
    %cst_51 = arith.constant dense<0.000000e+00> : vector<1x128xf32>
    %172 = tpu.matmul %131, %48, %cst_51 {dimension_numbers = #tpu.dot_dimension_numbers<[1], [0], [0], [1], [0, 0, 1, 1], [], []>} : vector<1x32xf32>, vector<32x128xf32>, vector<1x128xf32> -> vector<1x128xf32>
    %173 = arith.addf %171, %172 : vector<1x128xf32>
    %174 = vector.extract_strided_slice %173 {offsets = [0, 0], sizes = [1, 32], strides = [1, 1]} : vector<1x128xf32> to vector<1x32xf32>
    %175 = arith.negf %174 : vector<1x32xf32>
    %176 = math.exp %175 : vector<1x32xf32>
    %cst_52 = arith.constant 1.000000e+00 : f32
    %177 = vector.broadcast %cst_52 : f32 to vector<1x32xf32>
    %178 = arith.addf %177, %176 : vector<1x32xf32>
    %179 = arith.divf %177, %178 : vector<1x32xf32>
    %180 = vector.extract_strided_slice %173 {offsets = [0, 32], sizes = [1, 32], strides = [1, 1]} : vector<1x128xf32> to vector<1x32xf32>
    %181 = arith.negf %180 : vector<1x32xf32>
    %182 = math.exp %181 : vector<1x32xf32>
    %cst_53 = arith.constant 1.000000e+00 : f32
    %183 = vector.broadcast %cst_53 : f32 to vector<1x32xf32>
    %184 = arith.addf %183, %182 : vector<1x32xf32>
    %185 = arith.divf %183, %184 : vector<1x32xf32>
    %186 = vector.extract_strided_slice %173 {offsets = [0, 64], sizes = [1, 32], strides = [1, 1]} : vector<1x128xf32> to vector<1x32xf32>
    %187 = math.tanh %186 : vector<1x32xf32>
    %188 = vector.extract_strided_slice %173 {offsets = [0, 96], sizes = [1, 32], strides = [1, 1]} : vector<1x128xf32> to vector<1x32xf32>
    %189 = arith.negf %188 : vector<1x32xf32>
    %190 = math.exp %189 : vector<1x32xf32>
    %cst_54 = arith.constant 1.000000e+00 : f32
    %191 = vector.broadcast %cst_54 : f32 to vector<1x32xf32>
    %192 = arith.addf %191, %190 : vector<1x32xf32>
    %193 = arith.divf %191, %192 : vector<1x32xf32>
    %194 = arith.mulf %185, %138 : vector<1x32xf32>
    %195 = arith.mulf %179, %187 : vector<1x32xf32>
    %196 = arith.addf %194, %195 : vector<1x32xf32>
    %197 = math.tanh %196 : vector<1x32xf32>
    %198 = arith.mulf %193, %197 : vector<1x32xf32>
    %199 = vector.broadcast %141 : vector<1x1xf32> to vector<1x32xf32>
    %200 = arith.mulf %199, %170 : vector<1x32xf32>
    %cst_55 = arith.constant 1.000000e+00 : f32
    %201 = vector.broadcast %cst_55 : f32 to vector<1x1xf32>
    %202 = arith.subf %201, %141 : vector<1x1xf32>
    %203 = vector.broadcast %202 : vector<1x1xf32> to vector<1x32xf32>
    %204 = arith.mulf %203, %117 : vector<1x32xf32>
    %205 = arith.addf %200, %204 : vector<1x32xf32>
    %206 = vector.broadcast %141 : vector<1x1xf32> to vector<1x32xf32>
    %207 = arith.mulf %206, %168 : vector<1x32xf32>
    %cst_56 = arith.constant 1.000000e+00 : f32
    %208 = vector.broadcast %cst_56 : f32 to vector<1x1xf32>
    %209 = arith.subf %208, %141 : vector<1x1xf32>
    %210 = vector.broadcast %209 : vector<1x1xf32> to vector<1x32xf32>
    %211 = arith.mulf %210, %124 : vector<1x32xf32>
    %212 = arith.addf %207, %211 : vector<1x32xf32>
    %213 = vector.broadcast %142 : vector<1x1xf32> to vector<1x32xf32>
    %214 = arith.mulf %213, %198 : vector<1x32xf32>
    %cst_57 = arith.constant 1.000000e+00 : f32
    %215 = vector.broadcast %cst_57 : f32 to vector<1x1xf32>
    %216 = arith.subf %215, %142 : vector<1x1xf32>
    %217 = vector.broadcast %216 : vector<1x1xf32> to vector<1x32xf32>
    %218 = arith.mulf %217, %131 : vector<1x32xf32>
    %219 = arith.addf %214, %218 : vector<1x32xf32>
    %220 = vector.broadcast %142 : vector<1x1xf32> to vector<1x32xf32>
    %221 = arith.mulf %220, %196 : vector<1x32xf32>
    %cst_58 = arith.constant 1.000000e+00 : f32
    %222 = vector.broadcast %cst_58 : f32 to vector<1x1xf32>
    %223 = arith.subf %222, %142 : vector<1x1xf32>
    %224 = vector.broadcast %223 : vector<1x1xf32> to vector<1x32xf32>
    %225 = arith.mulf %224, %138 : vector<1x32xf32>
    %226 = arith.addf %221, %225 : vector<1x32xf32>
    %c1 = arith.constant 1 : index
    %c0_59 = arith.constant 0 : index
    %227 = vector.load %arg23[%c1, %c0_59] : memref<8x64xf32, #tpu.memory_space<vmem>>, vector<1x32xf32>
    tpu.vector_store %arg23[%c1, %c0_59], %205 {strides = array<i32>} : memref<8x64xf32, #tpu.memory_space<vmem>>, vector<1x32xf32>,
    %c6 = arith.constant 6 : index
    %c32_60 = arith.constant 32 : index
    %228 = vector.load %arg23[%c6, %c32_60] : memref<8x64xf32, #tpu.memory_space<vmem>>, vector<1x32xf32>
    tpu.vector_store %arg23[%c6, %c32_60], %219 {strides = array<i32>} : memref<8x64xf32, #tpu.memory_space<vmem>>, vector<1x32xf32>,
    %229 = vector.extract_strided_slice %7 {offsets = [2, 0], sizes = [1, 1], strides = [1, 1]} : vector<8x1xf32> to vector<1x1xf32>
    %230 = vector.extract_strided_slice %7 {offsets = [5, 0], sizes = [1, 1], strides = [1, 1]} : vector<8x1xf32> to vector<1x1xf32>
    %231 = vector.extract_strided_slice %46 {offsets = [2, 0], sizes = [1, 128], strides = [1, 1]} : vector<8x256xf32> to vector<1x128xf32>
    %cst_61 = arith.constant dense<0.000000e+00> : vector<1x128xf32>
    %232 = tpu.matmul %205, %47, %cst_61 {dimension_numbers = #tpu.dot_dimension_numbers<[1], [0], [0], [1], [0, 0, 1, 1], [], []>} : vector<1x32xf32>, vector<32x128xf32>, vector<1x128xf32> -> vector<1x128xf32>
    %233 = arith.addf %231, %232 : vector<1x128xf32>
    %234 = vector.extract_strided_slice %233 {offsets = [0, 0], sizes = [1, 32], strides = [1, 1]} : vector<1x128xf32> to vector<1x32xf32>
    %235 = arith.negf %234 : vector<1x32xf32>
    %236 = math.exp %235 : vector<1x32xf32>
    %cst_62 = arith.constant 1.000000e+00 : f32
    %237 = vector.broadcast %cst_62 : f32 to vector<1x32xf32>
    %238 = arith.addf %237, %236 : vector<1x32xf32>
    %239 = arith.divf %237, %238 : vector<1x32xf32>
    %240 = vector.extract_strided_slice %233 {offsets = [0, 32], sizes = [1, 32], strides = [1, 1]} : vector<1x128xf32> to vector<1x32xf32>
    %241 = arith.negf %240 : vector<1x32xf32>
    %242 = math.exp %241 : vector<1x32xf32>
    %cst_63 = arith.constant 1.000000e+00 : f32
    %243 = vector.broadcast %cst_63 : f32 to vector<1x32xf32>
    %244 = arith.addf %243, %242 : vector<1x32xf32>
    %245 = arith.divf %243, %244 : vector<1x32xf32>
    %246 = vector.extract_strided_slice %233 {offsets = [0, 64], sizes = [1, 32], strides = [1, 1]} : vector<1x128xf32> to vector<1x32xf32>
    %247 = math.tanh %246 : vector<1x32xf32>
    %248 = vector.extract_strided_slice %233 {offsets = [0, 96], sizes = [1, 32], strides = [1, 1]} : vector<1x128xf32> to vector<1x32xf32>
    %249 = arith.negf %248 : vector<1x32xf32>
    %250 = math.exp %249 : vector<1x32xf32>
    %cst_64 = arith.constant 1.000000e+00 : f32
    %251 = vector.broadcast %cst_64 : f32 to vector<1x32xf32>
    %252 = arith.addf %251, %250 : vector<1x32xf32>
    %253 = arith.divf %251, %252 : vector<1x32xf32>
    %254 = arith.mulf %245, %212 : vector<1x32xf32>
    %255 = arith.mulf %239, %247 : vector<1x32xf32>
    %256 = arith.addf %254, %255 : vector<1x32xf32>
    %257 = math.tanh %256 : vector<1x32xf32>
    %258 = arith.mulf %253, %257 : vector<1x32xf32>
    %259 = vector.extract_strided_slice %46 {offsets = [5, 128], sizes = [1, 128], strides = [1, 1]} : vector<8x256xf32> to vector<1x128xf32>
    %cst_65 = arith.constant dense<0.000000e+00> : vector<1x128xf32>
    %260 = tpu.matmul %219, %48, %cst_65 {dimension_numbers = #tpu.dot_dimension_numbers<[1], [0], [0], [1], [0, 0, 1, 1], [], []>} : vector<1x32xf32>, vector<32x128xf32>, vector<1x128xf32> -> vector<1x128xf32>
    %261 = arith.addf %259, %260 : vector<1x128xf32>
    %262 = vector.extract_strided_slice %261 {offsets = [0, 0], sizes = [1, 32], strides = [1, 1]} : vector<1x128xf32> to vector<1x32xf32>
    %263 = arith.negf %262 : vector<1x32xf32>
    %264 = math.exp %263 : vector<1x32xf32>
    %cst_66 = arith.constant 1.000000e+00 : f32
    %265 = vector.broadcast %cst_66 : f32 to vector<1x32xf32>
    %266 = arith.addf %265, %264 : vector<1x32xf32>
    %267 = arith.divf %265, %266 : vector<1x32xf32>
    %268 = vector.extract_strided_slice %261 {offsets = [0, 32], sizes = [1, 32], strides = [1, 1]} : vector<1x128xf32> to vector<1x32xf32>
    %269 = arith.negf %268 : vector<1x32xf32>
    %270 = math.exp %269 : vector<1x32xf32>
    %cst_67 = arith.constant 1.000000e+00 : f32
    %271 = vector.broadcast %cst_67 : f32 to vector<1x32xf32>
    %272 = arith.addf %271, %270 : vector<1x32xf32>
    %273 = arith.divf %271, %272 : vector<1x32xf32>
    %274 = vector.extract_strided_slice %261 {offsets = [0, 64], sizes = [1, 32], strides = [1, 1]} : vector<1x128xf32> to vector<1x32xf32>
    %275 = math.tanh %274 : vector<1x32xf32>
    %276 = vector.extract_strided_slice %261 {offsets = [0, 96], sizes = [1, 32], strides = [1, 1]} : vector<1x128xf32> to vector<1x32xf32>
    %277 = arith.negf %276 : vector<1x32xf32>
    %278 = math.exp %277 : vector<1x32xf32>
    %cst_68 = arith.constant 1.000000e+00 : f32
    %279 = vector.broadcast %cst_68 : f32 to vector<1x32xf32>
    %280 = arith.addf %279, %278 : vector<1x32xf32>
    %281 = arith.divf %279, %280 : vector<1x32xf32>
    %282 = arith.mulf %273, %226 : vector<1x32xf32>
    %283 = arith.mulf %267, %275 : vector<1x32xf32>
    %284 = arith.addf %282, %283 : vector<1x32xf32>
    %285 = math.tanh %284 : vector<1x32xf32>
    %286 = arith.mulf %281, %285 : vector<1x32xf32>
    %287 = vector.broadcast %229 : vector<1x1xf32> to vector<1x32xf32>
    %288 = arith.mulf %287, %258 : vector<1x32xf32>
    %cst_69 = arith.constant 1.000000e+00 : f32
    %289 = vector.broadcast %cst_69 : f32 to vector<1x1xf32>
    %290 = arith.subf %289, %229 : vector<1x1xf32>
    %291 = vector.broadcast %290 : vector<1x1xf32> to vector<1x32xf32>
    %292 = arith.mulf %291, %205 : vector<1x32xf32>
    %293 = arith.addf %288, %292 : vector<1x32xf32>
    %294 = vector.broadcast %229 : vector<1x1xf32> to vector<1x32xf32>
    %295 = arith.mulf %294, %256 : vector<1x32xf32>
    %cst_70 = arith.constant 1.000000e+00 : f32
    %296 = vector.broadcast %cst_70 : f32 to vector<1x1xf32>
    %297 = arith.subf %296, %229 : vector<1x1xf32>
    %298 = vector.broadcast %297 : vector<1x1xf32> to vector<1x32xf32>
    %299 = arith.mulf %298, %212 : vector<1x32xf32>
    %300 = arith.addf %295, %299 : vector<1x32xf32>
    %301 = vector.broadcast %230 : vector<1x1xf32> to vector<1x32xf32>
    %302 = arith.mulf %301, %286 : vector<1x32xf32>
    %cst_71 = arith.constant 1.000000e+00 : f32
    %303 = vector.broadcast %cst_71 : f32 to vector<1x1xf32>
    %304 = arith.subf %303, %230 : vector<1x1xf32>
    %305 = vector.broadcast %304 : vector<1x1xf32> to vector<1x32xf32>
    %306 = arith.mulf %305, %219 : vector<1x32xf32>
    %307 = arith.addf %302, %306 : vector<1x32xf32>
    %308 = vector.broadcast %230 : vector<1x1xf32> to vector<1x32xf32>
    %309 = arith.mulf %308, %284 : vector<1x32xf32>
    %cst_72 = arith.constant 1.000000e+00 : f32
    %310 = vector.broadcast %cst_72 : f32 to vector<1x1xf32>
    %311 = arith.subf %310, %230 : vector<1x1xf32>
    %312 = vector.broadcast %311 : vector<1x1xf32> to vector<1x32xf32>
    %313 = arith.mulf %312, %226 : vector<1x32xf32>
    %314 = arith.addf %309, %313 : vector<1x32xf32>
    %c2 = arith.constant 2 : index
    %c0_73 = arith.constant 0 : index
    %315 = vector.load %arg23[%c2, %c0_73] : memref<8x64xf32, #tpu.memory_space<vmem>>, vector<1x32xf32>
    tpu.vector_store %arg23[%c2, %c0_73], %293 {strides = array<i32>} : memref<8x64xf32, #tpu.memory_space<vmem>>, vector<1x32xf32>,
    %c5 = arith.constant 5 : index
    %c32_74 = arith.constant 32 : index
    %316 = vector.load %arg23[%c5, %c32_74] : memref<8x64xf32, #tpu.memory_space<vmem>>, vector<1x32xf32>
    tpu.vector_store %arg23[%c5, %c32_74], %307 {strides = array<i32>} : memref<8x64xf32, #tpu.memory_space<vmem>>, vector<1x32xf32>,
    %317 = vector.extract_strided_slice %7 {offsets = [3, 0], sizes = [1, 1], strides = [1, 1]} : vector<8x1xf32> to vector<1x1xf32>
    %318 = vector.extract_strided_slice %7 {offsets = [4, 0], sizes = [1, 1], strides = [1, 1]} : vector<8x1xf32> to vector<1x1xf32>
    %319 = vector.extract_strided_slice %46 {offsets = [3, 0], sizes = [1, 128], strides = [1, 1]} : vector<8x256xf32> to vector<1x128xf32>
    %cst_75 = arith.constant dense<0.000000e+00> : vector<1x128xf32>
    %320 = tpu.matmul %293, %47, %cst_75 {dimension_numbers = #tpu.dot_dimension_numbers<[1], [0], [0], [1], [0, 0, 1, 1], [], []>} : vector<1x32xf32>, vector<32x128xf32>, vector<1x128xf32> -> vector<1x128xf32>
    %321 = arith.addf %319, %320 : vector<1x128xf32>
    %322 = vector.extract_strided_slice %321 {offsets = [0, 0], sizes = [1, 32], strides = [1, 1]} : vector<1x128xf32> to vector<1x32xf32>
    %323 = arith.negf %322 : vector<1x32xf32>
    %324 = math.exp %323 : vector<1x32xf32>
    %cst_76 = arith.constant 1.000000e+00 : f32
    %325 = vector.broadcast %cst_76 : f32 to vector<1x32xf32>
    %326 = arith.addf %325, %324 : vector<1x32xf32>
    %327 = arith.divf %325, %326 : vector<1x32xf32>
    %328 = vector.extract_strided_slice %321 {offsets = [0, 32], sizes = [1, 32], strides = [1, 1]} : vector<1x128xf32> to vector<1x32xf32>
    %329 = arith.negf %328 : vector<1x32xf32>
    %330 = math.exp %329 : vector<1x32xf32>
    %cst_77 = arith.constant 1.000000e+00 : f32
    %331 = vector.broadcast %cst_77 : f32 to vector<1x32xf32>
    %332 = arith.addf %331, %330 : vector<1x32xf32>
    %333 = arith.divf %331, %332 : vector<1x32xf32>
    %334 = vector.extract_strided_slice %321 {offsets = [0, 64], sizes = [1, 32], strides = [1, 1]} : vector<1x128xf32> to vector<1x32xf32>
    %335 = math.tanh %334 : vector<1x32xf32>
    %336 = vector.extract_strided_slice %321 {offsets = [0, 96], sizes = [1, 32], strides = [1, 1]} : vector<1x128xf32> to vector<1x32xf32>
    %337 = arith.negf %336 : vector<1x32xf32>
    %338 = math.exp %337 : vector<1x32xf32>
    %cst_78 = arith.constant 1.000000e+00 : f32
    %339 = vector.broadcast %cst_78 : f32 to vector<1x32xf32>
    %340 = arith.addf %339, %338 : vector<1x32xf32>
    %341 = arith.divf %339, %340 : vector<1x32xf32>
    %342 = arith.mulf %333, %300 : vector<1x32xf32>
    %343 = arith.mulf %327, %335 : vector<1x32xf32>
    %344 = arith.addf %342, %343 : vector<1x32xf32>
    %345 = math.tanh %344 : vector<1x32xf32>
    %346 = arith.mulf %341, %345 : vector<1x32xf32>
    %347 = vector.extract_strided_slice %46 {offsets = [4, 128], sizes = [1, 128], strides = [1, 1]} : vector<8x256xf32> to vector<1x128xf32>
    %cst_79 = arith.constant dense<0.000000e+00> : vector<1x128xf32>
    %348 = tpu.matmul %307, %48, %cst_79 {dimension_numbers = #tpu.dot_dimension_numbers<[1], [0], [0], [1], [0, 0, 1, 1], [], []>} : vector<1x32xf32>, vector<32x128xf32>, vector<1x128xf32> -> vector<1x128xf32>
    %349 = arith.addf %347, %348 : vector<1x128xf32>
    %350 = vector.extract_strided_slice %349 {offsets = [0, 0], sizes = [1, 32], strides = [1, 1]} : vector<1x128xf32> to vector<1x32xf32>
    %351 = arith.negf %350 : vector<1x32xf32>
    %352 = math.exp %351 : vector<1x32xf32>
    %cst_80 = arith.constant 1.000000e+00 : f32
    %353 = vector.broadcast %cst_80 : f32 to vector<1x32xf32>
    %354 = arith.addf %353, %352 : vector<1x32xf32>
    %355 = arith.divf %353, %354 : vector<1x32xf32>
    %356 = vector.extract_strided_slice %349 {offsets = [0, 32], sizes = [1, 32], strides = [1, 1]} : vector<1x128xf32> to vector<1x32xf32>
    %357 = arith.negf %356 : vector<1x32xf32>
    %358 = math.exp %357 : vector<1x32xf32>
    %cst_81 = arith.constant 1.000000e+00 : f32
    %359 = vector.broadcast %cst_81 : f32 to vector<1x32xf32>
    %360 = arith.addf %359, %358 : vector<1x32xf32>
    %361 = arith.divf %359, %360 : vector<1x32xf32>
    %362 = vector.extract_strided_slice %349 {offsets = [0, 64], sizes = [1, 32], strides = [1, 1]} : vector<1x128xf32> to vector<1x32xf32>
    %363 = math.tanh %362 : vector<1x32xf32>
    %364 = vector.extract_strided_slice %349 {offsets = [0, 96], sizes = [1, 32], strides = [1, 1]} : vector<1x128xf32> to vector<1x32xf32>
    %365 = arith.negf %364 : vector<1x32xf32>
    %366 = math.exp %365 : vector<1x32xf32>
    %cst_82 = arith.constant 1.000000e+00 : f32
    %367 = vector.broadcast %cst_82 : f32 to vector<1x32xf32>
    %368 = arith.addf %367, %366 : vector<1x32xf32>
    %369 = arith.divf %367, %368 : vector<1x32xf32>
    %370 = arith.mulf %361, %314 : vector<1x32xf32>
    %371 = arith.mulf %355, %363 : vector<1x32xf32>
    %372 = arith.addf %370, %371 : vector<1x32xf32>
    %373 = math.tanh %372 : vector<1x32xf32>
    %374 = arith.mulf %369, %373 : vector<1x32xf32>
    %375 = vector.broadcast %317 : vector<1x1xf32> to vector<1x32xf32>
    %376 = arith.mulf %375, %346 : vector<1x32xf32>
    %cst_83 = arith.constant 1.000000e+00 : f32
    %377 = vector.broadcast %cst_83 : f32 to vector<1x1xf32>
    %378 = arith.subf %377, %317 : vector<1x1xf32>
    %379 = vector.broadcast %378 : vector<1x1xf32> to vector<1x32xf32>
    %380 = arith.mulf %379, %293 : vector<1x32xf32>
    %381 = arith.addf %376, %380 : vector<1x32xf32>
    %382 = vector.broadcast %317 : vector<1x1xf32> to vector<1x32xf32>
    %383 = arith.mulf %382, %344 : vector<1x32xf32>
    %cst_84 = arith.constant 1.000000e+00 : f32
    %384 = vector.broadcast %cst_84 : f32 to vector<1x1xf32>
    %385 = arith.subf %384, %317 : vector<1x1xf32>
    %386 = vector.broadcast %385 : vector<1x1xf32> to vector<1x32xf32>
    %387 = arith.mulf %386, %300 : vector<1x32xf32>
    %388 = arith.addf %383, %387 : vector<1x32xf32>
    %389 = vector.broadcast %318 : vector<1x1xf32> to vector<1x32xf32>
    %390 = arith.mulf %389, %374 : vector<1x32xf32>
    %cst_85 = arith.constant 1.000000e+00 : f32
    %391 = vector.broadcast %cst_85 : f32 to vector<1x1xf32>
    %392 = arith.subf %391, %318 : vector<1x1xf32>
    %393 = vector.broadcast %392 : vector<1x1xf32> to vector<1x32xf32>
    %394 = arith.mulf %393, %307 : vector<1x32xf32>
    %395 = arith.addf %390, %394 : vector<1x32xf32>
    %396 = vector.broadcast %318 : vector<1x1xf32> to vector<1x32xf32>
    %397 = arith.mulf %396, %372 : vector<1x32xf32>
    %cst_86 = arith.constant 1.000000e+00 : f32
    %398 = vector.broadcast %cst_86 : f32 to vector<1x1xf32>
    %399 = arith.subf %398, %318 : vector<1x1xf32>
    %400 = vector.broadcast %399 : vector<1x1xf32> to vector<1x32xf32>
    %401 = arith.mulf %400, %314 : vector<1x32xf32>
    %402 = arith.addf %397, %401 : vector<1x32xf32>
    %c3 = arith.constant 3 : index
    %c0_87 = arith.constant 0 : index
    %403 = vector.load %arg23[%c3, %c0_87] : memref<8x64xf32, #tpu.memory_space<vmem>>, vector<1x32xf32>
    tpu.vector_store %arg23[%c3, %c0_87], %381 {strides = array<i32>} : memref<8x64xf32, #tpu.memory_space<vmem>>, vector<1x32xf32>,
    %c4 = arith.constant 4 : index
    %c32_88 = arith.constant 32 : index
    %404 = vector.load %arg23[%c4, %c32_88] : memref<8x64xf32, #tpu.memory_space<vmem>>, vector<1x32xf32>
    tpu.vector_store %arg23[%c4, %c32_88], %395 {strides = array<i32>} : memref<8x64xf32, #tpu.memory_space<vmem>>, vector<1x32xf32>,
    %405 = vector.extract_strided_slice %7 {offsets = [4, 0], sizes = [1, 1], strides = [1, 1]} : vector<8x1xf32> to vector<1x1xf32>
    %406 = vector.extract_strided_slice %7 {offsets = [3, 0], sizes = [1, 1], strides = [1, 1]} : vector<8x1xf32> to vector<1x1xf32>
    %407 = vector.extract_strided_slice %46 {offsets = [4, 0], sizes = [1, 128], strides = [1, 1]} : vector<8x256xf32> to vector<1x128xf32>
    %cst_89 = arith.constant dense<0.000000e+00> : vector<1x128xf32>
    %408 = tpu.matmul %381, %47, %cst_89 {dimension_numbers = #tpu.dot_dimension_numbers<[1], [0], [0], [1], [0, 0, 1, 1], [], []>} : vector<1x32xf32>, vector<32x128xf32>, vector<1x128xf32> -> vector<1x128xf32>
    %409 = arith.addf %407, %408 : vector<1x128xf32>
    %410 = vector.extract_strided_slice %409 {offsets = [0, 0], sizes = [1, 32], strides = [1, 1]} : vector<1x128xf32> to vector<1x32xf32>
    %411 = arith.negf %410 : vector<1x32xf32>
    %412 = math.exp %411 : vector<1x32xf32>
    %cst_90 = arith.constant 1.000000e+00 : f32
    %413 = vector.broadcast %cst_90 : f32 to vector<1x32xf32>
    %414 = arith.addf %413, %412 : vector<1x32xf32>
    %415 = arith.divf %413, %414 : vector<1x32xf32>
    %416 = vector.extract_strided_slice %409 {offsets = [0, 32], sizes = [1, 32], strides = [1, 1]} : vector<1x128xf32> to vector<1x32xf32>
    %417 = arith.negf %416 : vector<1x32xf32>
    %418 = math.exp %417 : vector<1x32xf32>
    %cst_91 = arith.constant 1.000000e+00 : f32
    %419 = vector.broadcast %cst_91 : f32 to vector<1x32xf32>
    %420 = arith.addf %419, %418 : vector<1x32xf32>
    %421 = arith.divf %419, %420 : vector<1x32xf32>
    %422 = vector.extract_strided_slice %409 {offsets = [0, 64], sizes = [1, 32], strides = [1, 1]} : vector<1x128xf32> to vector<1x32xf32>
    %423 = math.tanh %422 : vector<1x32xf32>
    %424 = vector.extract_strided_slice %409 {offsets = [0, 96], sizes = [1, 32], strides = [1, 1]} : vector<1x128xf32> to vector<1x32xf32>
    %425 = arith.negf %424 : vector<1x32xf32>
    %426 = math.exp %425 : vector<1x32xf32>
    %cst_92 = arith.constant 1.000000e+00 : f32
    %427 = vector.broadcast %cst_92 : f32 to vector<1x32xf32>
    %428 = arith.addf %427, %426 : vector<1x32xf32>
    %429 = arith.divf %427, %428 : vector<1x32xf32>
    %430 = arith.mulf %421, %388 : vector<1x32xf32>
    %431 = arith.mulf %415, %423 : vector<1x32xf32>
    %432 = arith.addf %430, %431 : vector<1x32xf32>
    %433 = math.tanh %432 : vector<1x32xf32>
    %434 = arith.mulf %429, %433 : vector<1x32xf32>
    %435 = vector.extract_strided_slice %46 {offsets = [3, 128], sizes = [1, 128], strides = [1, 1]} : vector<8x256xf32> to vector<1x128xf32>
    %cst_93 = arith.constant dense<0.000000e+00> : vector<1x128xf32>
    %436 = tpu.matmul %395, %48, %cst_93 {dimension_numbers = #tpu.dot_dimension_numbers<[1], [0], [0], [1], [0, 0, 1, 1], [], []>} : vector<1x32xf32>, vector<32x128xf32>, vector<1x128xf32> -> vector<1x128xf32>
    %437 = arith.addf %435, %436 : vector<1x128xf32>
    %438 = vector.extract_strided_slice %437 {offsets = [0, 0], sizes = [1, 32], strides = [1, 1]} : vector<1x128xf32> to vector<1x32xf32>
    %439 = arith.negf %438 : vector<1x32xf32>
    %440 = math.exp %439 : vector<1x32xf32>
    %cst_94 = arith.constant 1.000000e+00 : f32
    %441 = vector.broadcast %cst_94 : f32 to vector<1x32xf32>
    %442 = arith.addf %441, %440 : vector<1x32xf32>
    %443 = arith.divf %441, %442 : vector<1x32xf32>
    %444 = vector.extract_strided_slice %437 {offsets = [0, 32], sizes = [1, 32], strides = [1, 1]} : vector<1x128xf32> to vector<1x32xf32>
    %445 = arith.negf %444 : vector<1x32xf32>
    %446 = math.exp %445 : vector<1x32xf32>
    %cst_95 = arith.constant 1.000000e+00 : f32
    %447 = vector.broadcast %cst_95 : f32 to vector<1x32xf32>
    %448 = arith.addf %447, %446 : vector<1x32xf32>
    %449 = arith.divf %447, %448 : vector<1x32xf32>
    %450 = vector.extract_strided_slice %437 {offsets = [0, 64], sizes = [1, 32], strides = [1, 1]} : vector<1x128xf32> to vector<1x32xf32>
    %451 = math.tanh %450 : vector<1x32xf32>
    %452 = vector.extract_strided_slice %437 {offsets = [0, 96], sizes = [1, 32], strides = [1, 1]} : vector<1x128xf32> to vector<1x32xf32>
    %453 = arith.negf %452 : vector<1x32xf32>
    %454 = math.exp %453 : vector<1x32xf32>
    %cst_96 = arith.constant 1.000000e+00 : f32
    %455 = vector.broadcast %cst_96 : f32 to vector<1x32xf32>
    %456 = arith.addf %455, %454 : vector<1x32xf32>
    %457 = arith.divf %455, %456 : vector<1x32xf32>
    %458 = arith.mulf %449, %402 : vector<1x32xf32>
    %459 = arith.mulf %443, %451 : vector<1x32xf32>
    %460 = arith.addf %458, %459 : vector<1x32xf32>
    %461 = math.tanh %460 : vector<1x32xf32>
    %462 = arith.mulf %457, %461 : vector<1x32xf32>
    %463 = vector.broadcast %405 : vector<1x1xf32> to vector<1x32xf32>
    %464 = arith.mulf %463, %434 : vector<1x32xf32>
    %cst_97 = arith.constant 1.000000e+00 : f32
    %465 = vector.broadcast %cst_97 : f32 to vector<1x1xf32>
    %466 = arith.subf %465, %405 : vector<1x1xf32>
    %467 = vector.broadcast %466 : vector<1x1xf32> to vector<1x32xf32>
    %468 = arith.mulf %467, %381 : vector<1x32xf32>
    %469 = arith.addf %464, %468 : vector<1x32xf32>
    %470 = vector.broadcast %405 : vector<1x1xf32> to vector<1x32xf32>
    %471 = arith.mulf %470, %432 : vector<1x32xf32>
    %cst_98 = arith.constant 1.000000e+00 : f32
    %472 = vector.broadcast %cst_98 : f32 to vector<1x1xf32>
    %473 = arith.subf %472, %405 : vector<1x1xf32>
    %474 = vector.broadcast %473 : vector<1x1xf32> to vector<1x32xf32>
    %475 = arith.mulf %474, %388 : vector<1x32xf32>
    %476 = arith.addf %471, %475 : vector<1x32xf32>
    %477 = vector.broadcast %406 : vector<1x1xf32> to vector<1x32xf32>
    %478 = arith.mulf %477, %462 : vector<1x32xf32>
    %cst_99 = arith.constant 1.000000e+00 : f32
    %479 = vector.broadcast %cst_99 : f32 to vector<1x1xf32>
    %480 = arith.subf %479, %406 : vector<1x1xf32>
    %481 = vector.broadcast %480 : vector<1x1xf32> to vector<1x32xf32>
    %482 = arith.mulf %481, %395 : vector<1x32xf32>
    %483 = arith.addf %478, %482 : vector<1x32xf32>
    %484 = vector.broadcast %406 : vector<1x1xf32> to vector<1x32xf32>
    %485 = arith.mulf %484, %460 : vector<1x32xf32>
    %cst_100 = arith.constant 1.000000e+00 : f32
    %486 = vector.broadcast %cst_100 : f32 to vector<1x1xf32>
    %487 = arith.subf %486, %406 : vector<1x1xf32>
    %488 = vector.broadcast %487 : vector<1x1xf32> to vector<1x32xf32>
    %489 = arith.mulf %488, %402 : vector<1x32xf32>
    %490 = arith.addf %485, %489 : vector<1x32xf32>
    %c4_101 = arith.constant 4 : index
    %c0_102 = arith.constant 0 : index
    %491 = vector.load %arg23[%c4_101, %c0_102] : memref<8x64xf32, #tpu.memory_space<vmem>>, vector<1x32xf32>
    tpu.vector_store %arg23[%c4_101, %c0_102], %469 {strides = array<i32>} : memref<8x64xf32, #tpu.memory_space<vmem>>, vector<1x32xf32>,
    %c3_103 = arith.constant 3 : index
    %c32_104 = arith.constant 32 : index
    %492 = vector.load %arg23[%c3_103, %c32_104] : memref<8x64xf32, #tpu.memory_space<vmem>>, vector<1x32xf32>
    tpu.vector_store %arg23[%c3_103, %c32_104], %483 {strides = array<i32>} : memref<8x64xf32, #tpu.memory_space<vmem>>, vector<1x32xf32>,
    %493 = vector.extract_strided_slice %7 {offsets = [5, 0], sizes = [1, 1], strides = [1, 1]} : vector<8x1xf32> to vector<1x1xf32>
    %494 = vector.extract_strided_slice %7 {offsets = [2, 0], sizes = [1, 1], strides = [1, 1]} : vector<8x1xf32> to vector<1x1xf32>
    %495 = vector.extract_strided_slice %46 {offsets = [5, 0], sizes = [1, 128], strides = [1, 1]} : vector<8x256xf32> to vector<1x128xf32>
    %cst_105 = arith.constant dense<0.000000e+00> : vector<1x128xf32>
    %496 = tpu.matmul %469, %47, %cst_105 {dimension_numbers = #tpu.dot_dimension_numbers<[1], [0], [0], [1], [0, 0, 1, 1], [], []>} : vector<1x32xf32>, vector<32x128xf32>, vector<1x128xf32> -> vector<1x128xf32>
    %497 = arith.addf %495, %496 : vector<1x128xf32>
    %498 = vector.extract_strided_slice %497 {offsets = [0, 0], sizes = [1, 32], strides = [1, 1]} : vector<1x128xf32> to vector<1x32xf32>
    %499 = arith.negf %498 : vector<1x32xf32>
    %500 = math.exp %499 : vector<1x32xf32>
    %cst_106 = arith.constant 1.000000e+00 : f32
    %501 = vector.broadcast %cst_106 : f32 to vector<1x32xf32>
    %502 = arith.addf %501, %500 : vector<1x32xf32>
    %503 = arith.divf %501, %502 : vector<1x32xf32>
    %504 = vector.extract_strided_slice %497 {offsets = [0, 32], sizes = [1, 32], strides = [1, 1]} : vector<1x128xf32> to vector<1x32xf32>
    %505 = arith.negf %504 : vector<1x32xf32>
    %506 = math.exp %505 : vector<1x32xf32>
    %cst_107 = arith.constant 1.000000e+00 : f32
    %507 = vector.broadcast %cst_107 : f32 to vector<1x32xf32>
    %508 = arith.addf %507, %506 : vector<1x32xf32>
    %509 = arith.divf %507, %508 : vector<1x32xf32>
    %510 = vector.extract_strided_slice %497 {offsets = [0, 64], sizes = [1, 32], strides = [1, 1]} : vector<1x128xf32> to vector<1x32xf32>
    %511 = math.tanh %510 : vector<1x32xf32>
    %512 = vector.extract_strided_slice %497 {offsets = [0, 96], sizes = [1, 32], strides = [1, 1]} : vector<1x128xf32> to vector<1x32xf32>
    %513 = arith.negf %512 : vector<1x32xf32>
    %514 = math.exp %513 : vector<1x32xf32>
    %cst_108 = arith.constant 1.000000e+00 : f32
    %515 = vector.broadcast %cst_108 : f32 to vector<1x32xf32>
    %516 = arith.addf %515, %514 : vector<1x32xf32>
    %517 = arith.divf %515, %516 : vector<1x32xf32>
    %518 = arith.mulf %509, %476 : vector<1x32xf32>
    %519 = arith.mulf %503, %511 : vector<1x32xf32>
    %520 = arith.addf %518, %519 : vector<1x32xf32>
    %521 = math.tanh %520 : vector<1x32xf32>
    %522 = arith.mulf %517, %521 : vector<1x32xf32>
    %523 = vector.extract_strided_slice %46 {offsets = [2, 128], sizes = [1, 128], strides = [1, 1]} : vector<8x256xf32> to vector<1x128xf32>
    %cst_109 = arith.constant dense<0.000000e+00> : vector<1x128xf32>
    %524 = tpu.matmul %483, %48, %cst_109 {dimension_numbers = #tpu.dot_dimension_numbers<[1], [0], [0], [1], [0, 0, 1, 1], [], []>} : vector<1x32xf32>, vector<32x128xf32>, vector<1x128xf32> -> vector<1x128xf32>
    %525 = arith.addf %523, %524 : vector<1x128xf32>
    %526 = vector.extract_strided_slice %525 {offsets = [0, 0], sizes = [1, 32], strides = [1, 1]} : vector<1x128xf32> to vector<1x32xf32>
    %527 = arith.negf %526 : vector<1x32xf32>
    %528 = math.exp %527 : vector<1x32xf32>
    %cst_110 = arith.constant 1.000000e+00 : f32
    %529 = vector.broadcast %cst_110 : f32 to vector<1x32xf32>
    %530 = arith.addf %529, %528 : vector<1x32xf32>
    %531 = arith.divf %529, %530 : vector<1x32xf32>
    %532 = vector.extract_strided_slice %525 {offsets = [0, 32], sizes = [1, 32], strides = [1, 1]} : vector<1x128xf32> to vector<1x32xf32>
    %533 = arith.negf %532 : vector<1x32xf32>
    %534 = math.exp %533 : vector<1x32xf32>
    %cst_111 = arith.constant 1.000000e+00 : f32
    %535 = vector.broadcast %cst_111 : f32 to vector<1x32xf32>
    %536 = arith.addf %535, %534 : vector<1x32xf32>
    %537 = arith.divf %535, %536 : vector<1x32xf32>
    %538 = vector.extract_strided_slice %525 {offsets = [0, 64], sizes = [1, 32], strides = [1, 1]} : vector<1x128xf32> to vector<1x32xf32>
    %539 = math.tanh %538 : vector<1x32xf32>
    %540 = vector.extract_strided_slice %525 {offsets = [0, 96], sizes = [1, 32], strides = [1, 1]} : vector<1x128xf32> to vector<1x32xf32>
    %541 = arith.negf %540 : vector<1x32xf32>
    %542 = math.exp %541 : vector<1x32xf32>
    %cst_112 = arith.constant 1.000000e+00 : f32
    %543 = vector.broadcast %cst_112 : f32 to vector<1x32xf32>
    %544 = arith.addf %543, %542 : vector<1x32xf32>
    %545 = arith.divf %543, %544 : vector<1x32xf32>
    %546 = arith.mulf %537, %490 : vector<1x32xf32>
    %547 = arith.mulf %531, %539 : vector<1x32xf32>
    %548 = arith.addf %546, %547 : vector<1x32xf32>
    %549 = math.tanh %548 : vector<1x32xf32>
    %550 = arith.mulf %545, %549 : vector<1x32xf32>
    %551 = vector.broadcast %493 : vector<1x1xf32> to vector<1x32xf32>
    %552 = arith.mulf %551, %522 : vector<1x32xf32>
    %cst_113 = arith.constant 1.000000e+00 : f32
    %553 = vector.broadcast %cst_113 : f32 to vector<1x1xf32>
    %554 = arith.subf %553, %493 : vector<1x1xf32>
    %555 = vector.broadcast %554 : vector<1x1xf32> to vector<1x32xf32>
    %556 = arith.mulf %555, %469 : vector<1x32xf32>
    %557 = arith.addf %552, %556 : vector<1x32xf32>
    %558 = vector.broadcast %493 : vector<1x1xf32> to vector<1x32xf32>
    %559 = arith.mulf %558, %520 : vector<1x32xf32>
    %cst_114 = arith.constant 1.000000e+00 : f32
    %560 = vector.broadcast %cst_114 : f32 to vector<1x1xf32>
    %561 = arith.subf %560, %493 : vector<1x1xf32>
    %562 = vector.broadcast %561 : vector<1x1xf32> to vector<1x32xf32>
    %563 = arith.mulf %562, %476 : vector<1x32xf32>
    %564 = arith.addf %559, %563 : vector<1x32xf32>
    %565 = vector.broadcast %494 : vector<1x1xf32> to vector<1x32xf32>
    %566 = arith.mulf %565, %550 : vector<1x32xf32>
    %cst_115 = arith.constant 1.000000e+00 : f32
    %567 = vector.broadcast %cst_115 : f32 to vector<1x1xf32>
    %568 = arith.subf %567, %494 : vector<1x1xf32>
    %569 = vector.broadcast %568 : vector<1x1xf32> to vector<1x32xf32>
    %570 = arith.mulf %569, %483 : vector<1x32xf32>
    %571 = arith.addf %566, %570 : vector<1x32xf32>
    %572 = vector.broadcast %494 : vector<1x1xf32> to vector<1x32xf32>
    %573 = arith.mulf %572, %548 : vector<1x32xf32>
    %cst_116 = arith.constant 1.000000e+00 : f32
    %574 = vector.broadcast %cst_116 : f32 to vector<1x1xf32>
    %575 = arith.subf %574, %494 : vector<1x1xf32>
    %576 = vector.broadcast %575 : vector<1x1xf32> to vector<1x32xf32>
    %577 = arith.mulf %576, %490 : vector<1x32xf32>
    %578 = arith.addf %573, %577 : vector<1x32xf32>
    %c5_117 = arith.constant 5 : index
    %c0_118 = arith.constant 0 : index
    %579 = vector.load %arg23[%c5_117, %c0_118] : memref<8x64xf32, #tpu.memory_space<vmem>>, vector<1x32xf32>
    tpu.vector_store %arg23[%c5_117, %c0_118], %557 {strides = array<i32>} : memref<8x64xf32, #tpu.memory_space<vmem>>, vector<1x32xf32>,
    %c2_119 = arith.constant 2 : index
    %c32_120 = arith.constant 32 : index
    %580 = vector.load %arg23[%c2_119, %c32_120] : memref<8x64xf32, #tpu.memory_space<vmem>>, vector<1x32xf32>
    tpu.vector_store %arg23[%c2_119, %c32_120], %571 {strides = array<i32>} : memref<8x64xf32, #tpu.memory_space<vmem>>, vector<1x32xf32>,
    %581 = vector.extract_strided_slice %7 {offsets = [6, 0], sizes = [1, 1], strides = [1, 1]} : vector<8x1xf32> to vector<1x1xf32>
    %582 = vector.extract_strided_slice %7 {offsets = [1, 0], sizes = [1, 1], strides = [1, 1]} : vector<8x1xf32> to vector<1x1xf32>
    %583 = vector.extract_strided_slice %46 {offsets = [6, 0], sizes = [1, 128], strides = [1, 1]} : vector<8x256xf32> to vector<1x128xf32>
    %cst_121 = arith.constant dense<0.000000e+00> : vector<1x128xf32>
    %584 = tpu.matmul %557, %47, %cst_121 {dimension_numbers = #tpu.dot_dimension_numbers<[1], [0], [0], [1], [0, 0, 1, 1], [], []>} : vector<1x32xf32>, vector<32x128xf32>, vector<1x128xf32> -> vector<1x128xf32>
    %585 = arith.addf %583, %584 : vector<1x128xf32>
    %586 = vector.extract_strided_slice %585 {offsets = [0, 0], sizes = [1, 32], strides = [1, 1]} : vector<1x128xf32> to vector<1x32xf32>
    %587 = arith.negf %586 : vector<1x32xf32>
    %588 = math.exp %587 : vector<1x32xf32>
    %cst_122 = arith.constant 1.000000e+00 : f32
    %589 = vector.broadcast %cst_122 : f32 to vector<1x32xf32>
    %590 = arith.addf %589, %588 : vector<1x32xf32>
    %591 = arith.divf %589, %590 : vector<1x32xf32>
    %592 = vector.extract_strided_slice %585 {offsets = [0, 32], sizes = [1, 32], strides = [1, 1]} : vector<1x128xf32> to vector<1x32xf32>
    %593 = arith.negf %592 : vector<1x32xf32>
    %594 = math.exp %593 : vector<1x32xf32>
    %cst_123 = arith.constant 1.000000e+00 : f32
    %595 = vector.broadcast %cst_123 : f32 to vector<1x32xf32>
    %596 = arith.addf %595, %594 : vector<1x32xf32>
    %597 = arith.divf %595, %596 : vector<1x32xf32>
    %598 = vector.extract_strided_slice %585 {offsets = [0, 64], sizes = [1, 32], strides = [1, 1]} : vector<1x128xf32> to vector<1x32xf32>
    %599 = math.tanh %598 : vector<1x32xf32>
    %600 = vector.extract_strided_slice %585 {offsets = [0, 96], sizes = [1, 32], strides = [1, 1]} : vector<1x128xf32> to vector<1x32xf32>
    %601 = arith.negf %600 : vector<1x32xf32>
    %602 = math.exp %601 : vector<1x32xf32>
    %cst_124 = arith.constant 1.000000e+00 : f32
    %603 = vector.broadcast %cst_124 : f32 to vector<1x32xf32>
    %604 = arith.addf %603, %602 : vector<1x32xf32>
    %605 = arith.divf %603, %604 : vector<1x32xf32>
    %606 = arith.mulf %597, %564 : vector<1x32xf32>
    %607 = arith.mulf %591, %599 : vector<1x32xf32>
    %608 = arith.addf %606, %607 : vector<1x32xf32>
    %609 = math.tanh %608 : vector<1x32xf32>
    %610 = arith.mulf %605, %609 : vector<1x32xf32>
    %611 = vector.extract_strided_slice %46 {offsets = [1, 128], sizes = [1, 128], strides = [1, 1]} : vector<8x256xf32> to vector<1x128xf32>
    %cst_125 = arith.constant dense<0.000000e+00> : vector<1x128xf32>
    %612 = tpu.matmul %571, %48, %cst_125 {dimension_numbers = #tpu.dot_dimension_numbers<[1], [0], [0], [1], [0, 0, 1, 1], [], []>} : vector<1x32xf32>, vector<32x128xf32>, vector<1x128xf32> -> vector<1x128xf32>
    %613 = arith.addf %611, %612 : vector<1x128xf32>
    %614 = vector.extract_strided_slice %613 {offsets = [0, 0], sizes = [1, 32], strides = [1, 1]} : vector<1x128xf32> to vector<1x32xf32>
    %615 = arith.negf %614 : vector<1x32xf32>
    %616 = math.exp %615 : vector<1x32xf32>
    %cst_126 = arith.constant 1.000000e+00 : f32
    %617 = vector.broadcast %cst_126 : f32 to vector<1x32xf32>
    %618 = arith.addf %617, %616 : vector<1x32xf32>
    %619 = arith.divf %617, %618 : vector<1x32xf32>
    %620 = vector.extract_strided_slice %613 {offsets = [0, 32], sizes = [1, 32], strides = [1, 1]} : vector<1x128xf32> to vector<1x32xf32>
    %621 = arith.negf %620 : vector<1x32xf32>
    %622 = math.exp %621 : vector<1x32xf32>
    %cst_127 = arith.constant 1.000000e+00 : f32
    %623 = vector.broadcast %cst_127 : f32 to vector<1x32xf32>
    %624 = arith.addf %623, %622 : vector<1x32xf32>
    %625 = arith.divf %623, %624 : vector<1x32xf32>
    %626 = vector.extract_strided_slice %613 {offsets = [0, 64], sizes = [1, 32], strides = [1, 1]} : vector<1x128xf32> to vector<1x32xf32>
    %627 = math.tanh %626 : vector<1x32xf32>
    %628 = vector.extract_strided_slice %613 {offsets = [0, 96], sizes = [1, 32], strides = [1, 1]} : vector<1x128xf32> to vector<1x32xf32>
    %629 = arith.negf %628 : vector<1x32xf32>
    %630 = math.exp %629 : vector<1x32xf32>
    %cst_128 = arith.constant 1.000000e+00 : f32
    %631 = vector.broadcast %cst_128 : f32 to vector<1x32xf32>
    %632 = arith.addf %631, %630 : vector<1x32xf32>
    %633 = arith.divf %631, %632 : vector<1x32xf32>
    %634 = arith.mulf %625, %578 : vector<1x32xf32>
    %635 = arith.mulf %619, %627 : vector<1x32xf32>
    %636 = arith.addf %634, %635 : vector<1x32xf32>
    %637 = math.tanh %636 : vector<1x32xf32>
    %638 = arith.mulf %633, %637 : vector<1x32xf32>
    %639 = vector.broadcast %581 : vector<1x1xf32> to vector<1x32xf32>
    %640 = arith.mulf %639, %610 : vector<1x32xf32>
    %cst_129 = arith.constant 1.000000e+00 : f32
    %641 = vector.broadcast %cst_129 : f32 to vector<1x1xf32>
    %642 = arith.subf %641, %581 : vector<1x1xf32>
    %643 = vector.broadcast %642 : vector<1x1xf32> to vector<1x32xf32>
    %644 = arith.mulf %643, %557 : vector<1x32xf32>
    %645 = arith.addf %640, %644 : vector<1x32xf32>
    %646 = vector.broadcast %581 : vector<1x1xf32> to vector<1x32xf32>
    %647 = arith.mulf %646, %608 : vector<1x32xf32>
    %cst_130 = arith.constant 1.000000e+00 : f32
    %648 = vector.broadcast %cst_130 : f32 to vector<1x1xf32>
    %649 = arith.subf %648, %581 : vector<1x1xf32>
    %650 = vector.broadcast %649 : vector<1x1xf32> to vector<1x32xf32>
    %651 = arith.mulf %650, %564 : vector<1x32xf32>
    %652 = arith.addf %647, %651 : vector<1x32xf32>
    %653 = vector.broadcast %582 : vector<1x1xf32> to vector<1x32xf32>
    %654 = arith.mulf %653, %638 : vector<1x32xf32>
    %cst_131 = arith.constant 1.000000e+00 : f32
    %655 = vector.broadcast %cst_131 : f32 to vector<1x1xf32>
    %656 = arith.subf %655, %582 : vector<1x1xf32>
    %657 = vector.broadcast %656 : vector<1x1xf32> to vector<1x32xf32>
    %658 = arith.mulf %657, %571 : vector<1x32xf32>
    %659 = arith.addf %654, %658 : vector<1x32xf32>
    %660 = vector.broadcast %582 : vector<1x1xf32> to vector<1x32xf32>
    %661 = arith.mulf %660, %636 : vector<1x32xf32>
    %cst_132 = arith.constant 1.000000e+00 : f32
    %662 = vector.broadcast %cst_132 : f32 to vector<1x1xf32>
    %663 = arith.subf %662, %582 : vector<1x1xf32>
    %664 = vector.broadcast %663 : vector<1x1xf32> to vector<1x32xf32>
    %665 = arith.mulf %664, %578 : vector<1x32xf32>
    %666 = arith.addf %661, %665 : vector<1x32xf32>
    %c6_133 = arith.constant 6 : index
    %c0_134 = arith.constant 0 : index
    %667 = vector.load %arg23[%c6_133, %c0_134] : memref<8x64xf32, #tpu.memory_space<vmem>>, vector<1x32xf32>
    tpu.vector_store %arg23[%c6_133, %c0_134], %645 {strides = array<i32>} : memref<8x64xf32, #tpu.memory_space<vmem>>, vector<1x32xf32>,
    %c1_135 = arith.constant 1 : index
    %c32_136 = arith.constant 32 : index
    %668 = vector.load %arg23[%c1_135, %c32_136] : memref<8x64xf32, #tpu.memory_space<vmem>>, vector<1x32xf32>
    tpu.vector_store %arg23[%c1_135, %c32_136], %659 {strides = array<i32>} : memref<8x64xf32, #tpu.memory_space<vmem>>, vector<1x32xf32>,
    %669 = vector.extract_strided_slice %7 {offsets = [7, 0], sizes = [1, 1], strides = [1, 1]} : vector<8x1xf32> to vector<1x1xf32>
    %670 = vector.extract_strided_slice %7 {offsets = [0, 0], sizes = [1, 1], strides = [1, 1]} : vector<8x1xf32> to vector<1x1xf32>
    %671 = vector.extract_strided_slice %46 {offsets = [7, 0], sizes = [1, 128], strides = [1, 1]} : vector<8x256xf32> to vector<1x128xf32>
    %cst_137 = arith.constant dense<0.000000e+00> : vector<1x128xf32>
    %672 = tpu.matmul %645, %47, %cst_137 {dimension_numbers = #tpu.dot_dimension_numbers<[1], [0], [0], [1], [0, 0, 1, 1], [], []>} : vector<1x32xf32>, vector<32x128xf32>, vector<1x128xf32> -> vector<1x128xf32>
    %673 = arith.addf %671, %672 : vector<1x128xf32>
    %674 = vector.extract_strided_slice %673 {offsets = [0, 0], sizes = [1, 32], strides = [1, 1]} : vector<1x128xf32> to vector<1x32xf32>
    %675 = arith.negf %674 : vector<1x32xf32>
    %676 = math.exp %675 : vector<1x32xf32>
    %cst_138 = arith.constant 1.000000e+00 : f32
    %677 = vector.broadcast %cst_138 : f32 to vector<1x32xf32>
    %678 = arith.addf %677, %676 : vector<1x32xf32>
    %679 = arith.divf %677, %678 : vector<1x32xf32>
    %680 = vector.extract_strided_slice %673 {offsets = [0, 32], sizes = [1, 32], strides = [1, 1]} : vector<1x128xf32> to vector<1x32xf32>
    %681 = arith.negf %680 : vector<1x32xf32>
    %682 = math.exp %681 : vector<1x32xf32>
    %cst_139 = arith.constant 1.000000e+00 : f32
    %683 = vector.broadcast %cst_139 : f32 to vector<1x32xf32>
    %684 = arith.addf %683, %682 : vector<1x32xf32>
    %685 = arith.divf %683, %684 : vector<1x32xf32>
    %686 = vector.extract_strided_slice %673 {offsets = [0, 64], sizes = [1, 32], strides = [1, 1]} : vector<1x128xf32> to vector<1x32xf32>
    %687 = math.tanh %686 : vector<1x32xf32>
    %688 = vector.extract_strided_slice %673 {offsets = [0, 96], sizes = [1, 32], strides = [1, 1]} : vector<1x128xf32> to vector<1x32xf32>
    %689 = arith.negf %688 : vector<1x32xf32>
    %690 = math.exp %689 : vector<1x32xf32>
    %cst_140 = arith.constant 1.000000e+00 : f32
    %691 = vector.broadcast %cst_140 : f32 to vector<1x32xf32>
    %692 = arith.addf %691, %690 : vector<1x32xf32>
    %693 = arith.divf %691, %692 : vector<1x32xf32>
    %694 = arith.mulf %685, %652 : vector<1x32xf32>
    %695 = arith.mulf %679, %687 : vector<1x32xf32>
    %696 = arith.addf %694, %695 : vector<1x32xf32>
    %697 = math.tanh %696 : vector<1x32xf32>
    %698 = arith.mulf %693, %697 : vector<1x32xf32>
    %699 = vector.extract_strided_slice %46 {offsets = [0, 128], sizes = [1, 128], strides = [1, 1]} : vector<8x256xf32> to vector<1x128xf32>
    %cst_141 = arith.constant dense<0.000000e+00> : vector<1x128xf32>
    %700 = tpu.matmul %659, %48, %cst_141 {dimension_numbers = #tpu.dot_dimension_numbers<[1], [0], [0], [1], [0, 0, 1, 1], [], []>} : vector<1x32xf32>, vector<32x128xf32>, vector<1x128xf32> -> vector<1x128xf32>
    %701 = arith.addf %699, %700 : vector<1x128xf32>
    %702 = vector.extract_strided_slice %701 {offsets = [0, 0], sizes = [1, 32], strides = [1, 1]} : vector<1x128xf32> to vector<1x32xf32>
    %703 = arith.negf %702 : vector<1x32xf32>
    %704 = math.exp %703 : vector<1x32xf32>
    %cst_142 = arith.constant 1.000000e+00 : f32
    %705 = vector.broadcast %cst_142 : f32 to vector<1x32xf32>
    %706 = arith.addf %705, %704 : vector<1x32xf32>
    %707 = arith.divf %705, %706 : vector<1x32xf32>
    %708 = vector.extract_strided_slice %701 {offsets = [0, 32], sizes = [1, 32], strides = [1, 1]} : vector<1x128xf32> to vector<1x32xf32>
    %709 = arith.negf %708 : vector<1x32xf32>
    %710 = math.exp %709 : vector<1x32xf32>
    %cst_143 = arith.constant 1.000000e+00 : f32
    %711 = vector.broadcast %cst_143 : f32 to vector<1x32xf32>
    %712 = arith.addf %711, %710 : vector<1x32xf32>
    %713 = arith.divf %711, %712 : vector<1x32xf32>
    %714 = vector.extract_strided_slice %701 {offsets = [0, 64], sizes = [1, 32], strides = [1, 1]} : vector<1x128xf32> to vector<1x32xf32>
    %715 = math.tanh %714 : vector<1x32xf32>
    %716 = vector.extract_strided_slice %701 {offsets = [0, 96], sizes = [1, 32], strides = [1, 1]} : vector<1x128xf32> to vector<1x32xf32>
    %717 = arith.negf %716 : vector<1x32xf32>
    %718 = math.exp %717 : vector<1x32xf32>
    %cst_144 = arith.constant 1.000000e+00 : f32
    %719 = vector.broadcast %cst_144 : f32 to vector<1x32xf32>
    %720 = arith.addf %719, %718 : vector<1x32xf32>
    %721 = arith.divf %719, %720 : vector<1x32xf32>
    %722 = arith.mulf %713, %666 : vector<1x32xf32>
    %723 = arith.mulf %707, %715 : vector<1x32xf32>
    %724 = arith.addf %722, %723 : vector<1x32xf32>
    %725 = math.tanh %724 : vector<1x32xf32>
    %726 = arith.mulf %721, %725 : vector<1x32xf32>
    %727 = vector.broadcast %669 : vector<1x1xf32> to vector<1x32xf32>
    %728 = arith.mulf %727, %698 : vector<1x32xf32>
    %cst_145 = arith.constant 1.000000e+00 : f32
    %729 = vector.broadcast %cst_145 : f32 to vector<1x1xf32>
    %730 = arith.subf %729, %669 : vector<1x1xf32>
    %731 = vector.broadcast %730 : vector<1x1xf32> to vector<1x32xf32>
    %732 = arith.mulf %731, %645 : vector<1x32xf32>
    %733 = arith.addf %728, %732 : vector<1x32xf32>
    %734 = vector.broadcast %670 : vector<1x1xf32> to vector<1x32xf32>
    %735 = arith.mulf %734, %726 : vector<1x32xf32>
    %cst_146 = arith.constant 1.000000e+00 : f32
    %736 = vector.broadcast %cst_146 : f32 to vector<1x1xf32>
    %737 = arith.subf %736, %670 : vector<1x1xf32>
    %738 = vector.broadcast %737 : vector<1x1xf32> to vector<1x32xf32>
    %739 = arith.mulf %738, %659 : vector<1x32xf32>
    %740 = arith.addf %735, %739 : vector<1x32xf32>
    %c7_147 = arith.constant 7 : index
    %c0_148 = arith.constant 0 : index
    %741 = vector.load %arg23[%c7_147, %c0_148] : memref<8x64xf32, #tpu.memory_space<vmem>>, vector<1x32xf32>
    tpu.vector_store %arg23[%c7_147, %c0_148], %733 {strides = array<i32>} : memref<8x64xf32, #tpu.memory_space<vmem>>, vector<1x32xf32>,
    %c0_149 = arith.constant 0 : index
    %c32_150 = arith.constant 32 : index
    %742 = vector.load %arg23[%c0_149, %c32_150] : memref<8x64xf32, #tpu.memory_space<vmem>>, vector<1x32xf32>
    tpu.vector_store %arg23[%c0_149, %c32_150], %740 {strides = array<i32>} : memref<8x64xf32, #tpu.memory_space<vmem>>, vector<1x32xf32>,
    %c0_151 = arith.constant 0 : index
    %c0_152 = arith.constant 0 : index
    %743 = vector.load %arg23[%c0_151, %c0_152] : memref<8x64xf32, #tpu.memory_space<vmem>>, vector<8x64xf32>
    %c0_153 = arith.constant 0 : index
    %c0_154 = arith.constant 0 : index
    %744 = vector.load %arg12[%c0_153, %c0_154] : memref<64x64xf32, #tpu.memory_space<vmem>>, vector<64x64xf32>
    %cst_155 = arith.constant dense<0.000000e+00> : vector<8x64xf32>
    %745 = tpu.matmul %743, %744, %cst_155 {dimension_numbers = #tpu.dot_dimension_numbers<[1], [0], [0], [1], [0, 0, 1, 1], [], []>} : vector<8x64xf32>, vector<64x64xf32>, vector<8x64xf32> -> vector<8x64xf32>
    %c0_156 = arith.constant 0 : index
    %c0_157 = arith.constant 0 : index
    %746 = vector.load %arg13[%c0_156, %c0_157] : memref<1x64xf32, #tpu.memory_space<vmem>>, vector<1x64xf32>
    %747 = vector.broadcast %746 : vector<1x64xf32> to vector<8x64xf32>
    %748 = arith.addf %745, %747 : vector<8x64xf32>
    %cst_158 = arith.constant 0.000000e+00 : f32
    %749 = vector.broadcast %cst_158 : f32 to vector<8x64xf32>
    %750 = arith.cmpf ogt, %748, %749 : vector<8x64xf32>
    %751 = math.exp %748 : vector<8x64xf32>
    %cst_159 = arith.constant 1.000000e+00 : f32
    %752 = vector.broadcast %cst_159 : f32 to vector<8x64xf32>
    %753 = arith.subf %751, %752 : vector<8x64xf32>
    %754 = arith.select %750, %748, %753 : vector<8x64xi1>, vector<8x64xf32>
    %755 = vector.extract_strided_slice %754 {offsets = [0, 0], sizes = [8, 16], strides = [1, 1]} : vector<8x64xf32> to vector<8x16xf32>
    %756 = vector.extract_strided_slice %754 {offsets = [0, 16], sizes = [8, 16], strides = [1, 1]} : vector<8x64xf32> to vector<8x16xf32>
    %757 = vector.extract_strided_slice %754 {offsets = [0, 32], sizes = [8, 16], strides = [1, 1]} : vector<8x64xf32> to vector<8x16xf32>
    %758 = vector.extract_strided_slice %754 {offsets = [0, 48], sizes = [8, 16], strides = [1, 1]} : vector<8x64xf32> to vector<8x16xf32>
    %759 = tpu.transpose %756, [1, 0] : vector<8x16xf32> -> vector<16x8xf32>
    %c0_160 = arith.constant 0 : index
    %c0_161 = arith.constant 0 : index
    %760 = vector.load %arg14[%c0_160, %c0_161] : memref<16x16xf32, #tpu.memory_space<vmem>>, vector<16x16xf32>
    %cst_162 = arith.constant dense<0.000000e+00> : vector<8x16xf32>
    %761 = tpu.matmul %755, %760, %cst_162 {dimension_numbers = #tpu.dot_dimension_numbers<[1], [0], [0], [1], [0, 0, 1, 1], [], []>} : vector<8x16xf32>, vector<16x16xf32>, vector<8x16xf32> -> vector<8x16xf32>
    %cst_163 = arith.constant dense<0.000000e+00> : vector<8x8xf32>
    %762 = tpu.matmul %761, %759, %cst_163 {dimension_numbers = #tpu.dot_dimension_numbers<[1], [0], [0], [1], [0, 0, 1, 1], [], []>} : vector<8x16xf32>, vector<16x8xf32>, vector<8x8xf32> -> vector<8x8xf32>
    %c0_164 = arith.constant 0 : index
    %c0_165 = arith.constant 0 : index
    %763 = vector.load %arg15[%c0_164, %c0_165] : memref<16x1xf32, #tpu.memory_space<vmem>>, vector<16x1xf32>
    %cst_166 = arith.constant dense<0.000000e+00> : vector<8x1xf32>
    %764 = tpu.matmul %755, %763, %cst_166 {dimension_numbers = #tpu.dot_dimension_numbers<[1], [0], [0], [1], [0, 0, 1, 1], [], []>} : vector<8x16xf32>, vector<16x1xf32>, vector<8x1xf32> -> vector<8x1xf32>
    %765 = vector.broadcast %764 : vector<8x1xf32> to vector<8x8xf32>
    %766 = arith.addf %762, %765 : vector<8x8xf32>
    %c0_167 = arith.constant 0 : index
    %c0_168 = arith.constant 0 : index
    %767 = vector.load %arg16[%c0_167, %c0_168] : memref<1x16xf32, #tpu.memory_space<vmem>>, vector<1x16xf32>
    %cst_169 = arith.constant dense<0.000000e+00> : vector<1x8xf32>
    %768 = tpu.matmul %767, %759, %cst_169 {dimension_numbers = #tpu.dot_dimension_numbers<[1], [0], [0], [1], [0, 0, 1, 1], [], []>} : vector<1x16xf32>, vector<16x8xf32>, vector<1x8xf32> -> vector<1x8xf32>
    %769 = vector.broadcast %768 : vector<1x8xf32> to vector<8x8xf32>
    %770 = arith.addf %766, %769 : vector<8x8xf32>
    %c0_170 = arith.constant 0 : index
    %c0_171 = arith.constant 0 : index
    %771 = vector.load %arg17[%c0_170, %c0_171] : memref<1x1xf32, #tpu.memory_space<vmem>>, vector<1x1xf32>
    %772 = vector.broadcast %771 : vector<1x1xf32> to vector<8x8xf32>
    %773 = arith.addf %770, %772 : vector<8x8xf32>
    %774 = vector.broadcast %7 : vector<8x1xf32> to vector<8x8xf32>
    %775 = arith.mulf %773, %774 : vector<8x8xf32>
    %776 = vector.broadcast %9 : vector<1x8xf32> to vector<8x8xf32>
    %777 = arith.mulf %775, %776 : vector<8x8xf32>
    %cst_172 = arith.constant 1.000000e+00 : f32
    %778 = vector.broadcast %cst_172 : f32 to vector<8x1xf32>
    %779 = arith.subf %778, %7 : vector<8x1xf32>
    %cst_173 = arith.constant -1.000000e+08 : f32
    %780 = vector.broadcast %cst_173 : f32 to vector<8x1xf32>
    %781 = arith.mulf %779, %780 : vector<8x1xf32>
    %782 = vector.broadcast %781 : vector<8x1xf32> to vector<8x8xf32>
    %783 = arith.addf %777, %782 : vector<8x8xf32>
    %cst_174 = arith.constant 1.000000e+00 : f32
    %784 = vector.broadcast %cst_174 : f32 to vector<1x8xf32>
    %785 = arith.subf %784, %9 : vector<1x8xf32>
    %cst_175 = arith.constant -1.000000e+08 : f32
    %786 = vector.broadcast %cst_175 : f32 to vector<1x8xf32>
    %787 = arith.mulf %785, %786 : vector<1x8xf32>
    %788 = vector.broadcast %787 : vector<1x8xf32> to vector<8x8xf32>
    %789 = arith.addf %783, %788 : vector<8x8xf32>
    %cst_176 = arith.constant dense<0xFF800000> : vector<8xf32>
    %790 = vector.multi_reduction <maximumf>, %789, %cst_176 [1] : vector<8x8xf32> to vector<8xf32>
    %791 = vector.shape_cast %790 : vector<8xf32> to vector<8x1xf32>
    %792 = vector.broadcast %791 : vector<8x1xf32> to vector<8x8xf32>
    %793 = arith.subf %789, %792 : vector<8x8xf32>
    %794 = math.exp %793 : vector<8x8xf32>
    %cst_177 = arith.constant dense<0.000000e+00> : vector<8xf32>
    %795 = vector.multi_reduction <add>, %794, %cst_177 [1] : vector<8x8xf32> to vector<8xf32>
    %796 = vector.shape_cast %795 : vector<8xf32> to vector<8x1xf32>
    %797 = tpu.reciprocal %796 {approx = true} : vector<8x1xf32> -> vector<8x1xf32>
    %798 = vector.broadcast %797 : vector<8x1xf32> to vector<8x8xf32>
    %799 = arith.mulf %794, %798 : vector<8x8xf32>
    %cst_178 = arith.constant dense<0.000000e+00> : vector<8x16xf32>
    %800 = tpu.matmul %799, %757, %cst_178 {dimension_numbers = #tpu.dot_dimension_numbers<[1], [0], [0], [1], [0, 0, 1, 1], [], []>} : vector<8x8xf32>, vector<8x16xf32>, vector<8x16xf32> -> vector<8x16xf32>
    %c0_179 = arith.constant 0 : index
    %c0_180 = arith.constant 0 : index
    %801 = vector.load %arg19[%c0_179, %c0_180] : memref<16x128xf32, #tpu.memory_space<vmem>>, vector<16x128xf32>
    %cst_181 = arith.constant dense<0.000000e+00> : vector<8x128xf32>
    %802 = tpu.matmul %800, %801, %cst_181 {dimension_numbers = #tpu.dot_dimension_numbers<[1], [0], [0], [1], [0, 0, 1, 1], [], []>} : vector<8x16xf32>, vector<16x128xf32>, vector<8x128xf32> -> vector<8x128xf32>
    %c0_182 = arith.constant 0 : index
    %c0_183 = arith.constant 0 : index
    %803 = vector.load %arg20[%c0_182, %c0_183] : memref<16x128xf32, #tpu.memory_space<vmem>>, vector<16x128xf32>
    %cst_184 = arith.constant dense<0.000000e+00> : vector<8x128xf32>
    %804 = tpu.matmul %758, %803, %cst_184 {dimension_numbers = #tpu.dot_dimension_numbers<[1], [0], [0], [1], [0, 0, 1, 1], [], []>} : vector<8x16xf32>, vector<16x128xf32>, vector<8x128xf32> -> vector<8x128xf32>
    %805 = arith.addf %802, %804 : vector<8x128xf32>
    %c0_185 = arith.constant 0 : index
    %c0_186 = arith.constant 0 : index
    %806 = vector.load %arg21[%c0_185, %c0_186] : memref<1x128xf32, #tpu.memory_space<vmem>>, vector<1x128xf32>
    %807 = vector.broadcast %806 : vector<1x128xf32> to vector<8x128xf32>
    %808 = arith.addf %805, %807 : vector<8x128xf32>
    %c0_187 = arith.constant 0 : index
    %c0_188 = arith.constant 0 : index
    %809 = vector.load %arg18[%c0_187, %c0_188] : memref<16x2048xf32, #tpu.memory_space<vmem>>, vector<16x2048xf32>
    %cst_189 = arith.constant dense<0.000000e+00> : vector<8x2048xf32>
    %810 = tpu.matmul %800, %809, %cst_189 {dimension_numbers = #tpu.dot_dimension_numbers<[1], [0], [0], [1], [0, 0, 1, 1], [], []>} : vector<8x16xf32>, vector<16x2048xf32>, vector<8x2048xf32> -> vector<8x2048xf32>
    %811 = vector.extract_strided_slice %758 {offsets = [0, 0], sizes = [8, 1], strides = [1, 1]} : vector<8x16xf32> to vector<8x1xf32>
    %812 = vector.extract_strided_slice %810 {offsets = [0, 0], sizes = [8, 128], strides = [1, 1]} : vector<8x2048xf32> to vector<8x128xf32>
    %813 = vector.broadcast %811 : vector<8x1xf32> to vector<8x128xf32>
    %814 = arith.mulf %813, %812 : vector<8x128xf32>
    %815 = arith.addf %808, %814 : vector<8x128xf32>
    %816 = vector.extract_strided_slice %758 {offsets = [0, 1], sizes = [8, 1], strides = [1, 1]} : vector<8x16xf32> to vector<8x1xf32>
    %817 = vector.extract_strided_slice %810 {offsets = [0, 128], sizes = [8, 128], strides = [1, 1]} : vector<8x2048xf32> to vector<8x128xf32>
    %818 = vector.broadcast %816 : vector<8x1xf32> to vector<8x128xf32>
    %819 = arith.mulf %818, %817 : vector<8x128xf32>
    %820 = arith.addf %815, %819 : vector<8x128xf32>
    %821 = vector.extract_strided_slice %758 {offsets = [0, 2], sizes = [8, 1], strides = [1, 1]} : vector<8x16xf32> to vector<8x1xf32>
    %822 = vector.extract_strided_slice %810 {offsets = [0, 256], sizes = [8, 128], strides = [1, 1]} : vector<8x2048xf32> to vector<8x128xf32>
    %823 = vector.broadcast %821 : vector<8x1xf32> to vector<8x128xf32>
    %824 = arith.mulf %823, %822 : vector<8x128xf32>
    %825 = arith.addf %820, %824 : vector<8x128xf32>
    %826 = vector.extract_strided_slice %758 {offsets = [0, 3], sizes = [8, 1], strides = [1, 1]} : vector<8x16xf32> to vector<8x1xf32>
    %827 = vector.extract_strided_slice %810 {offsets = [0, 384], sizes = [8, 128], strides = [1, 1]} : vector<8x2048xf32> to vector<8x128xf32>
    %828 = vector.broadcast %826 : vector<8x1xf32> to vector<8x128xf32>
    %829 = arith.mulf %828, %827 : vector<8x128xf32>
    %830 = arith.addf %825, %829 : vector<8x128xf32>
    %831 = vector.extract_strided_slice %758 {offsets = [0, 4], sizes = [8, 1], strides = [1, 1]} : vector<8x16xf32> to vector<8x1xf32>
    %832 = vector.extract_strided_slice %810 {offsets = [0, 512], sizes = [8, 128], strides = [1, 1]} : vector<8x2048xf32> to vector<8x128xf32>
    %833 = vector.broadcast %831 : vector<8x1xf32> to vector<8x128xf32>
    %834 = arith.mulf %833, %832 : vector<8x128xf32>
    %835 = arith.addf %830, %834 : vector<8x128xf32>
    %836 = vector.extract_strided_slice %758 {offsets = [0, 5], sizes = [8, 1], strides = [1, 1]} : vector<8x16xf32> to vector<8x1xf32>
    %837 = vector.extract_strided_slice %810 {offsets = [0, 640], sizes = [8, 128], strides = [1, 1]} : vector<8x2048xf32> to vector<8x128xf32>
    %838 = vector.broadcast %836 : vector<8x1xf32> to vector<8x128xf32>
    %839 = arith.mulf %838, %837 : vector<8x128xf32>
    %840 = arith.addf %835, %839 : vector<8x128xf32>
    %841 = vector.extract_strided_slice %758 {offsets = [0, 6], sizes = [8, 1], strides = [1, 1]} : vector<8x16xf32> to vector<8x1xf32>
    %842 = vector.extract_strided_slice %810 {offsets = [0, 768], sizes = [8, 128], strides = [1, 1]} : vector<8x2048xf32> to vector<8x128xf32>
    %843 = vector.broadcast %841 : vector<8x1xf32> to vector<8x128xf32>
    %844 = arith.mulf %843, %842 : vector<8x128xf32>
    %845 = arith.addf %840, %844 : vector<8x128xf32>
    %846 = vector.extract_strided_slice %758 {offsets = [0, 7], sizes = [8, 1], strides = [1, 1]} : vector<8x16xf32> to vector<8x1xf32>
    %847 = vector.extract_strided_slice %810 {offsets = [0, 896], sizes = [8, 128], strides = [1, 1]} : vector<8x2048xf32> to vector<8x128xf32>
    %848 = vector.broadcast %846 : vector<8x1xf32> to vector<8x128xf32>
    %849 = arith.mulf %848, %847 : vector<8x128xf32>
    %850 = arith.addf %845, %849 : vector<8x128xf32>
    %851 = vector.extract_strided_slice %758 {offsets = [0, 8], sizes = [8, 1], strides = [1, 1]} : vector<8x16xf32> to vector<8x1xf32>
    %852 = vector.extract_strided_slice %810 {offsets = [0, 1024], sizes = [8, 128], strides = [1, 1]} : vector<8x2048xf32> to vector<8x128xf32>
    %853 = vector.broadcast %851 : vector<8x1xf32> to vector<8x128xf32>
    %854 = arith.mulf %853, %852 : vector<8x128xf32>
    %855 = arith.addf %850, %854 : vector<8x128xf32>
    %856 = vector.extract_strided_slice %758 {offsets = [0, 9], sizes = [8, 1], strides = [1, 1]} : vector<8x16xf32> to vector<8x1xf32>
    %857 = vector.extract_strided_slice %810 {offsets = [0, 1152], sizes = [8, 128], strides = [1, 1]} : vector<8x2048xf32> to vector<8x128xf32>
    %858 = vector.broadcast %856 : vector<8x1xf32> to vector<8x128xf32>
    %859 = arith.mulf %858, %857 : vector<8x128xf32>
    %860 = arith.addf %855, %859 : vector<8x128xf32>
    %861 = vector.extract_strided_slice %758 {offsets = [0, 10], sizes = [8, 1], strides = [1, 1]} : vector<8x16xf32> to vector<8x1xf32>
    %862 = vector.extract_strided_slice %810 {offsets = [0, 1280], sizes = [8, 128], strides = [1, 1]} : vector<8x2048xf32> to vector<8x128xf32>
    %863 = vector.broadcast %861 : vector<8x1xf32> to vector<8x128xf32>
    %864 = arith.mulf %863, %862 : vector<8x128xf32>
    %865 = arith.addf %860, %864 : vector<8x128xf32>
    %866 = vector.extract_strided_slice %758 {offsets = [0, 11], sizes = [8, 1], strides = [1, 1]} : vector<8x16xf32> to vector<8x1xf32>
    %867 = vector.extract_strided_slice %810 {offsets = [0, 1408], sizes = [8, 128], strides = [1, 1]} : vector<8x2048xf32> to vector<8x128xf32>
    %868 = vector.broadcast %866 : vector<8x1xf32> to vector<8x128xf32>
    %869 = arith.mulf %868, %867 : vector<8x128xf32>
    %870 = arith.addf %865, %869 : vector<8x128xf32>
    %871 = vector.extract_strided_slice %758 {offsets = [0, 12], sizes = [8, 1], strides = [1, 1]} : vector<8x16xf32> to vector<8x1xf32>
    %872 = vector.extract_strided_slice %810 {offsets = [0, 1536], sizes = [8, 128], strides = [1, 1]} : vector<8x2048xf32> to vector<8x128xf32>
    %873 = vector.broadcast %871 : vector<8x1xf32> to vector<8x128xf32>
    %874 = arith.mulf %873, %872 : vector<8x128xf32>
    %875 = arith.addf %870, %874 : vector<8x128xf32>
    %876 = vector.extract_strided_slice %758 {offsets = [0, 13], sizes = [8, 1], strides = [1, 1]} : vector<8x16xf32> to vector<8x1xf32>
    %877 = vector.extract_strided_slice %810 {offsets = [0, 1664], sizes = [8, 128], strides = [1, 1]} : vector<8x2048xf32> to vector<8x128xf32>
    %878 = vector.broadcast %876 : vector<8x1xf32> to vector<8x128xf32>
    %879 = arith.mulf %878, %877 : vector<8x128xf32>
    %880 = arith.addf %875, %879 : vector<8x128xf32>
    %881 = vector.extract_strided_slice %758 {offsets = [0, 14], sizes = [8, 1], strides = [1, 1]} : vector<8x16xf32> to vector<8x1xf32>
    %882 = vector.extract_strided_slice %810 {offsets = [0, 1792], sizes = [8, 128], strides = [1, 1]} : vector<8x2048xf32> to vector<8x128xf32>
    %883 = vector.broadcast %881 : vector<8x1xf32> to vector<8x128xf32>
    %884 = arith.mulf %883, %882 : vector<8x128xf32>
    %885 = arith.addf %880, %884 : vector<8x128xf32>
    %886 = vector.extract_strided_slice %758 {offsets = [0, 15], sizes = [8, 1], strides = [1, 1]} : vector<8x16xf32> to vector<8x1xf32>
    %887 = vector.extract_strided_slice %810 {offsets = [0, 1920], sizes = [8, 128], strides = [1, 1]} : vector<8x2048xf32> to vector<8x128xf32>
    %888 = vector.broadcast %886 : vector<8x1xf32> to vector<8x128xf32>
    %889 = arith.mulf %888, %887 : vector<8x128xf32>
    %890 = arith.addf %885, %889 : vector<8x128xf32>
    %cst_190 = arith.constant dense<0xFF800000> : vector<8xf32>
    %891 = vector.multi_reduction <maximumf>, %890, %cst_190 [1] : vector<8x128xf32> to vector<8xf32>
    %892 = vector.shape_cast %891 : vector<8xf32> to vector<8x1xf32>
    %893 = vector.broadcast %892 : vector<8x1xf32> to vector<8x128xf32>
    %894 = arith.subf %890, %893 : vector<8x128xf32>
    %895 = math.exp %894 : vector<8x128xf32>
    %cst_191 = arith.constant dense<0.000000e+00> : vector<8xf32>
    %896 = vector.multi_reduction <add>, %895, %cst_191 [1] : vector<8x128xf32> to vector<8xf32>
    %897 = vector.shape_cast %896 : vector<8xf32> to vector<8x1xf32>
    %898 = math.log %897 : vector<8x1xf32>
    %899 = vector.broadcast %898 : vector<8x1xf32> to vector<8x128xf32>
    %900 = arith.subf %894, %899 : vector<8x128xf32>
    %c0_192 = arith.constant 0 : index
    %c0_193 = arith.constant 0 : index
    %c0_194 = arith.constant 0 : index
    %901 = vector.load %arg22[%c0_192, %c0_193, %c0_194] : memref<1x8x128xf32, #tpu.memory_space<vmem>>, vector<1x8x128xf32>
    %902 = vector.shape_cast %901 : vector<1x8x128xf32> to vector<8x128xf32>
    %903 = vector.shape_cast %900 : vector<8x128xf32> to vector<1x8x128xf32>
    tpu.vector_store %arg22[%c0_192, %c0_193, %c0_194], %903 {strides = array<i32>} : memref<1x8x128xf32, #tpu.memory_space<vmem>>, vector<1x8x128xf32>,
    return
  }
  func.func @transform_0(%arg0: i32) -> (i32, i32, i32) {
    %c0_i32 = arith.constant 0 : i32
    %c0_i32_0 = arith.constant 0 : i32
    %c0_i32_1 = arith.constant 0 : i32
    return %arg0, %c0_i32, %c0_i32_0 : i32, i32, i32
  }
  func.func @transform_1(%arg0: i32) -> (i32, i32, i32) {
    %c0_i32 = arith.constant 0 : i32
    %c0_i32_0 = arith.constant 0 : i32
    %c0_i32_1 = arith.constant 0 : i32
    return %arg0, %c0_i32, %c0_i32_0 : i32, i32, i32
  }
  func.func @transform_2(%arg0: i32) -> (i32, i32, i32) {
    %c0_i32 = arith.constant 0 : i32
    %c0_i32_0 = arith.constant 0 : i32
    %c0_i32_1 = arith.constant 0 : i32
    return %arg0, %c0_i32, %c0_i32_0 : i32, i32, i32
  }
  func.func @transform_3(%arg0: i32) -> (i32, i32, i32) {
    %c0_i32 = arith.constant 0 : i32
    %c0_i32_0 = arith.constant 0 : i32
    %c0_i32_1 = arith.constant 0 : i32
    return %arg0, %c0_i32, %c0_i32_0 : i32, i32, i32
  }
  func.func @transform_4(%arg0: i32) -> (i32, i32, i32) {
    %c0_i32 = arith.constant 0 : i32
    %c0_i32_0 = arith.constant 0 : i32
    %c0_i32_1 = arith.constant 0 : i32
    return %arg0, %c0_i32, %c0_i32_0 : i32, i32, i32
  }
  func.func @transform_5(%arg0: i32) -> (i32, i32) {
    %c0_i32 = arith.constant 0 : i32
    %c0_i32_0 = arith.constant 0 : i32
    %c0_i32_1 = arith.constant 0 : i32
    return %c0_i32, %c0_i32_0 : i32, i32
  }
  func.func @transform_6(%arg0: i32) -> (i32, i32) {
    %c0_i32 = arith.constant 0 : i32
    %c0_i32_0 = arith.constant 0 : i32
    %c0_i32_1 = arith.constant 0 : i32
    return %c0_i32, %c0_i32_0 : i32, i32
  }
  func.func @transform_7(%arg0: i32) -> (i32, i32) {
    %c0_i32 = arith.constant 0 : i32
    %c0_i32_0 = arith.constant 0 : i32
    %c0_i32_1 = arith.constant 0 : i32
    return %c0_i32, %c0_i32_0 : i32, i32
  }
  func.func @transform_8(%arg0: i32) -> (i32, i32) {
    %c0_i32 = arith.constant 0 : i32
    %c0_i32_0 = arith.constant 0 : i32
    %c0_i32_1 = arith.constant 0 : i32
    return %c0_i32, %c0_i32_0 : i32, i32
  }
  func.func @transform_9(%arg0: i32) -> (i32, i32) {
    %c0_i32 = arith.constant 0 : i32
    %c0_i32_0 = arith.constant 0 : i32
    %c0_i32_1 = arith.constant 0 : i32
    return %c0_i32, %c0_i32_0 : i32, i32
  }
  func.func @transform_10(%arg0: i32) -> (i32, i32) {
    %c0_i32 = arith.constant 0 : i32
    %c0_i32_0 = arith.constant 0 : i32
    %c0_i32_1 = arith.constant 0 : i32
    return %c0_i32, %c0_i32_0 : i32, i32
  }
  func.func @transform_11(%arg0: i32) -> (i32, i32) {
    %c0_i32 = arith.constant 0 : i32
    %c0_i32_0 = arith.constant 0 : i32
    %c0_i32_1 = arith.constant 0 : i32
    return %c0_i32, %c0_i32_0 : i32, i32
  }
  func.func @transform_12(%arg0: i32) -> (i32, i32) {
    %c0_i32 = arith.constant 0 : i32
    %c0_i32_0 = arith.constant 0 : i32
    %c0_i32_1 = arith.constant 0 : i32
    return %c0_i32, %c0_i32_0 : i32, i32
  }
  func.func @transform_13(%arg0: i32) -> (i32, i32) {
    %c0_i32 = arith.constant 0 : i32
    %c0_i32_0 = arith.constant 0 : i32
    %c0_i32_1 = arith.constant 0 : i32
    return %c0_i32, %c0_i32_0 : i32, i32
  }
  func.func @transform_14(%arg0: i32) -> (i32, i32) {
    %c0_i32 = arith.constant 0 : i32
    %c0_i32_0 = arith.constant 0 : i32
    %c0_i32_1 = arith.constant 0 : i32
    return %c0_i32, %c0_i32_0 : i32, i32
  }
  func.func @transform_15(%arg0: i32) -> (i32, i32) {
    %c0_i32 = arith.constant 0 : i32
    %c0_i32_0 = arith.constant 0 : i32
    %c0_i32_1 = arith.constant 0 : i32
    return %c0_i32, %c0_i32_0 : i32, i32
  }
  func.func @transform_16(%arg0: i32) -> (i32, i32) {
    %c0_i32 = arith.constant 0 : i32
    %c0_i32_0 = arith.constant 0 : i32
    %c0_i32_1 = arith.constant 0 : i32
    return %c0_i32, %c0_i32_0 : i32, i32
  }
  func.func @transform_17(%arg0: i32) -> (i32, i32) {
    %c0_i32 = arith.constant 0 : i32
    %c0_i32_0 = arith.constant 0 : i32
    %c0_i32_1 = arith.constant 0 : i32
    return %c0_i32, %c0_i32_0 : i32, i32
  }
  func.func @transform_18(%arg0: i32) -> (i32, i32) {
    %c0_i32 = arith.constant 0 : i32
    %c0_i32_0 = arith.constant 0 : i32
    %c0_i32_1 = arith.constant 0 : i32
    return %c0_i32, %c0_i32_0 : i32, i32
  }
  func.func @transform_19(%arg0: i32) -> (i32, i32) {
    %c0_i32 = arith.constant 0 : i32
    %c0_i32_0 = arith.constant 0 : i32
    %c0_i32_1 = arith.constant 0 : i32
    return %c0_i32, %c0_i32_0 : i32, i32
  }
  func.func @transform_20(%arg0: i32) -> (i32, i32) {
    %c0_i32 = arith.constant 0 : i32
    %c0_i32_0 = arith.constant 0 : i32
    %c0_i32_1 = arith.constant 0 : i32
    return %c0_i32, %c0_i32_0 : i32, i32
  }
  func.func @transform_21(%arg0: i32) -> (i32, i32, i32) {
    %c0_i32 = arith.constant 0 : i32
    %c0_i32_0 = arith.constant 0 : i32
    %c0_i32_1 = arith.constant 0 : i32
    return %arg0, %c0_i32, %c0_i32_0 : i32, i32, i32
  }
}

</mosaic_0001>

<bundles_post_ra>
// kernel: div.11
= control target key start
LH: loop header
LB: loop body
LE: loop exit
PB: predicated region body
PF: predicated region fallthrough
CT: control target
= control target key end

     0   :  { %vm8_vm0 = vcmask 64512   ;;  %vm14_vm1 = vcmask 130112   ;;  %s42_s0 = inlined_call_operand.vmem [shape: f32[2,8], index: 0, kind: input, shape index: {}]   ;;  %s43_s1 = inlined_call_operand.vmem [shape: f32[16], index: 1, kind: output, shape index: {}]  }
   0x1   :  { %v5_v0 = vld [vmem:[%s42_s0] sm:$0x3]  ;;  %s25_s0 = smov 8  }
   0x2   :  { %6 = vst [vmem:[#allocation1] sm:$0x3] %v5_v0 }
   0x9   :  { %v11_v1 = vld [vmem:[#allocation1 + $0x1] sm:$0x1]   ;;  %v7_v2 = vld [vmem:[#allocation1] sm:$0x1]  }
   0xa   :  { %12 = vrot.lane.b32.xlu0 %v11_v1, %s25_s0  ;;  %9 = vst.msk [vmem:[#allocation0] sm:$0x1] %vm8_vm0, %v7_v2  }
  0x7c   :  { %v13_v3 = vpop.permute.xlu0 %12  }
  0x7d   :  { %15 = vst.msk [vmem:[#allocation0] sm:$0x1] %vm14_vm1, %v13_v3  }
  0x84   :  { %v20_v4 = vld [vmem:[#allocation0] sm:$0x1] }
  0x85   :  { %23 = vst [vmem:[%s43_s1] sm:$0x1] %v20_v4 }

// kernel: forward.1
= control target key start
LH: loop header
LB: loop body
LE: loop exit
PB: predicated region body
PF: predicated region fallthrough
CT: control target
= control target key end

     0   :  { %s5429_s26 = smov 0   ;;  %s6447_s0 = inlined_call_operand.vmem [shape: f32[2,8,16], index: 0, kind: input, shape index: {}]   ;;  %s6448_s1 = inlined_call_operand.vmem [shape: f32[2,8,64], index: 1, kind: input, shape index: {}]   ;;  %s6449_s2 = inlined_call_operand.vmem [shape: f32[2,8,8], index: 2, kind: input, shape index: {}]   ;;  %s6450_s3 = inlined_call_operand.vmem [shape: f32[2,8,1], index: 3, kind: input, shape index: {}]   ;;  %s6451_s4 = inlined_call_operand.vmem [shape: f32[2,1,8], index: 4, kind: input, shape index: {}]   ;;  %s6452_s5 = inlined_call_operand.vmem [shape: f32[64,160], index: 5, kind: input, shape index: {}]   ;;  %s6453_s6 = inlined_call_operand.vmem [shape: f32[1,16], index: 6, kind: input, shape index: {}]   ;;  %s6454_s7 = inlined_call_operand.vmem [shape: f32[40,256], index: 7, kind: input, shape index: {}]   ;;  %s6455_s8 = inlined_call_operand.vmem [shape: f32[1,256], index: 8, kind: input, shape index: {}]   ;;  %s6456_s9 = inlined_call_operand.vmem [shape: f32[32,128], index: 9, kind: input, shape index: {}]   ;;  %s6457_s10 = inlined_call_operand.vmem [shape: f32[32,128], index: 10, kind: input, shape index: {}]   ;;  %s6458_s11 = inlined_call_operand.vmem [shape: f32[64,64], index: 11, kind: input, shape index: {}]   ;;  %s6459_s12 = inlined_call_operand.vmem [shape: f32[1,64], index: 12, kind: input, shape index: {}]   ;;  %s6460_s13 = inlined_call_operand.vmem [shape: f32[16,16], index: 13, kind: input, shape index: {}]   ;;  %s6461_s14 = inlined_call_operand.vmem [shape: f32[16,1], index: 14, kind: input, shape index: {}]   ;;  %s6462_s15 = inlined_call_operand.vmem [shape: f32[1,16], index: 15, kind: input, shape index: {}]   ;;  %s6463_s16 = inlined_call_operand.<no memory space> [shape: f32[1,1], index: 16, kind: input, shape index: {}]   ;;  %s6464_s17 = inlined_call_operand.vmem [shape: f32[16,2048], index: 17, kind: input, shape index: {}]   ;;  %s6465_s18 = inlined_call_operand.vmem [shape: f32[16,128], index: 18, kind: input, shape index: {}]   ;;  %s6466_s19 = inlined_call_operand.vmem [shape: f32[16,128], index: 19, kind: input, shape index: {}]   ;;  %s6467_s20 = inlined_call_operand.vmem [shape: f32[1,128], index: 20, kind: input, shape index: {}]   ;;  %s6468_s21 = inlined_call_operand.vmem [shape: f32[2,8,128], index: 21, kind: output, shape index: {}]  }
   0x1   :  { %6476 = sst [smem:[#allocation4_spill]] %s6447_s0  ;;  %v26_v0 = vstv %s6463_s16 }
   0x2   :  { %6477 = sst [smem:[#allocation5_spill]] %s6448_s1  ;;  %27 = vst [vmem:[#allocation3] sm:$0x1] %v26_v0 }
   0x3   :  { %6478 = sst [smem:[#allocation6_spill]] %s6449_s2 }
   0x4   :  { %6479 = sst [smem:[#allocation7_spill]] %s6450_s3 }
   0x5   :  { %6480 = sst [smem:[#allocation8_spill]] %s6451_s4 }
   0x6   :  { %6481 = sst [smem:[#allocation9_spill]] %s6452_s5 }
   0x7 LB: > { %s4667_s27 = sadd.s32 4294967295, %s5288_s26   ;;  %p4671_p0 = scmp.ge.s32.totalorder %s5288_s26, 1  ;;  %s5288_s26 = sphi %s5429_s26, %s33_s26  }
   0x8   : > { %p623_p1 = scmp.lt.s32.totalorder %s5288_s26, 3 }
   0xa   : > { %p624_p2 = pnand %p4671_p0, %p623_p1 }
   0xb   : > { %s6482_s29 = sld [smem:[#allocation9_spill]] (!%p624_p2)  ;;  %p696_p3 = scmp.lt.s32.totalorder (!%p624_p2), %s4667_s27, 1 }
   0xc   : > { %627 = sbr.rel (%p624_p2) target bundleno = 7638 (0x1dd6), region = 104  ;;  %s6483_s30 = sld [smem:[#allocation5_spill]] (!%p624_p2) }
   0xd   : > { %s6470_s25 = smov (!%p624_p2), 80   ;;  %s6473_s3 = smov (!%p624_p2), 112  }
   0xe   : > { %s5293_s28 = smov (!%p624_p2), 64   ;;  %s6471_s16 = smov (!%p624_p2), 96  }
   0xf   : > { %s6474_s0 = smov (!%p624_p2), 32   ;;  %s5296_s4 = smov (!%p624_p2), 48  }
  0x10   : > { %s6484_s2 = sld [smem:[#allocation4_spill]] (!%p624_p2)  ;;  %s6487_s23 = smov (!%p624_p2), 32  }
  0x11   : > { %v739_v1 = vld [vmem:[%s6482_s29 + $0x78] sm:$0xff]  ;;  %v738_v2 = vld [vmem:[%s6482_s29 + $0x70] sm:$0xff]  ;;  %v737_v3 = vld [vmem:[%s6482_s29 + $0x68] sm:$0xff]  ;;  %v5290_v5 = vmov 0.0   ;;  %s6493_s27 = smov (!%p696_p3, %s4667_s27), 1  ;;  %vm740_vm0 = vcmask 523264   ;;  %v1097_v63 = vlaneseq }
  0x12   : > { %760 = vmatprep.subr.mxu0 %v739_v1  ;;  %v736_v4 = vld [vmem:[%s6482_s29 + $0x60] sm:$0xff]  ;;  %808 = vmatprep.mubr.f32.mxu0 %v5290_v5  ;;  %v735_v6 = vld [vmem:[%s6482_s29 + $0x58] sm:$0xff]  ;;  %v734_v7 = vld [vmem:[%s6482_s29 + $0x50] sm:$0xff]  ;;  %s5475_s1 = sshll.u32 %s6493_s27, 3  ;;  %vm5298_vm1 = vmmov 0   ;;  %vm869_vm2 = vcmask 130048  }
  0x13   : > { %761 = vmatpush1.msra.mxu0 %v738_v2  ;;  %937 = vmatprep.mubr.f32.mxu1 %v5290_v5  ;;  %v733_v8 = vld [vmem:[%s6482_s29 + $0x48] sm:$0xff]  ;;  %v732_v9 = vld [vmem:[%s6482_s29 + $0x40] sm:$0xff]  ;;  %v731_v10 = vld [vmem:[%s6482_s29 + $0x38] sm:$0xff]  ;;  %s703_s5 = scalar_lea.vmem %s6483_s30, %s5475_s1  ;;  %s6485_s30 = sld [smem:[#allocation6_spill]]  ;;  %vm1018_vm3 = vcmask 64512   ;;  %v1098_v2 = vshrl.u32 %v1097_v63, 7 }
  0x14   : > { %762 = vmatprep.subr.mxu0 %v737_v3  ;;  %v730_v11 = vld [vmem:[%s6482_s29 + $0x30] sm:$0xff]  ;;  %v729_v12 = vld [vmem:[%s6482_s29 + $0x28] sm:$0xff]  ;;  %v728_v13 = vld [vmem:[%s6482_s29 + $0x20] sm:$0xff]  ;;  %vm1117_vm4 = vcmask 261120   ;;  %vm1338_vm5 = vcmask 253952   ;;  %vm1601_vm6 = vcmask 254977  }
  0x15   : > { %763 = vmatpush1.msra.mxu0 %v736_v4  ;;  %v727_v14 = vld [vmem:[%s6482_s29 + $0x18] sm:$0xff]  ;;  %v726_v15 = vld [vmem:[%s6482_s29 + $0x10] sm:$0xff]  ;;  %v725_v16 = vld [vmem:[%s6482_s29 + $0x8] sm:$0xff]  ;;  %v1103_v4 = vsub.s32 1, %v1098_v2  ;;  %vm1344_vm7 = vcmask 523527   ;;  %vm1867_vm8 = vcmask 256002  }
  0x16   : > { %764 = vmatprep.subr.mxu0 %v735_v6  ;;  %v724_v17 = vld [vmem:[%s6482_s29] sm:$0xff]  ;;  %v866_v20 = vld [vmem:[%s6454_s7 + $0x38] sm:$0xff]  ;;  %v865_v21 = vld [vmem:[%s6454_s7 + $0x30] sm:$0xff]  ;;  %vm1607_vm9 = vcmask 522502   ;;  %vm2133_vm10 = vcmask 257027   ;;  %vm1873_vm11 = vcmask 521477  }
  0x17   : > { %765 = vmatpush1.msra.mxu0 %v734_v7  ;;  %v720_v18 = vld [vmem:[%s703_s5] sm:$0xff]  ;;  %901 = vmatprep.subr.mxu1 %v866_v20  ;;  %v864_v22 = vld [vmem:[%s6454_s7 + $0x28] sm:$0xff]  ;;  %v862_v25 = vld [vmem:[%s6454_s7 + $0x18] sm:$0xff]  ;;  %v5633_v7 = vsub.s32 0, %v1098_v2  ;;  %s6486_s5 = sld [smem:[#allocation7_spill]]  ;;  %vm2139_vm12 = vcmask 520452  }
  0x18   : > { %766 = vmatprep.subr.mxu0 %v733_v8  ;;  %902 = vmatpush1.msra.mxu1 %v865_v21  ;;  %v863_v24 = vld [vmem:[%s6454_s7 + $0x20] sm:$0xff]  ;;  %v5522_v26 = vld [vmem:[%s6457_s10 + $0x18] sm:$0xff]  ;;  %v5529_v27 = vld [vmem:[%s6457_s10 + $0x10] sm:$0xff]  ;;  %vm2399_vm13 = vcmask 258052   ;;  %vm2665_vm14 = vcmask 259077   ;;  %vm2405_vm15 = vcmask 519427  }
  0x19   : > { %767 = vmatpush1.msra.mxu0 %v732_v9  ;;  %903 = vmatprep.subr.mxu1 %v864_v22  ;;  %v5536_v28 = vld [vmem:[%s6457_s10 + $0x8] sm:$0xff]  ;;  %v5543_v29 = vld [vmem:[%s6457_s10] sm:$0xff]  ;;  %v861_v49 = vld [vmem:[%s6454_s7 + $0x10] sm:$0xff]  ;;  %s6489_s24 = smov 112  }
  0x1a   : > { %768 = vmatprep.subr.mxu0 %v731_v10  ;;  %904 = vmatpush1.msra.mxu1 %v863_v24  ;;  %v4678_v45 = vld [vmem:[%s6453_s6] ss:$0 sm:$0xff]  ;;  %v860_v51 = vld [vmem:[%s6454_s7 + $0x8] sm:$0xff]  ;;  %v5594_v57 = vld [vmem:[%s6456_s9 + $0x18] sm:$0xff]  ;;  %v5299_v24 = vmov 0  }
  0x1b   : > { %769 = vmatpush1.msra.mxu0 %v730_v11  ;;  %975 = vmatprep.subr.mxu1 %v862_v25  ;;  %v859_v52 = vld [vmem:[%s6454_s7] sm:$0xff]  ;;  %v868_v53 = vld [vmem:[%s6454_s7 + $0x48] sm:$0xff]  ;;  %v5600_v58 = vld [vmem:[%s6456_s9 + $0x10] sm:$0xff] }
  0x1c   : > { %770 = vmatprep.subr.mxu0 %v729_v12  ;;  %v867_v55 = vld [vmem:[%s6454_s7 + $0x40] sm:$0xff]  ;;  %v5609_v59 = vld [vmem:[%s6456_s9 + $0x8] sm:$0xff]  ;;  %5116 = vset.pattern.permute.xlu1 %v5299_v24 }
  0x1d   : > { %771 = vmatpush1.msra.mxu0 %v728_v13  ;;  %v5616_v60 = vld [vmem:[%s6456_s9] sm:$0xff]  ;;  %5115 = vset.pattern.permute.xlu0 %v5299_v24  ;;  %s711_s22 = scalar_lea.vmem %s6486_s5, %s5475_s1  ;;  %s6490_s5 = sld [smem:[#allocation8_spill]] }
  0x1e   : > { %772 = vmatprep.subr.mxu0 %v727_v14  ;;  %v1095_v9 = vld [vmem:[%s6455_s8] sm:$0x3] }
  0x1f   : > { %773 = vmatpush1.msra.mxu0 %v726_v15  ;;  %v1104_v12 = vrot.slane %v1095_v9, %v1103_v4  ;;  %v1100_v15 = vrot.slane %v1095_v9, %v5633_v7 }
  0x20   : > { %774 = vmatprep.subr.mxu0 %v725_v16 }
  0x21   : > { %775 = vmatpush1.msra.mxu0 %v724_v17 }
  0x22   : > { %4677 = vmatmul.mubr.msk.f32.vlgmr.msra.gmra.mxu0 %vm740_vm0, %v720_v18  ;;  %4854 = vmatprep.subr.mxu0 %v5290_v5 }
  0x23   : > { %4855 = vmatpush3.msra.mxu0 %v5522_v26  ;;  %4862 = vmatprep.mubr.msk.f32.mxu0 %vm5298_vm1, %v5290_v5 }
  0x24   : > { %4856 = vmatprep.subr.mxu0 %v5290_v5 }
  0x25   : > { %4857 = vmatpush3.msra.mxu0 %v5529_v27 }
  0x26   : > { %4858 = vmatprep.subr.mxu0 %v5290_v5 }
  0x27   : > { %4859 = vmatpush3.msra.mxu0 %v5536_v28 }
  0x28   : > { %4860 = vmatprep.subr.mxu0 %v5290_v5 }
  0x29   : > { %4861 = vmatpush3.msra.mxu0 %v5543_v29 }
  0x2a   : > { %4863 = vmatmul.mubr.f32.vlgmr.msra.gmra.mxu0 %v5290_v5  ;;  %4876 = vmatprep.subr.mxu0 %v5290_v5 }
  0x2b   : > { %4877 = vmatpush3.msra.mxu0 %v5522_v26  ;;  %4884 = vmatprep.mubr.msk.f32.mxu0 %vm5298_vm1, %v5290_v5 }
  0x2c   : > { %4878 = vmatprep.subr.mxu0 %v5290_v5 }
  0x2d   : > { %4879 = vmatpush3.msra.mxu0 %v5529_v27 }
  0x2e   : > { %4880 = vmatprep.subr.mxu0 %v5290_v5 }
  0x2f   : > { %4881 = vmatpush3.msra.mxu0 %v5536_v28 }
  0x30   : > { %4882 = vmatprep.subr.mxu0 %v5290_v5 }
  0x31   : > { %4883 = vmatpush3.msra.mxu0 %v5543_v29 }
  0x32   : > { %4898 = vmatprep.subr.mxu0 %v5290_v5 }
  0xe2   : > { %v810_v19 = vpop.f32.mrf.mxu0 }
  0xe3   : > { %824 = vrot.lane.b32.xlu1 %v810_v19, %s6470_s25  ;;  %816 = vrot.lane.b32.xlu0 %v810_v19, %s6473_s3 }
  0xe4   : > { %v812_v23 = vpop.f32.mrf.mxu0 }
  0xe7   : > { %828 = vrot.lane.b32.xlu1 %v810_v19, %s5293_s28  ;;  %820 = vrot.lane.b32.xlu0 %v810_v19, %s6471_s16 }
  0xea   : > { %v1282_v61 = vpop.f32.mrf.mxu0 }
  0xeb   : > { %836 = vrot.lane.b32.xlu1 %v810_v19, %s6474_s0  ;;  %832 = vrot.lane.b32.xlu0 %v810_v19, %s5296_s4  ;;  %s5297_s4 = smov 16   ;;  %s707_s0 = scalar_lea.vmem %s6485_s30, %s5475_s1  ;;  %v1287_v17 = vrot.slane %v1282_v61, 1 }
  0xec   : > { %v721_v56 = vld [vmem:[%s707_s0] sm:$0xff]  ;;  %v4864_v62 = vpop.f32.mrf.mxu0  ;;  %s6488_s0 = smov 96  }
  0xef   : > { %840 = vrot.lane.b32.xlu0 %v810_v19, %s5297_s4  ;;  %846 = vrot.lane.b32.xlu1 %v812_v23, %s6473_s3  ;;  %s699_s4 = scalar_lea.vmem %s6484_s2, %s5475_s1  ;;  %s6491_s3 = smov 80  }
  0xf0   : > { %v719_v54 = vld [vmem:[%s699_s4] sm:$0xff] }
 0x155   : > { %v825_v30 = vpop.permute.xlu1 %824  ;;  %v817_v31 = vpop.permute.xlu0 %816 }
 0x156   : > { %v819_v32 = vmax.f32 %v810_v19, %v817_v31 }
 0x159   : > { %v821_v33 = vpop.permute.xlu0 %820  ;;  %v829_v35 = vpop.permute.xlu1 %828 }
 0x15a   : > { %v823_v34 = vmax.f32 %v819_v32, %v821_v33 }
 0x15c   : > { %v827_v36 = vmax.f32 %v823_v34, %v825_v30 }
 0x15d   : > { %v833_v37 = vpop.permute.xlu0 %832  ;;  %v837_v40 = vpop.permute.xlu1 %836 }
 0x15e   : > { %v831_v38 = vmax.f32 %v827_v36, %v829_v35 }
 0x160   : > { %v835_v39 = vmax.f32 %v831_v38, %v833_v37 }
 0x161   : > { %v841_v42 = vpop.permute.xlu0 %840  ;;  %v847_v46 = vpop.permute.xlu1 %846 }
 0x162   : > { %v839_v41 = vmax.f32 %v835_v39, %v837_v40  ;;  %v5651_v39 = vld [vmem:[%s711_s22] sm:$0xff]  ;;  %s714_s22 = scalar_lea.vmem %s6490_s5, %s6493_s27 }
 0x164   : > { %v843_v43 = vmax.f32 %v839_v41, %v841_v42 }
 0x166   : > { %v844_v44 = vmax.f32 %v843_v43, %v812_v23  ;;  %v1320_v43 = vsub.f32 1.0, %v5651_v39 }
 0x168   : > { %v849_v47 = vmax.f32 %v844_v44, %v847_v46 }
 0x16a   : > { %v857_v48 = vadd.f32 %v4678_v45, %v849_v47 }
 0x16c   : > { %5134 = vtanh.f32 %v857_v48 }
 0x179   : > { %v5135_v50 = vpop.eup %5134 }
 0x17a   : > { %4679 = vmatmul.mubr.msk.f32.vlgmr.msra.gmra.mxu1 %vm869_vm2, %v5135_v50 }
 0x17b   : > { %976 = vmatpush1.msra.mxu1 %v861_v49  ;;  %1011 = vmatprep.mubr.f32.mxu1 %v5290_v5 }
 0x17c   : > { %977 = vmatprep.subr.mxu1 %v860_v51 }
 0x17d   : > { %978 = vmatpush1.msra.mxu1 %v859_v52 }
 0x17e   : > { %1052 = vmatprep.subr.mxu1 %v868_v53  ;;  %4680 = vmatmul.mubr.msk.f32.vlgmr.msra.gmra.mxu1 %vm869_vm2, %v719_v54 }
 0x17f   : > { %1053 = vmatpush1.msra.mxu1 %v867_v55  ;;  %1086 = vmatprep.mubr.f32.mxu1 %v5290_v5 }
 0x180   : > { %4843 = vmatprep.subr.mxu1 %v5290_v5 }
 0x182   : > { %4681 = vmatmul.mubr.msk.f32.vlgmr.msra.gmra.mxu1 %vm1018_vm3, %v721_v56 }
 0x183   : > { %4844 = vmatpush3.msra.mxu1 %v5594_v57  ;;  %4851 = vmatprep.mubr.msk.f32.mxu1 %vm5298_vm1, %v5290_v5 }
 0x184   : > { %4845 = vmatprep.subr.mxu1 %v5290_v5 }
 0x185   : > { %4846 = vmatpush3.msra.mxu1 %v5600_v58 }
 0x186   : > { %4847 = vmatprep.subr.mxu1 %v5290_v5 }
 0x187   : > { %4848 = vmatpush3.msra.mxu1 %v5609_v59 }
 0x188   : > { %4849 = vmatprep.subr.mxu1 %v5290_v5 }
 0x189   : > { %4850 = vmatpush3.msra.mxu1 %v5616_v60 }
 0x18a   : > { %4852 = vmatmul.mubr.f32.vlgmr.msra.gmra.mxu1 %v5290_v5  ;;  %4865 = vmatprep.subr.mxu1 %v5290_v5 }
 0x18b   : > { %4866 = vmatpush3.msra.mxu1 %v5594_v57  ;;  %4873 = vmatprep.mubr.msk.f32.mxu1 %vm5298_vm1, %v5290_v5 }
 0x18c   : > { %4867 = vmatprep.subr.mxu1 %v5290_v5 }
 0x18d   : > { %4868 = vmatpush3.msra.mxu1 %v5600_v58 }
 0x18e   : > { %4869 = vmatprep.subr.mxu1 %v5290_v5 }
 0x18f   : > { %4870 = vmatpush3.msra.mxu1 %v5609_v59 }
 0x190   : > { %4871 = vmatprep.subr.mxu1 %v5290_v5 }
 0x191   : > { %4872 = vmatpush3.msra.mxu1 %v5616_v60 }
 0x192   : > { %4887 = vmatprep.subr.mxu1 %v5290_v5 }
 0x23a   : > { %v939_v0 = vpop.f32.mrf.mxu1 }
 0x23c   : > { %v941_v1 = vpop.f32.mrf.mxu1 }
 0x23e   : > { %v1013_v3 = vpop.f32.mrf.mxu1 }
 0x23f   : > { %v1014_v10 = vadd.f32 %v1013_v3, %v939_v0 }
 0x240   : > { %v1015_v6 = vpop.f32.mrf.mxu1 }
 0x241   : > { %v1016_v11 = vadd.f32 %v1015_v6, %v941_v1 }
 0x242   : > { %v1088_v8 = vpop.f32.mrf.mxu1 }
 0x243   : > { %v1093_v14 = vadd.f32 %v1088_v8, %v1014_v10 }
 0x244   : > { %v1090_v13 = vpop.f32.mrf.mxu1 }
 0x245   : > { %v1094_v16 = vadd.f32 %v1090_v13, %v1016_v11  ;;  %v5641_v19 = vadd.f32 %v1100_v15, %v1093_v14 }
 0x247   : > { %v5639_v18 = vadd.f32 %v1104_v12, %v1094_v16 }
 0x249   : > { %v1289_v20 = vadd.f32 %v1287_v17, %v5639_v18 }
 0x24a   : > { %v1187_v21 = vpop.f32.mrf.mxu1 }
 0x24b   : > { %5136 = vtanh.f32 %v1289_v20  ;;  %v1191_v22 = vadd.f32 %v1187_v21, %v5641_v19  ;;  %v4683_v31 = vmul.f32 -1.442695, %v1289_v20 }
 0x24c   : > { %v4853_v23 = vpop.f32.mrf.mxu1 }
 0x24d   : > { %5138 = vtanh.f32 %v1191_v22  ;;  %v4682_v32 = vmul.f32 -1.442695, %v1191_v22 }
 0x24e   : > { %5140 = vpow2.f32 %v4683_v31 }
 0x24f   : > { %5142 = vpow2.f32 %v4682_v32 }
 0x258   : > { %v5137_v25 = vpop.eup %5136 }
 0x259   : > { %1299 = vrot.lane.b32.xlu1 %v5137_v25, %s5293_s28 }
 0x25a   : > { %v5139_v30 = vpop.eup %5138 }
 0x25b   : > { %1201 = vrot.lane.b32.xlu0 %v5139_v30, %s5293_s28  ;;  %v5141_v33 = vpop.eup %5140 }
 0x25c   : > { %v5143_v34 = vpop.eup %5142  ;;  %v1293_v35 = vadd.f32 1.0, %v5141_v33 }
 0x25d   : > { %v1195_v36 = vadd.f32 1.0, %v5143_v34 }
 0x25e   : > { %5144 = vrcp.f32 %v1293_v35 }
 0x25f   : > { %5146 = vrcp.f32 %v1195_v36 }
 0x26b   : > { %v5145_v37 = vpop.eup %5144 }
 0x26c   : > { %v5147_v41 = vpop.eup %5146  ;;  %v1297_v45 = vmul.f32 0.0, %v5145_v37 }
 0x26d   : > { %v1199_v48 = vmul.f32 0.0, %v5147_v41 }
 0x2cb   : > { %v1300_v38 = vpop.permute.xlu1 %1299 }
 0x2cc   : > { %v1302_v40 = vmul.f32 %v5145_v37, %v1300_v38 }
 0x2cd   : > { %v1202_v42 = vpop.permute.xlu0 %1201 }
 0x2ce   : > { %1304 = vrot.lane.b32.xlu1 %v1302_v40, %s6487_s23  ;;  %v1204_v44 = vmul.f32 %v5147_v41, %v1202_v42 }
 0x2d0   : > { %1206 = vrot.lane.b32.xlu0 %v1204_v44, %s6487_s23 }
 0x2d2   : > { %1323 = vperm.xlu1 %5116, %v1320_v43  }
 0x2d4   : > { %1316 = vperm.xlu0 %5115, %v5651_v39  }
 0x340   : > { %v1305_v46 = vpop.permute.xlu1 %1304 }
 0x341   : > { %v5659_v47 = vadd.f32 %v1305_v46, %v1297_v45 }
 0x342   : > { %v1207_v49 = vpop.permute.xlu0 %1206 }
 0x343   : > { %5148 = vtanh.f32 %v5659_v47  ;;  %v5662_v50 = vadd.f32 %v1207_v49, %v1199_v48 }
 0x345   : > { %5150 = vtanh.f32 %v5662_v50 }
 0x34d   : > { %v5669_v54 = vpop.permute.xlu1 %1323 }
 0x34e   : > { %v5672_v61 = vmul.f32 0.0, %v5669_v54 }
 0x34f   : > { %v5667_v53 = vpop.permute.xlu0 %1316 }
 0x350   : > { %v5149_v51 = vpop.eup %5148  ;;  %v1332_v40 = vmul.f32 %v5667_v53, %v5659_v47 }
 0x351   : > { %1310 = vrot.lane.b32.xlu0 %v5149_v51, %s5293_s28 }
 0x352   : > { %v5151_v52 = vpop.eup %5150  ;;  %v1333_v42 = vadd.f32 %v1332_v40, %v5672_v61 }
 0x353   : > { %1212 = vrot.lane.b32.xlu1 %v5151_v52, %s5293_s28 }
 0x354   : > { %v1536_v45 = vrot.slane %v1333_v42, 1 }
 0x3c3   : > { %v1311_v55 = vpop.permute.xlu0 %1310 }
 0x3c4   : > { %v1313_v56 = vmul.f32 %v5145_v37, %v1311_v55 }
 0x3c5   : > { %v1213_v63 = vpop.permute.xlu1 %1212 }
 0x3c6   : > { %v1330_v62 = vmul.f32 %v5667_v53, %v1313_v56  ;;  %v1215_v0 = vmul.f32 %v5147_v41, %v1213_v63  ;;  %v1328_v41 = vmul.f32 %v5667_v53, %v5662_v50 }
 0x3c8   : > { %v5676_v1 = vadd.f32 %v1330_v62, %v5672_v61  ;;  %v1319_v2 = vmul.f32 %v5667_v53, %v1215_v0  ;;  %v1329_v44 = vadd.f32 %v1328_v41, %v5672_v61 }
 0x3ca   : > { %v1449_v3 = vrot.slane %v5676_v1, 7  ;;  %v5681_v4 = vadd.f32 %v5672_v61, %v1319_v2  ;;  %v1577_v37 = vrot.slane %v5676_v1, 1  ;;  %v1430_v46 = vrot.slane %v1329_v44, 7 }
 0x3cc   : > { %1450 = vrot.lane.b32.xlu0 %v1449_v3, %s6487_s23  ;;  %1335 = vrot.lane.b32.xlu1 %v5681_v4, %s6487_s23  ;;  %v1556_v38 = vrot.slane %v5681_v4, 7 }
 0x43e   : > { %v1451_v6 = vpop.permute.xlu0 %1450  ;;  %v1336_v8 = vpop.permute.xlu1 %1335 }
 0x43f   : > { %4885 = vmatmul.mubr.msk.f32.vlgmr.msra.gmra.mxu0 %vm1117_vm4, %v1451_v6  ;;  %1339 = vst.msk [vmem:[#allocation2] sm:$0x1] %vm1338_vm5, %v1336_v8  ;;  %4874 = vmatmul.mubr.msk.f32.vlgmr.msra.gmra.mxu1 %vm1117_vm4, %v1336_v8  ;;  %vm2671_vm5 = vcmask 518402  }
 0x440   : > { %4899 = vmatpush3.msra.mxu0 %v5522_v26  ;;  %4888 = vmatpush3.msra.mxu1 %v5594_v57 }
 0x441   : > { %4900 = vmatprep.subr.mxu0 %v5290_v5  ;;  %4889 = vmatprep.subr.mxu1 %v5290_v5 }
 0x442   : > { %4901 = vmatpush3.msra.mxu0 %v5529_v27  ;;  %4890 = vmatpush3.msra.mxu1 %v5600_v58 }
 0x443   : > { %4902 = vmatprep.subr.mxu0 %v5290_v5  ;;  %4891 = vmatprep.subr.mxu1 %v5290_v5 }
 0x444   : > { %4903 = vmatpush3.msra.mxu0 %v5536_v28  ;;  %4892 = vmatpush3.msra.mxu1 %v5609_v59 }
 0x445   : > { %4895 = vmatprep.mubr.msk.f32.mxu1 %vm5298_vm1, %v5290_v5  ;;  %4893 = vmatprep.subr.mxu1 %v5290_v5 }
 0x446   : > { %4904 = vmatprep.subr.mxu0 %v5290_v5  ;;  %4894 = vmatpush3.msra.mxu1 %v5616_v60 }
 0x447   : > { %4905 = vmatpush3.msra.mxu0 %v5543_v29  ;;  %4906 = vmatprep.mubr.msk.f32.mxu0 %vm5298_vm1, %v5290_v5 }
 0x448   : > { %4909 = vmatprep.subr.mxu1 %v5290_v5  ;;  %4920 = vmatprep.subr.mxu0 %v5290_v5 }
 0x4ff   : > { %v1520_v9 = vpop.f32.mrf.mxu0  ;;  %v1414_v10 = vpop.f32.mrf.mxu1 }
 0x500   : > { %v1525_v11 = vrot.slane %v1520_v9, 2  ;;  %v1419_v12 = vrot.slane %v1414_v10, 7 }
 0x501   : > { %v4886_v13 = vpop.f32.mrf.mxu0  ;;  %v4875_v15 = vpop.f32.mrf.mxu1 }
 0x502   : > { %v1527_v14 = vadd.f32 %v1525_v11, %v5639_v18  ;;  %v1421_v16 = vadd.f32 %v1419_v12, %v5641_v19 }
 0x504   : > { %5152 = vtanh.f32 %v1527_v14  ;;  %v4687_v21 = vmul.f32 -1.442695, %v1527_v14  ;;  %v4685_v22 = vmul.f32 -1.442695, %v1421_v16 }
 0x505   : > { %5154 = vtanh.f32 %v1421_v16 }
 0x506   : > { %5156 = vpow2.f32 %v4687_v21 }
 0x507   : > { %5158 = vpow2.f32 %v4685_v22 }
 0x511   : > { %v5153_v17 = vpop.eup %5152 }
 0x512   : > { %v5155_v20 = vpop.eup %5154  ;;  %1540 = vrot.lane.b32.xlu0 %v5153_v17, %s5293_s28 }
 0x513   : > { %1434 = vrot.lane.b32.xlu1 %v5155_v20, %s5293_s28  ;;  %v5157_v23 = vpop.eup %5156 }
 0x514   : > { %v5159_v24 = vpop.eup %5158  ;;  %v1531_v25 = vadd.f32 1.0, %v5157_v23 }
 0x515   : > { %v1425_v30 = vadd.f32 1.0, %v5159_v24 }
 0x516   : > { %5160 = vrcp.f32 %v1531_v25 }
 0x517   : > { %5162 = vrcp.f32 %v1425_v30 }
 0x523   : > { %v5161_v31 = vpop.eup %5160 }
 0x524   : > { %v5163_v33 = vpop.eup %5162  ;;  %v1538_v48 = vmul.f32 %v5161_v31, %v1536_v45 }
 0x525   : > { %v1432_v49 = vmul.f32 %v5163_v33, %v1430_v46 }
 0x584   : > { %v1541_v32 = vpop.permute.xlu0 %1540 }
 0x585   : > { %v1435_v34 = vpop.permute.xlu1 %1434  ;;  %v1543_v35 = vmul.f32 %v5161_v31, %v1541_v32 }
 0x586   : > { %v1437_v36 = vmul.f32 %v5163_v33, %v1435_v34 }
 0x587   : > { %1545 = vrot.lane.b32.xlu0 %v1543_v35, %s6487_s23 }
 0x588   : > { %1439 = vrot.lane.b32.xlu1 %v1437_v36, %s6487_s23 }
 0x58b   : > { %1578 = vrot.lane.b32.xlu0 %v1577_v37, %s6487_s23 }
 0x58c   : > { %1557 = vrot.lane.b32.xlu1 %v1556_v38, %s6487_s23 }
 0x5f9   : > { %v1546_v51 = vpop.permute.xlu0 %1545 }
 0x5fa   : > { %v1440_v52 = vpop.permute.xlu1 %1439  ;;  %v5724_v55 = vadd.f32 %v1546_v51, %v1538_v48 }
 0x5fb   : > { %v5726_v56 = vadd.f32 %v1440_v52, %v1432_v49 }
 0x5fc   : > { %5164 = vtanh.f32 %v5724_v55 }
 0x5fd   : > { %5166 = vtanh.f32 %v5726_v56  ;;  %v1579_v50 = vpop.permute.xlu0 %1578 }
 0x5fe   : > { %v1558_v63 = vpop.permute.xlu1 %1557  ;;  %v1581_v61 = vmul.f32 %v1579_v50, %v5669_v54 }
 0x5ff   : > { %v1560_v0 = vmul.f32 %v1558_v63, %v5669_v54 }
 0x609   : > { %v5165_v47 = vpop.eup %5164 }
 0x60a   : > { %v5167_v62 = vpop.eup %5166  ;;  %1551 = vrot.lane.b32.xlu0 %v5165_v47, %s5293_s28 }
 0x60b   : > { %1445 = vrot.lane.b32.xlu1 %v5167_v62, %s5293_s28 }
 0x60e   : > { %1583 = vrot.lane.b32.xlu0 %v1581_v61, %s6488_s0 }
 0x60f   : > { %1562 = vrot.lane.b32.xlu1 %v1560_v0, %s6488_s0  ;;  %v1587_v0 = vmul.f32 %v5724_v55, %v5667_v53 }
 0x67c   : > { %v1552_v2 = vpop.permute.xlu0 %1551 }
 0x67d   : > { %v1446_v3 = vpop.permute.xlu1 %1445  ;;  %v1554_v4 = vmul.f32 %v5161_v31, %v1552_v2  ;;  %v1566_v2 = vmul.f32 %v5726_v56, %v5667_v53 }
 0x67e   : > { %v1448_v6 = vmul.f32 %v5163_v33, %v1446_v3 }
 0x67f   : > { %v1576_v8 = vmul.f32 %v1554_v4, %v5667_v53 }
 0x680   : > { %v1555_v9 = vmul.f32 %v1448_v6, %v5667_v53  ;;  %v1584_v10 = vpop.permute.xlu0 %1583 }
 0x681   : > { %v1563_v11 = vpop.permute.xlu1 %1562  ;;  %v5738_v12 = vadd.f32 %v1584_v10, %v1576_v8 }
 0x682   : > { %v5740_v13 = vadd.f32 %v1563_v11, %v1555_v9 }
 0x683   : > { %v1715_v14 = vrot.slane %v5738_v12, 6  ;;  %v1843_v50 = vrot.slane %v5738_v12, 1 }
 0x684   : > { %v1609_v15 = vrot.slane %v5740_v13, 1  ;;  %v1822_v62 = vrot.slane %v5740_v13, 7 }
 0x685   : > { %1716 = vrot.lane.b32.xlu0 %v1715_v14, %s6487_s23 }
 0x686   : > { %1610 = vrot.lane.b32.xlu1 %v1609_v15, %s6487_s23 }
 0x689   : > { %1588 = vrot.lane.b32.xlu0 %v1536_v45, %s6488_s0 }
 0x68a   : > { %1567 = vrot.lane.b32.xlu1 %v1430_v46, %s6488_s0 }
 0x6f7   : > { %v1717_v16 = vpop.permute.xlu0 %1716 }
 0x6f8   : > { %v1611_v17 = vpop.permute.xlu1 %1610  ;;  %4907 = vmatmul.mubr.msk.f32.vlgmr.msra.gmra.mxu0 %vm1117_vm4, %v1717_v16 }
 0x6f9   : > { %4896 = vmatmul.mubr.msk.f32.vlgmr.msra.gmra.mxu1 %vm1117_vm4, %v1611_v17  ;;  %4921 = vmatpush3.msra.mxu0 %v5522_v26 }
 0x6fa   : > { %4910 = vmatpush3.msra.mxu1 %v5594_v57  ;;  %4922 = vmatprep.subr.mxu0 %v5290_v5 }
 0x6fb   : > { %4911 = vmatprep.subr.mxu1 %v5290_v5  ;;  %4923 = vmatpush3.msra.mxu0 %v5529_v27  ;;  %v1589_v33 = vpop.permute.xlu0 %1588 }
 0x6fc   : > { %4912 = vmatpush3.msra.mxu1 %v5600_v58  ;;  %4924 = vmatprep.subr.mxu0 %v5290_v5  ;;  %v1568_v35 = vpop.permute.xlu1 %1567  ;;  %v1591_v36 = vmul.f32 %v1589_v33, %v5669_v54 }
 0x6fd   : > { %4913 = vmatprep.subr.mxu1 %v5290_v5  ;;  %4925 = vmatpush3.msra.mxu0 %v5536_v28  ;;  %v1570_v37 = vmul.f32 %v1568_v35, %v5669_v54 }
 0x6fe   : > { %4914 = vmatpush3.msra.mxu1 %v5609_v59  ;;  %4917 = vmatprep.mubr.msk.f32.mxu1 %vm5298_vm1, %v5290_v5 }
 0x6ff   : > { %4915 = vmatprep.subr.mxu1 %v5290_v5  ;;  %4926 = vmatprep.subr.mxu0 %v5290_v5 }
 0x700   : > { %4916 = vmatpush3.msra.mxu1 %v5616_v60  ;;  %4927 = vmatpush3.msra.mxu0 %v5543_v29 }
 0x701   : > { %4928 = vmatprep.mubr.msk.f32.mxu0 %vm5298_vm1, %v5290_v5  ;;  %4931 = vmatprep.subr.mxu1 %v5290_v5 }
 0x702   : > { %4942 = vmatprep.subr.mxu0 %v5290_v5 }
 0x7b8   : > { %v1786_v20 = vpop.f32.mrf.mxu0 }
 0x7b9   : > { %v1680_v21 = vpop.f32.mrf.mxu1  ;;  %v1791_v22 = vrot.slane %v1786_v20, 3 }
 0x7ba   : > { %v1685_v23 = vrot.slane %v1680_v21, 6  ;;  %v4908_v24 = vpop.f32.mrf.mxu0 }
 0x7bb   : > { %v1793_v25 = vadd.f32 %v1791_v22, %v5639_v18  ;;  %v4897_v30 = vpop.f32.mrf.mxu1 }
 0x7bc   : > { %v1687_v31 = vadd.f32 %v1685_v23, %v5641_v19 }
 0x7bd   : > { %5168 = vtanh.f32 %v1793_v25  ;;  %v4691_v38 = vmul.f32 -1.442695, %v1793_v25 }
 0x7be   : > { %5170 = vtanh.f32 %v1687_v31  ;;  %v4689_v40 = vmul.f32 -1.442695, %v1687_v31 }
 0x7bf   : > { %5172 = vpow2.f32 %v4691_v38 }
 0x7c0   : > { %5174 = vpow2.f32 %v4689_v40 }
 0x7ca   : > { %v5169_v32 = vpop.eup %5168 }
 0x7cb   : > { %v5171_v34 = vpop.eup %5170  ;;  %1806 = vrot.lane.b32.xlu0 %v5169_v32, %s5293_s28 }
 0x7cc   : > { %1700 = vrot.lane.b32.xlu1 %v5171_v34, %s5293_s28  ;;  %v5173_v41 = vpop.eup %5172 }
 0x7cd   : > { %v5175_v42 = vpop.eup %5174  ;;  %v1797_v44 = vadd.f32 1.0, %v5173_v41 }
 0x7ce   : > { %v1691_v45 = vadd.f32 1.0, %v5175_v42 }
 0x7cf   : > { %1593 = vrot.lane.b32.xlu0 %v1591_v36, %s6487_s23  ;;  %5176 = vrcp.f32 %v1797_v44 }
 0x7d0   : > { %1572 = vrot.lane.b32.xlu1 %v1570_v37, %s6487_s23  ;;  %5178 = vrcp.f32 %v1691_v45 }
 0x7dc   : > { %v5177_v46 = vpop.eup %5176 }
 0x7dd   : > { %v5179_v49 = vpop.eup %5178 }
 0x83d   : > { %v1807_v48 = vpop.permute.xlu0 %1806 }
 0x83e   : > { %v1701_v51 = vpop.permute.xlu1 %1700  ;;  %v1809_v52 = vmul.f32 %v5177_v46, %v1807_v48 }
 0x83f   : > { %v1703_v47 = vmul.f32 %v5179_v49, %v1701_v51 }
 0x840   : > { %1811 = vrot.lane.b32.xlu0 %v1809_v52, %s6487_s23 }
 0x841   : > { %1705 = vrot.lane.b32.xlu1 %v1703_v47, %s6487_s23  ;;  %v1594_v63 = vpop.permute.xlu0 %1593 }
 0x842   : > { %v1573_v61 = vpop.permute.xlu1 %1572  ;;  %v1596_v3 = vadd.f32 %v1594_v63, %v1587_v0 }
 0x843   : > { %v1575_v4 = vadd.f32 %v1573_v61, %v1566_v2 }
 0x844   : > { %1844 = vrot.lane.b32.xlu0 %v1843_v50, %s6487_s23  ;;  %v1802_v6 = vrot.slane %v1596_v3, 1 }
 0x845   : > { %1823 = vrot.lane.b32.xlu1 %v1822_v62, %s6487_s23  ;;  %v1696_v8 = vrot.slane %v1575_v4, 7 }
 0x846   : > { %v1804_v9 = vmul.f32 %v5177_v46, %v1802_v6 }
 0x847   : > { %v1698_v10 = vmul.f32 %v5179_v49, %v1696_v8 }
 0x8b2   : > { %v1812_v11 = vpop.permute.xlu0 %1811 }
 0x8b3   : > { %v1706_v14 = vpop.permute.xlu1 %1705  ;;  %v5788_v15 = vadd.f32 %v1812_v11, %v1804_v9 }
 0x8b4   : > { %v5790_v16 = vadd.f32 %v1706_v14, %v1698_v10 }
 0x8b5   : > { %5180 = vtanh.f32 %v5788_v15 }
 0x8b6   : > { %5182 = vtanh.f32 %v5790_v16  ;;  %v1845_v17 = vpop.permute.xlu0 %1844 }
 0x8b7   : > { %v1824_v56 = vpop.permute.xlu1 %1823  ;;  %v1847_v21 = vmul.f32 %v1845_v17, %v5669_v54 }
 0x8b8   : > { %v1826_v22 = vmul.f32 %v1824_v56, %v5669_v54 }
 0x8c2   : > { %v5181_v55 = vpop.eup %5180 }
 0x8c3   : > { %v5183_v20 = vpop.eup %5182  ;;  %1817 = vrot.lane.b32.xlu0 %v5181_v55, %s5293_s28 }
 0x8c4   : > { %1711 = vrot.lane.b32.xlu1 %v5183_v20, %s5293_s28 }
 0x8c7   : > { %1849 = vrot.lane.b32.xlu0 %v1847_v21, %s6488_s0 }
 0x8c8   : > { %1828 = vrot.lane.b32.xlu1 %v1826_v22, %s6488_s0 }
 0x935   : > { %v1818_v23 = vpop.permute.xlu0 %1817 }
 0x936   : > { %v1712_v24 = vpop.permute.xlu1 %1711  ;;  %v1820_v25 = vmul.f32 %v5177_v46, %v1818_v23 }
 0x937   : > { %v1714_v30 = vmul.f32 %v5179_v49, %v1712_v24  ;;  %v1853_v24 = vmul.f32 %v5788_v15, %v5667_v53 }
 0x938   : > { %v1842_v31 = vmul.f32 %v1820_v25, %v5667_v53  ;;  %v1832_v25 = vmul.f32 %v5790_v16, %v5667_v53 }
 0x939   : > { %v1821_v32 = vmul.f32 %v1714_v30, %v5667_v53  ;;  %v1850_v33 = vpop.permute.xlu0 %1849 }
 0x93a   : > { %v1829_v34 = vpop.permute.xlu1 %1828  ;;  %v5802_v35 = vadd.f32 %v1850_v33, %v1842_v31 }
 0x93b   : > { %v5804_v36 = vadd.f32 %v1829_v34, %v1821_v32 }
 0x93c   : > { %v1981_v37 = vrot.slane %v5802_v35, 5  ;;  %v2109_v56 = vrot.slane %v5802_v35, 1 }
 0x93d   : > { %v1875_v38 = vrot.slane %v5804_v36, 2  ;;  %v2088_v21 = vrot.slane %v5804_v36, 7 }
 0x93e   : > { %1982 = vrot.lane.b32.xlu0 %v1981_v37, %s6487_s23 }
 0x93f   : > { %1876 = vrot.lane.b32.xlu1 %v1875_v38, %s6487_s23 }
 0x942   : > { %1854 = vrot.lane.b32.xlu0 %v1802_v6, %s6488_s0 }
 0x943   : > { %1833 = vrot.lane.b32.xlu1 %v1696_v8, %s6488_s0 }
 0x9b0   : > { %v1983_v40 = vpop.permute.xlu0 %1982 }
 0x9b1   : > { %v1877_v41 = vpop.permute.xlu1 %1876  ;;  %4929 = vmatmul.mubr.msk.f32.vlgmr.msra.gmra.mxu0 %vm1117_vm4, %v1983_v40 }
 0x9b2   : > { %4918 = vmatmul.mubr.msk.f32.vlgmr.msra.gmra.mxu1 %vm1117_vm4, %v1877_v41  ;;  %4943 = vmatpush3.msra.mxu0 %v5522_v26 }
 0x9b3   : > { %4932 = vmatpush3.msra.mxu1 %v5594_v57  ;;  %4944 = vmatprep.subr.mxu0 %v5290_v5 }
 0x9b4   : > { %4933 = vmatprep.subr.mxu1 %v5290_v5  ;;  %4945 = vmatpush3.msra.mxu0 %v5529_v27  ;;  %v1855_v50 = vpop.permute.xlu0 %1854 }
 0x9b5   : > { %4934 = vmatpush3.msra.mxu1 %v5600_v58  ;;  %4946 = vmatprep.subr.mxu0 %v5290_v5  ;;  %v1834_v63 = vpop.permute.xlu1 %1833  ;;  %v1857_v61 = vmul.f32 %v1855_v50, %v5669_v54 }
 0x9b6   : > { %4935 = vmatprep.subr.mxu1 %v5290_v5  ;;  %4947 = vmatpush3.msra.mxu0 %v5536_v28  ;;  %v1836_v0 = vmul.f32 %v1834_v63, %v5669_v54 }
 0x9b7   : > { %4936 = vmatpush3.msra.mxu1 %v5609_v59  ;;  %4939 = vmatprep.mubr.msk.f32.mxu1 %vm5298_vm1, %v5290_v5 }
 0x9b8   : > { %4937 = vmatprep.subr.mxu1 %v5290_v5  ;;  %4948 = vmatprep.subr.mxu0 %v5290_v5 }
 0x9b9   : > { %4938 = vmatpush3.msra.mxu1 %v5616_v60  ;;  %4949 = vmatpush3.msra.mxu0 %v5543_v29 }
 0x9ba   : > { %4950 = vmatprep.mubr.msk.f32.mxu0 %vm5298_vm1, %v5290_v5  ;;  %4953 = vmatprep.subr.mxu1 %v5290_v5 }
 0x9bb   : > { %4964 = vmatprep.subr.mxu0 %v5290_v5 }
 0xa71   : > { %v2052_v42 = vpop.f32.mrf.mxu0 }
 0xa72   : > { %v1946_v44 = vpop.f32.mrf.mxu1  ;;  %v2057_v45 = vrot.slane %v2052_v42, 4 }
 0xa73   : > { %v1951_v46 = vrot.slane %v1946_v44, 5  ;;  %v4930_v48 = vpop.f32.mrf.mxu0 }
 0xa74   : > { %v2059_v49 = vadd.f32 %v2057_v45, %v5639_v18  ;;  %v4919_v51 = vpop.f32.mrf.mxu1 }
 0xa75   : > { %v1953_v52 = vadd.f32 %v1951_v46, %v5641_v19 }
 0xa76   : > { %5184 = vtanh.f32 %v2059_v49  ;;  %v4695_v2 = vmul.f32 -1.442695, %v2059_v49 }
 0xa77   : > { %5186 = vtanh.f32 %v1953_v52  ;;  %v4693_v3 = vmul.f32 -1.442695, %v1953_v52 }
 0xa78   : > { %5188 = vpow2.f32 %v4695_v2 }
 0xa79   : > { %5190 = vpow2.f32 %v4693_v3 }
 0xa83   : > { %v5185_v47 = vpop.eup %5184 }
 0xa84   : > { %v5187_v62 = vpop.eup %5186  ;;  %2072 = vrot.lane.b32.xlu0 %v5185_v47, %s5293_s28 }
 0xa85   : > { %1966 = vrot.lane.b32.xlu1 %v5187_v62, %s5293_s28  ;;  %v5189_v4 = vpop.eup %5188 }
 0xa86   : > { %v5191_v6 = vpop.eup %5190  ;;  %v2063_v8 = vadd.f32 1.0, %v5189_v4 }
 0xa87   : > { %v1957_v9 = vadd.f32 1.0, %v5191_v6 }
 0xa88   : > { %1859 = vrot.lane.b32.xlu0 %v1857_v61, %s6487_s23  ;;  %5192 = vrcp.f32 %v2063_v8 }
 0xa89   : > { %1838 = vrot.lane.b32.xlu1 %v1836_v0, %s6487_s23  ;;  %5194 = vrcp.f32 %v1957_v9 }
 0xa95   : > { %v5193_v10 = vpop.eup %5192 }
 0xa96   : > { %v5195_v14 = vpop.eup %5194 }
 0xaf6   : > { %v2073_v11 = vpop.permute.xlu0 %2072 }
 0xaf7   : > { %v1967_v55 = vpop.permute.xlu1 %1966  ;;  %v2075_v17 = vmul.f32 %v5193_v10, %v2073_v11 }
 0xaf8   : > { %v1969_v20 = vmul.f32 %v5195_v14, %v1967_v55 }
 0xaf9   : > { %2077 = vrot.lane.b32.xlu0 %v2075_v17, %s6487_s23 }
 0xafa   : > { %1971 = vrot.lane.b32.xlu1 %v1969_v20, %s6487_s23  ;;  %v1860_v22 = vpop.permute.xlu0 %1859 }
 0xafb   : > { %v1839_v23 = vpop.permute.xlu1 %1838  ;;  %v1862_v30 = vadd.f32 %v1860_v22, %v1853_v24 }
 0xafc   : > { %v1841_v31 = vadd.f32 %v1839_v23, %v1832_v25 }
 0xafd   : > { %2110 = vrot.lane.b32.xlu0 %v2109_v56, %s6487_s23  ;;  %v2068_v32 = vrot.slane %v1862_v30, 1 }
 0xafe   : > { %2089 = vrot.lane.b32.xlu1 %v2088_v21, %s6487_s23  ;;  %v1962_v33 = vrot.slane %v1841_v31, 7 }
 0xaff   : > { %v2070_v34 = vmul.f32 %v5193_v10, %v2068_v32 }
 0xb00   : > { %v1964_v37 = vmul.f32 %v5195_v14, %v1962_v33 }
 0xb6b   : > { %v2078_v38 = vpop.permute.xlu0 %2077 }
 0xb6c   : > { %v1972_v40 = vpop.permute.xlu1 %1971  ;;  %v5852_v41 = vadd.f32 %v2078_v38, %v2070_v34 }
 0xb6d   : > { %v5854_v42 = vadd.f32 %v1972_v40, %v1964_v37 }
 0xb6e   : > { %5196 = vtanh.f32 %v5852_v41 }
 0xb6f   : > { %5198 = vtanh.f32 %v5854_v42  ;;  %v2111_v44 = vpop.permute.xlu0 %2110 }
 0xb70   : > { %v2090_v16 = vpop.permute.xlu1 %2089  ;;  %v2113_v46 = vmul.f32 %v2111_v44, %v5669_v54  ;;  %v2119_v44 = vmul.f32 %v5852_v41, %v5667_v53 }
 0xb71   : > { %v2092_v48 = vmul.f32 %v2090_v16, %v5669_v54 }
 0xb7b   : > { %v5197_v15 = vpop.eup %5196 }
 0xb7c   : > { %v5199_v45 = vpop.eup %5198  ;;  %2083 = vrot.lane.b32.xlu0 %v5197_v15, %s5293_s28 }
 0xb7d   : > { %1977 = vrot.lane.b32.xlu1 %v5199_v45, %s5293_s28  ;;  %v2098_v45 = vmul.f32 %v5854_v42, %v5667_v53 }
 0xb80   : > { %2115 = vrot.lane.b32.xlu0 %v2113_v46, %s6488_s0 }
 0xb81   : > { %2094 = vrot.lane.b32.xlu1 %v2092_v48, %s6488_s0 }
 0xbee   : > { %v2084_v49 = vpop.permute.xlu0 %2083 }
 0xbef   : > { %v1978_v51 = vpop.permute.xlu1 %1977  ;;  %v2086_v52 = vmul.f32 %v5193_v10, %v2084_v49 }
 0xbf0   : > { %v1980_v47 = vmul.f32 %v5195_v14, %v1978_v51 }
 0xbf1   : > { %v2108_v50 = vmul.f32 %v2086_v52, %v5667_v53 }
 0xbf2   : > { %v2087_v62 = vmul.f32 %v1980_v47, %v5667_v53  ;;  %v2116_v63 = vpop.permute.xlu0 %2115 }
 0xbf3   : > { %v2095_v61 = vpop.permute.xlu1 %2094  ;;  %v5866_v0 = vadd.f32 %v2116_v63, %v2108_v50 }
 0xbf4   : > { %v5868_v2 = vadd.f32 %v2095_v61, %v2087_v62 }
 0xbf5   : > { %v2247_v3 = vrot.slane %v5866_v0, 4  ;;  %v2375_v37 = vrot.slane %v5866_v0, 1 }
 0xbf6   : > { %v2141_v4 = vrot.slane %v5868_v2, 3  ;;  %v2354_v38 = vrot.slane %v5868_v2, 7 }
 0xbf7   : > { %2248 = vrot.lane.b32.xlu0 %v2247_v3, %s6487_s23 }
 0xbf8   : > { %2142 = vrot.lane.b32.xlu1 %v2141_v4, %s6487_s23 }
 0xbfb   : > { %2120 = vrot.lane.b32.xlu0 %v2068_v32, %s6488_s0 }
 0xbfc   : > { %2099 = vrot.lane.b32.xlu1 %v1962_v33, %s6488_s0 }
 0xc69   : > { %v2249_v6 = vpop.permute.xlu0 %2248 }
 0xc6a   : > { %v2143_v8 = vpop.permute.xlu1 %2142  ;;  %4951 = vmatmul.mubr.msk.f32.vlgmr.msra.gmra.mxu0 %vm1117_vm4, %v2249_v6 }
 0xc6b   : > { %4940 = vmatmul.mubr.msk.f32.vlgmr.msra.gmra.mxu1 %vm1117_vm4, %v2143_v8  ;;  %4965 = vmatpush3.msra.mxu0 %v5522_v26 }
 0xc6c   : > { %4954 = vmatpush3.msra.mxu1 %v5594_v57  ;;  %4966 = vmatprep.subr.mxu0 %v5290_v5 }
 0xc6d   : > { %4955 = vmatprep.subr.mxu1 %v5290_v5  ;;  %4967 = vmatpush3.msra.mxu0 %v5529_v27 }
 0xc6e   : > { %4956 = vmatpush3.msra.mxu1 %v5600_v58  ;;  %4968 = vmatprep.subr.mxu0 %v5290_v5  ;;  %v2100_v14 = vpop.permute.xlu1 %2099 }
 0xc6f   : > { %4957 = vmatprep.subr.mxu1 %v5290_v5  ;;  %4969 = vmatpush3.msra.mxu0 %v5536_v28  ;;  %v2102_v17 = vmul.f32 %v2100_v14, %v5669_v54 }
 0xc70   : > { %4958 = vmatpush3.msra.mxu1 %v5609_v59  ;;  %4961 = vmatprep.mubr.msk.f32.mxu1 %vm5298_vm1, %v5290_v5 }
 0xc71   : > { %4959 = vmatprep.subr.mxu1 %v5290_v5  ;;  %4970 = vmatprep.subr.mxu0 %v5290_v5 }
 0xc72   : > { %4960 = vmatpush3.msra.mxu1 %v5616_v60  ;;  %4971 = vmatpush3.msra.mxu0 %v5543_v29  ;;  %v2121_v60 = vpop.permute.xlu0 %2120 }
 0xc73   : > { %4972 = vmatprep.mubr.msk.f32.mxu0 %vm5298_vm1, %v5290_v5  ;;  %4975 = vmatprep.subr.mxu1 %v5290_v5  ;;  %v2123_v55 = vmul.f32 %v2121_v60, %v5669_v54 }
 0xc74   : > { %4986 = vmatprep.subr.mxu0 %v5290_v5 }
 0xd2a   : > { %v2318_v26 = vpop.f32.mrf.mxu0 }
 0xd2b   : > { %v2212_v27 = vpop.f32.mrf.mxu1  ;;  %v2323_v28 = vrot.slane %v2318_v26, 5 }
 0xd2c   : > { %v2217_v57 = vrot.slane %v2212_v27, 4  ;;  %v4952_v58 = vpop.f32.mrf.mxu0 }
 0xd2d   : > { %v2325_v59 = vadd.f32 %v2323_v28, %v5639_v18  ;;  %v4941_v9 = vpop.f32.mrf.mxu1 }
 0xd2e   : > { %v2219_v10 = vadd.f32 %v2217_v57, %v5641_v19 }
 0xd2f   : > { %5200 = vtanh.f32 %v2325_v59  ;;  %v4699_v20 = vmul.f32 -1.442695, %v2325_v59 }
 0xd30   : > { %5202 = vtanh.f32 %v2219_v10  ;;  %v4697_v56 = vmul.f32 -1.442695, %v2219_v10 }
 0xd31   : > { %5204 = vpow2.f32 %v4699_v20  ;;  %v5951_v20 = vld [vmem:[%s6456_s9 + $0x18] sm:$0xff] }
 0xd32   : > { %5206 = vpow2.f32 %v4697_v56  ;;  %v5959_v56 = vld [vmem:[%s6457_s10 + $0x10] sm:$0xff] }
 0xd3c   : > { %v5201_v29 = vpop.eup %5200 }
 0xd3d   : > { %v5203_v11 = vpop.eup %5202  ;;  %2338 = vrot.lane.b32.xlu0 %v5201_v29, %s5293_s28 }
 0xd3e   : > { %2232 = vrot.lane.b32.xlu1 %v5203_v11, %s5293_s28  ;;  %v5205_v21 = vpop.eup %5204 }
 0xd3f   : > { %v5207_v22 = vpop.eup %5206  ;;  %v2329_v23 = vadd.f32 1.0, %v5205_v21  ;;  %v5965_v21 = vld [vmem:[%s6456_s9 + $0x10] sm:$0xff] }
 0xd40   : > { %v2223_v24 = vadd.f32 1.0, %v5207_v22  ;;  %v5973_v22 = vld [vmem:[%s6457_s10 + $0x8] sm:$0xff] }
 0xd41   : > { %2125 = vrot.lane.b32.xlu0 %v2123_v55, %s6487_s23  ;;  %5208 = vrcp.f32 %v2329_v23  ;;  %v5979_v23 = vld [vmem:[%s6456_s9 + $0x8] sm:$0xff] }
 0xd42   : > { %2104 = vrot.lane.b32.xlu1 %v2102_v17, %s6487_s23  ;;  %5210 = vrcp.f32 %v2223_v24  ;;  %v5945_v17 = vld [vmem:[%s6457_s10 + $0x18] sm:$0xff]  ;;  %v5989_v24 = vld [vmem:[%s6456_s9] sm:$0xff] }
 0xd4e   : > { %v5209_v25 = vpop.eup %5208 }
 0xd4f   : > { %v5211_v31 = vpop.eup %5210 }
 0xdaf   : > { %v2339_v30 = vpop.permute.xlu0 %2338 }
 0xdb0   : > { %v2233_v32 = vpop.permute.xlu1 %2232  ;;  %v2341_v33 = vmul.f32 %v5209_v25, %v2339_v30 }
 0xdb1   : > { %v2235_v34 = vmul.f32 %v5211_v31, %v2233_v32 }
 0xdb2   : > { %2343 = vrot.lane.b32.xlu0 %v2341_v33, %s6487_s23 }
 0xdb3   : > { %2237 = vrot.lane.b32.xlu1 %v2235_v34, %s6487_s23  ;;  %v2126_v40 = vpop.permute.xlu0 %2125 }
 0xdb4   : > { %v2105_v15 = vpop.permute.xlu1 %2104  ;;  %v2128_v16 = vadd.f32 %v2126_v40, %v2119_v44 }
 0xdb5   : > { %v2107_v46 = vadd.f32 %v2105_v15, %v2098_v45 }
 0xdb6   : > { %2376 = vrot.lane.b32.xlu0 %v2375_v37, %s6487_s23  ;;  %v2334_v48 = vrot.slane %v2128_v16, 1 }
 0xdb7   : > { %2355 = vrot.lane.b32.xlu1 %v2354_v38, %s6487_s23  ;;  %v2228_v49 = vrot.slane %v2107_v46, 7 }
 0xdb8   : > { %v2336_v51 = vmul.f32 %v5209_v25, %v2334_v48 }
 0xdb9   : > { %v2230_v52 = vmul.f32 %v5211_v31, %v2228_v49 }
 0xe24   : > { %v2344_v47 = vpop.permute.xlu0 %2343 }
 0xe25   : > { %v2238_v50 = vpop.permute.xlu1 %2237  ;;  %v5916_v62 = vadd.f32 %v2344_v47, %v2336_v51 }
 0xe26   : > { %v5918_v63 = vadd.f32 %v2238_v50, %v2230_v52 }
 0xe27   : > { %5212 = vtanh.f32 %v5916_v62 }
 0xe28   : > { %5214 = vtanh.f32 %v5918_v63  ;;  %v2377_v61 = vpop.permute.xlu0 %2376 }
 0xe29   : > { %v2356_v42 = vpop.permute.xlu1 %2355  ;;  %v2379_v4 = vmul.f32 %v2377_v61, %v5669_v54 }
 0xe2a   : > { %v2358_v6 = vmul.f32 %v2356_v42, %v5669_v54 }
 0xe34   : > { %v5213_v41 = vpop.eup %5212 }
 0xe35   : > { %v5215_v3 = vpop.eup %5214  ;;  %2349 = vrot.lane.b32.xlu0 %v5213_v41, %s5293_s28 }
 0xe36   : > { %2243 = vrot.lane.b32.xlu1 %v5215_v3, %s5293_s28 }
 0xe39   : > { %2381 = vrot.lane.b32.xlu0 %v2379_v4, %s6488_s0 }
 0xe3a   : > { %2360 = vrot.lane.b32.xlu1 %v2358_v6, %s6488_s0 }
 0xea7   : > { %v2350_v8 = vpop.permute.xlu0 %2349 }
 0xea8   : > { %v2244_v26 = vpop.permute.xlu1 %2243  ;;  %v2352_v27 = vmul.f32 %v5209_v25, %v2350_v8  ;;  %v5995_v25 = vld [vmem:[%s6457_s10] sm:$0xff] }
 0xea9   : > { %v2246_v28 = vmul.f32 %v5211_v31, %v2244_v26 }
 0xeaa   : > { %v2374_v57 = vmul.f32 %v2352_v27, %v5667_v53 }
 0xeab   : > { %v2353_v58 = vmul.f32 %v2246_v28, %v5667_v53  ;;  %v2382_v59 = vpop.permute.xlu0 %2381 }
 0xeac   : > { %v2361_v9 = vpop.permute.xlu1 %2360  ;;  %v5930_v10 = vadd.f32 %v2382_v59, %v2374_v57  ;;  %v2364_v59 = vmul.f32 %v5918_v63, %v5667_v53 }
 0xead   : > { %v5932_v29 = vadd.f32 %v2361_v9, %v2353_v58  ;;  %v2385_v58 = vmul.f32 %v5916_v62, %v5667_v53 }
 0xeae   : > { %v2513_v60 = vrot.slane %v5930_v10, 3  ;;  %v2641_v26 = vrot.slane %v5930_v10, 1 }
 0xeaf   : > { %v2407_v11 = vrot.slane %v5932_v29, 4  ;;  %v2620_v27 = vrot.slane %v5932_v29, 7 }
 0xeb0   : > { %2514 = vrot.lane.b32.xlu0 %v2513_v60, %s6487_s23 }
 0xeb1   : > { %2408 = vrot.lane.b32.xlu1 %v2407_v11, %s6487_s23 }
 0xeb4   : > { %2386 = vrot.lane.b32.xlu0 %v2334_v48, %s6488_s0 }
 0xeb5   : > { %2365 = vrot.lane.b32.xlu1 %v2228_v49, %s6488_s0 }
 0xf22   : > { %v2515_v14 = vpop.permute.xlu0 %2514 }
 0xf23   : > { %v2409_v55 = vpop.permute.xlu1 %2408  ;;  %4973 = vmatmul.mubr.msk.f32.vlgmr.msra.gmra.mxu0 %vm1117_vm4, %v2515_v14 }
 0xf24   : > { %4962 = vmatmul.mubr.msk.f32.vlgmr.msra.gmra.mxu1 %vm1117_vm4, %v2409_v55  ;;  %4987 = vmatpush3.msra.mxu0 %v5945_v17 }
 0xf25   : > { %4976 = vmatpush3.msra.mxu1 %v5951_v20  ;;  %4988 = vmatprep.subr.mxu0 %v5290_v5 }
 0xf26   : > { %4977 = vmatprep.subr.mxu1 %v5290_v5  ;;  %4989 = vmatpush3.msra.mxu0 %v5959_v56  ;;  %v2387_v44 = vpop.permute.xlu0 %2386 }
 0xf27   : > { %4978 = vmatpush3.msra.mxu1 %v5965_v21  ;;  %4990 = vmatprep.subr.mxu0 %v5290_v5  ;;  %v2366_v16 = vpop.permute.xlu1 %2365  ;;  %v2389_v46 = vmul.f32 %v2387_v44, %v5669_v54 }
 0xf28   : > { %4979 = vmatprep.subr.mxu1 %v5290_v5  ;;  %4991 = vmatpush3.msra.mxu0 %v5973_v22  ;;  %v2368_v48 = vmul.f32 %v2366_v16, %v5669_v54 }
 0xf29   : > { %4980 = vmatpush3.msra.mxu1 %v5979_v23  ;;  %4983 = vmatprep.mubr.msk.f32.mxu1 %vm5298_vm1, %v5290_v5 }
 0xf2a   : > { %4981 = vmatprep.subr.mxu1 %v5290_v5  ;;  %4992 = vmatprep.subr.mxu0 %v5290_v5 }
 0xf2b   : > { %4982 = vmatpush3.msra.mxu1 %v5989_v24  ;;  %4993 = vmatpush3.msra.mxu0 %v5995_v25 }
 0xf2c   : > { %4994 = vmatprep.mubr.msk.f32.mxu0 %vm5298_vm1, %v5290_v5  ;;  %4997 = vmatprep.subr.mxu1 %v5290_v5 }
 0xf2d   : > { %5008 = vmatprep.subr.mxu0 %v5290_v5 }
 0xfe3   : > { %v2584_v30 = vpop.f32.mrf.mxu0 }
 0xfe4   : > { %v2478_v31 = vpop.f32.mrf.mxu1  ;;  %v2589_v32 = vrot.slane %v2584_v30, 6 }
 0xfe5   : > { %v2483_v33 = vrot.slane %v2478_v31, 3  ;;  %v4974_v34 = vpop.f32.mrf.mxu0 }
 0xfe6   : > { %v2591_v37 = vadd.f32 %v2589_v32, %v5639_v18  ;;  %v4963_v38 = vpop.f32.mrf.mxu1 }
 0xfe7   : > { %v2485_v40 = vadd.f32 %v2483_v33, %v5641_v19 }
 0xfe8   : > { %5216 = vtanh.f32 %v2591_v37  ;;  %v4703_v49 = vmul.f32 -1.442695, %v2591_v37 }
 0xfe9   : > { %5218 = vtanh.f32 %v2485_v40  ;;  %v4701_v51 = vmul.f32 -1.442695, %v2485_v40 }
 0xfea   : > { %5220 = vpow2.f32 %v4703_v49 }
 0xfeb   : > { %5222 = vpow2.f32 %v4701_v51 }
 0xff5   : > { %v5217_v15 = vpop.eup %5216 }
 0xff6   : > { %v5219_v45 = vpop.eup %5218  ;;  %2604 = vrot.lane.b32.xlu0 %v5217_v15, %s5293_s28 }
 0xff7   : > { %2498 = vrot.lane.b32.xlu1 %v5219_v45, %s5293_s28  ;;  %v5221_v52 = vpop.eup %5220 }
 0xff8   : > { %v5223_v47 = vpop.eup %5222  ;;  %v2595_v50 = vadd.f32 1.0, %v5221_v52 }
 0xff9   : > { %v2489_v41 = vadd.f32 1.0, %v5223_v47 }
 0xffa   : > { %2391 = vrot.lane.b32.xlu0 %v2389_v46, %s6487_s23  ;;  %5224 = vrcp.f32 %v2595_v50 }
 0xffb   : > { %2370 = vrot.lane.b32.xlu1 %v2368_v48, %s6487_s23  ;;  %5226 = vrcp.f32 %v2489_v41 }
0x1007   : > { %v5225_v61 = vpop.eup %5224 }
0x1008   : > { %v5227_v42 = vpop.eup %5226 }
0x1068   : > { %v2605_v3 = vpop.permute.xlu0 %2604 }
0x1069   : > { %v2499_v4 = vpop.permute.xlu1 %2498  ;;  %v2607_v6 = vmul.f32 %v5225_v61, %v2605_v3 }
0x106a   : > { %v2501_v8 = vmul.f32 %v5227_v42, %v2499_v4 }
0x106b   : > { %2609 = vrot.lane.b32.xlu0 %v2607_v6, %s6487_s23 }
0x106c   : > { %2503 = vrot.lane.b32.xlu1 %v2501_v8, %s6487_s23  ;;  %v2392_v28 = vpop.permute.xlu0 %2391 }
0x106d   : > { %v2371_v57 = vpop.permute.xlu1 %2370  ;;  %v2394_v9 = vadd.f32 %v2392_v28, %v2385_v58 }
0x106e   : > { %v2373_v60 = vadd.f32 %v2371_v57, %v2364_v59 }
0x106f   : > { %2642 = vrot.lane.b32.xlu0 %v2641_v26, %s6487_s23  ;;  %v2600_v11 = vrot.slane %v2394_v9, 1 }
0x1070   : > { %2621 = vrot.lane.b32.xlu1 %v2620_v27, %s6487_s23  ;;  %v2494_v14 = vrot.slane %v2373_v60, 7 }
0x1071   : > { %v2602_v55 = vmul.f32 %v5225_v61, %v2600_v11 }
0x1072   : > { %v2496_v30 = vmul.f32 %v5227_v42, %v2494_v14 }
0x10dd   : > { %v2610_v31 = vpop.permute.xlu0 %2609 }
0x10de   : > { %v2504_v32 = vpop.permute.xlu1 %2503  ;;  %v6020_v33 = vadd.f32 %v2610_v31, %v2602_v55 }
0x10df   : > { %v6022_v34 = vadd.f32 %v2504_v32, %v2496_v30 }
0x10e0   : > { %5228 = vtanh.f32 %v6020_v33 }
0x10e1   : > { %5230 = vtanh.f32 %v6022_v34  ;;  %v2643_v37 = vpop.permute.xlu0 %2642 }
0x10e2   : > { %v2622_v63 = vpop.permute.xlu1 %2621  ;;  %v2645_v40 = vmul.f32 %v2643_v37, %v5669_v54 }
0x10e3   : > { %v2624_v15 = vmul.f32 %v2622_v63, %v5669_v54 }
0x10ed   : > { %v5229_v62 = vpop.eup %5228 }
0x10ee   : > { %v5231_v38 = vpop.eup %5230  ;;  %2615 = vrot.lane.b32.xlu0 %v5229_v62, %s5293_s28 }
0x10ef   : > { %2509 = vrot.lane.b32.xlu1 %v5231_v38, %s5293_s28 }
0x10f2   : > { %2647 = vrot.lane.b32.xlu0 %v2645_v40, %s6488_s0 }
0x10f3   : > { %2626 = vrot.lane.b32.xlu1 %v2624_v15, %s6488_s0  ;;  %v2651_v15 = vmul.f32 %v6020_v33, %v5667_v53 }
0x1160   : > { %v2616_v44 = vpop.permute.xlu0 %2615 }
0x1161   : > { %v2510_v45 = vpop.permute.xlu1 %2509  ;;  %v2618_v16 = vmul.f32 %v5225_v61, %v2616_v44  ;;  %v2630_v44 = vmul.f32 %v6022_v34, %v5667_v53 }
0x1162   : > { %v2512_v46 = vmul.f32 %v5227_v42, %v2510_v45 }
0x1163   : > { %v2640_v48 = vmul.f32 %v2618_v16, %v5667_v53 }
0x1164   : > { %v2619_v49 = vmul.f32 %v2512_v46, %v5667_v53  ;;  %v2648_v51 = vpop.permute.xlu0 %2647 }
0x1165   : > { %v2627_v52 = vpop.permute.xlu1 %2626  ;;  %v6034_v47 = vadd.f32 %v2648_v51, %v2640_v48 }
0x1166   : > { %v6036_v50 = vadd.f32 %v2627_v52, %v2619_v49 }
0x1167   : > { %v2779_v41 = vrot.slane %v6034_v47, 2  ;;  %v2907_v37 = vrot.slane %v6034_v47, 1 }
0x1168   : > { %v2673_v3 = vrot.slane %v6036_v50, 5  ;;  %v2886_v38 = vrot.slane %v6036_v50, 7 }
0x1169   : > { %2780 = vrot.lane.b32.xlu0 %v2779_v41, %s6487_s23 }
0x116a   : > { %2674 = vrot.lane.b32.xlu1 %v2673_v3, %s6487_s23 }
0x116d   : > { %2652 = vrot.lane.b32.xlu0 %v2600_v11, %s6488_s0 }
0x116e   : > { %2631 = vrot.lane.b32.xlu1 %v2494_v14, %s6488_s0 }
0x11db   : > { %v2781_v61 = vpop.permute.xlu0 %2780 }
0x11dc   : > { %v2675_v42 = vpop.permute.xlu1 %2674  ;;  %4995 = vmatmul.mubr.msk.f32.vlgmr.msra.gmra.mxu0 %vm1117_vm4, %v2781_v61 }
0x11dd   : > { %4984 = vmatmul.mubr.msk.f32.vlgmr.msra.gmra.mxu1 %vm1117_vm4, %v2675_v42  ;;  %5009 = vmatpush3.msra.mxu0 %v5945_v17 }
0x11de   : > { %4998 = vmatpush3.msra.mxu1 %v5951_v20  ;;  %5010 = vmatprep.subr.mxu0 %v5290_v5 }
0x11df   : > { %4999 = vmatprep.subr.mxu1 %v5290_v5  ;;  %5011 = vmatpush3.msra.mxu0 %v5959_v56 }
0x11e0   : > { %5000 = vmatpush3.msra.mxu1 %v5965_v21  ;;  %5012 = vmatprep.subr.mxu0 %v5290_v5  ;;  %v2632_v26 = vpop.permute.xlu1 %2631 }
0x11e1   : > { %5001 = vmatprep.subr.mxu1 %v5290_v5  ;;  %5013 = vmatpush3.msra.mxu0 %v5973_v22  ;;  %v2634_v28 = vmul.f32 %v2632_v26, %v5669_v54 }
0x11e2   : > { %5002 = vmatpush3.msra.mxu1 %v5979_v23  ;;  %5005 = vmatprep.mubr.msk.f32.mxu1 %vm5298_vm1, %v5290_v5 }
0x11e3   : > { %5003 = vmatprep.subr.mxu1 %v5290_v5  ;;  %5014 = vmatprep.subr.mxu0 %v5290_v5 }
0x11e4   : > { %5004 = vmatpush3.msra.mxu1 %v5989_v24  ;;  %5015 = vmatpush3.msra.mxu0 %v5995_v25  ;;  %v2653_v25 = vpop.permute.xlu0 %2652 }
0x11e5   : > { %5016 = vmatprep.mubr.msk.f32.mxu0 %vm5298_vm1, %v5290_v5  ;;  %5019 = vmatprep.subr.mxu1 %v5290_v5  ;;  %v2655_v27 = vmul.f32 %v2653_v25, %v5669_v54 }
0x11e6   : > { %5038 = vmatprep.subr.mxu0 %v5290_v5 }
0x129c   : > { %v2850_v17 = vpop.f32.mrf.mxu0 }
0x129d   : > { %v2744_v20 = vpop.f32.mrf.mxu1  ;;  %v2855_v56 = vrot.slane %v2850_v17, 7 }
0x129e   : > { %v2749_v21 = vrot.slane %v2744_v20, 2  ;;  %v4996_v22 = vpop.f32.mrf.mxu0 }
0x129f   : > { %v2857_v23 = vadd.f32 %v2855_v56, %v5639_v18  ;;  %v4985_v4 = vpop.f32.mrf.mxu1 }
0x12a0   : > { %v2751_v6 = vadd.f32 %v2749_v21, %v5641_v19 }
0x12a1   : > { %5232 = vtanh.f32 %v2857_v23  ;;  %v4707_v57 = vmul.f32 -1.442695, %v2857_v23 }
0x12a2   : > { %5234 = vtanh.f32 %v2751_v6  ;;  %v4705_v58 = vmul.f32 -1.442695, %v2751_v6 }
0x12a3   : > { %5236 = vpow2.f32 %v4707_v57 }
0x12a4   : > { %5238 = vpow2.f32 %v4705_v58 }
0x12ae   : > { %v5233_v24 = vpop.eup %5232 }
0x12af   : > { %v5235_v8 = vpop.eup %5234  ;;  %2870 = vrot.lane.b32.xlu0 %v5233_v24, %s5293_s28 }
0x12b0   : > { %2764 = vrot.lane.b32.xlu1 %v5235_v8, %s5293_s28  ;;  %v5237_v59 = vpop.eup %5236 }
0x12b1   : > { %v5239_v9 = vpop.eup %5238  ;;  %v2861_v60 = vadd.f32 1.0, %v5237_v59 }
0x12b2   : > { %v2755_v11 = vadd.f32 1.0, %v5239_v9 }
0x12b3   : > { %2657 = vrot.lane.b32.xlu0 %v2655_v27, %s6487_s23  ;;  %5240 = vrcp.f32 %v2861_v60 }
0x12b4   : > { %2636 = vrot.lane.b32.xlu1 %v2634_v28, %s6487_s23  ;;  %5242 = vrcp.f32 %v2755_v11 }
0x12c0   : > { %v5241_v14 = vpop.eup %5240 }
0x12c1   : > { %v5243_v30 = vpop.eup %5242 }
0x1321   : > { %v2871_v55 = vpop.permute.xlu0 %2870 }
0x1322   : > { %v2765_v31 = vpop.permute.xlu1 %2764  ;;  %v2873_v32 = vmul.f32 %v5241_v14, %v2871_v55 }
0x1323   : > { %v2767_v62 = vmul.f32 %v5243_v30, %v2765_v31 }
0x1324   : > { %2875 = vrot.lane.b32.xlu0 %v2873_v32, %s6487_s23 }
0x1325   : > { %2769 = vrot.lane.b32.xlu1 %v2767_v62, %s6487_s23  ;;  %v2658_v63 = vpop.permute.xlu0 %2657 }
0x1326   : > { %v2637_v40 = vpop.permute.xlu1 %2636  ;;  %v2660_v45 = vadd.f32 %v2658_v63, %v2651_v15 }
0x1327   : > { %v2639_v16 = vadd.f32 %v2637_v40, %v2630_v44 }
0x1328   : > { %2908 = vrot.lane.b32.xlu0 %v2907_v37, %s6487_s23  ;;  %v2866_v46 = vrot.slane %v2660_v45, 1 }
0x1329   : > { %2887 = vrot.lane.b32.xlu1 %v2886_v38, %s6487_s23  ;;  %v2760_v48 = vrot.slane %v2639_v16, 7 }
0x132a   : > { %v2868_v49 = vmul.f32 %v5241_v14, %v2866_v46 }
0x132b   : > { %v2762_v51 = vmul.f32 %v5243_v30, %v2760_v48 }
0x1396   : > { %v2876_v52 = vpop.permute.xlu0 %2875 }
0x1397   : > { %v2770_v41 = vpop.permute.xlu1 %2769  ;;  %v6084_v3 = vadd.f32 %v2876_v52, %v2868_v49 }
0x1398   : > { %v6086_v61 = vadd.f32 %v2770_v41, %v2762_v51 }
0x1399   : > { %5244 = vtanh.f32 %v6084_v3 }
0x139a   : > { %5246 = vtanh.f32 %v6086_v61  ;;  %v2909_v42 = vpop.permute.xlu0 %2908 }
0x139b   : > { %v2888_v34 = vpop.permute.xlu1 %2887  ;;  %v2911_v20 = vmul.f32 %v2909_v42, %v5669_v54 }
0x139c   : > { %v2890_v56 = vmul.f32 %v2888_v34, %v5669_v54 }
0x13a6   : > { %v5245_v33 = vpop.eup %5244 }
0x13a7   : > { %v5247_v17 = vpop.eup %5246  ;;  %2881 = vrot.lane.b32.xlu0 %v5245_v33, %s5293_s28 }
0x13a8   : > { %2775 = vrot.lane.b32.xlu1 %v5247_v17, %s5293_s28  ;;  %v2917_v17 = vmul.f32 %v6084_v3, %v5667_v53 }
0x13ab   : > { %2913 = vrot.lane.b32.xlu0 %v2911_v20, %s6488_s0 }
0x13ac   : > { %2892 = vrot.lane.b32.xlu1 %v2890_v56, %s6488_s0  ;;  %v2896_v56 = vmul.f32 %v6086_v61, %v5667_v53 }
0x1419   : > { %v2882_v21 = vpop.permute.xlu0 %2881 }
0x141a   : > { %v2776_v22 = vpop.permute.xlu1 %2775  ;;  %v2884_v23 = vmul.f32 %v5241_v14, %v2882_v21 }
0x141b   : > { %v2778_v4 = vmul.f32 %v5243_v30, %v2776_v22 }
0x141c   : > { %v2906_v6 = vmul.f32 %v2884_v23, %v5667_v53 }
0x141d   : > { %v2885_v24 = vmul.f32 %v2778_v4, %v5667_v53  ;;  %v2914_v25 = vpop.permute.xlu0 %2913 }
0x141e   : > { %v2893_v8 = vpop.permute.xlu1 %2892  ;;  %v6098_v26 = vadd.f32 %v2914_v25, %v2906_v6 }
0x141f   : > { %v6100_v27 = vadd.f32 %v2893_v8, %v2885_v24 }
0x1420   : > { %v3045_v28 = vrot.slane %v6098_v26, 1 }
0x1421   : > { %v2939_v57 = vrot.slane %v6100_v27, 6  ;;  %v3149_v33 = vrot.slane %v6100_v27, 7 }
0x1422   : > { %3046 = vrot.lane.b32.xlu0 %v3045_v28, %s6487_s23 }
0x1423   : > { %2940 = vrot.lane.b32.xlu1 %v2939_v57, %s6487_s23 }
0x1426   : > { %2918 = vrot.lane.b32.xlu0 %v2866_v46, %s6488_s0 }
0x1427   : > { %2897 = vrot.lane.b32.xlu1 %v2760_v48, %s6488_s0 }
0x1494   : > { %v6108_v58 = vpop.permute.xlu0 %3046 }
0x1495   : > { %v2941_v59 = vpop.permute.xlu1 %2940  ;;  %5017 = vmatmul.mubr.msk.f32.vlgmr.msra.gmra.mxu0 %vm1117_vm4, %v6108_v58  ;;  %v3161_v61 = vmul.f32 %v6108_v58, %v5669_v54 }
0x1496   : > { %5006 = vmatmul.mubr.msk.f32.vlgmr.msra.gmra.mxu1 %vm1117_vm4, %v2941_v59  ;;  %5042 = vmatprep.mubr.msk.f32.mxu0 %vm5298_vm1, %v5290_v5  ;;  %vm2931_vm4 = vcmask 260102  }
0x1497   : > { %5035 = vmatprep.mubr.msk.f32.mxu1 %vm5298_vm1, %v5290_v5 }
0x1498   : > { %v2919_v62 = vpop.permute.xlu0 %2918 }
0x1499   : > { %v2898_v38 = vpop.permute.xlu1 %2897  ;;  %v2921_v63 = vmul.f32 %v2919_v62, %v5669_v54 }
0x1555   : > { %v3116_v9 = vpop.f32.mrf.mxu0 }
0x1556   : > { %v3010_v60 = vpop.f32.mrf.mxu1  ;;  %v3120_v11 = vadd.f32 %v3116_v9, %v5639_v18  ;;  %v2900_v18 = vmul.f32 %v2898_v38, %v5669_v54 }
0x1557   : > { %v3015_v14 = vrot.slane %v3010_v60, 1  ;;  %v5018_v55 = vpop.f32.mrf.mxu0 }
0x1558   : > { %5248 = vtanh.f32 %v3120_v11  ;;  %v5007_v30 = vpop.f32.mrf.mxu1  ;;  %v4711_v40 = vmul.f32 -1.442695, %v3120_v11 }
0x1559   : > { %v3017_v31 = vadd.f32 %v3015_v14, %v5641_v19 }
0x155b   : > { %5250 = vtanh.f32 %v3017_v31  ;;  %v4709_v15 = vmul.f32 -1.442695, %v3017_v31 }
0x155c   : > { %5252 = vpow2.f32 %v4711_v40 }
0x155d   : > { %5254 = vpow2.f32 %v4709_v15 }
0x1565   : > { %v5249_v32 = vpop.eup %5248 }
0x1566   : > { %3133 = vrot.lane.b32.xlu0 %v5249_v32, %s5293_s28 }
0x1568   : > { %v5251_v37 = vpop.eup %5250 }
0x1569   : > { %3030 = vrot.lane.b32.xlu1 %v5251_v37, %s5293_s28  ;;  %v5253_v19 = vpop.eup %5252 }
0x156a   : > { %2923 = vrot.lane.b32.xlu0 %v2921_v63, %s6487_s23  ;;  %v5255_v44 = vpop.eup %5254  ;;  %v3124_v45 = vadd.f32 1.0, %v5253_v19 }
0x156b   : > { %v3021_v16 = vadd.f32 1.0, %v5255_v44 }
0x156c   : > { %5256 = vrcp.f32 %v3124_v45 }
0x156d   : > { %2902 = vrot.lane.b32.xlu1 %v2900_v18, %s6487_s23  ;;  %5258 = vrcp.f32 %v3021_v16 }
0x1579   : > { %v6125_v46 = vpop.eup %5256 }
0x157a   : > { %v6128_v51 = vpop.eup %5258 }
0x15d8   : > { %v3134_v48 = vpop.permute.xlu0 %3133 }
0x15d9   : > { %v3136_v49 = vmul.f32 %v6125_v46, %v3134_v48  ;;  %v3274_v48 = vld [vmem:[%s6460_s13 + $0x8] sm:$0xff] }
0x15da   : > { %5039 = vmatpush3.msra.mxu0 %v3274_v48  ;;  %v5314_v48 = vmov 58  }
0x15db   : > { %v3031_v52 = vpop.permute.xlu1 %3030  ;;  %3138 = vrot.lane.b32.xlu0 %v3136_v49, %s6487_s23  ;;  %5040 = vmatprep.subr.mxu0 %v5290_v5  ;;  %v3273_v49 = vld [vmem:[%s6460_s13] sm:$0xff] }
0x15dc   : > { %v3033_v41 = vmul.f32 %v6128_v51, %v3031_v52  ;;  %v2924_v42 = vpop.permute.xlu0 %2923  ;;  %5041 = vmatpush3.msra.mxu0 %v3273_v49  ;;  %v5315_v49 = vmov 61  }
0x15dd   : > { %v2926_v34 = vadd.f32 %v2924_v42, %v2917_v17  ;;  %5045 = vmatprep.subr.mxu0 %v5290_v5 }
0x15de   : > { %3035 = vrot.lane.b32.xlu1 %v3033_v41, %s6487_s23 }
0x15df   : > { %v2903_v20 = vpop.permute.xlu1 %2902  ;;  %v3129_v22 = vrot.slane %v2926_v34, 1 }
0x15e0   : > { %v2905_v21 = vadd.f32 %v2903_v20, %v2896_v56  ;;  %v3349_v20 = vld [vmem:[%s6461_s14 + $0x8] sm:$0xff] }
0x15e1   : > { %v3131_v4 = vmul.f32 %v6125_v46, %v3129_v22  ;;  %v4721_v22 = vld [vmem:[#allocation3] ss:$0 sm:$0xff] }
0x15e2   : > { %3150 = vrot.lane.b32.xlu1 %v3149_v33, %s6487_s23  ;;  %v3026_v23 = vrot.slane %v2905_v21, 7  ;;  %v3348_v21 = vld [vmem:[%s6461_s14] sm:$0xff] }
0x15e4   : > { %v3028_v25 = vmul.f32 %v6128_v51, %v3026_v23 }
0x164d   : > { %v3139_v6 = vpop.permute.xlu0 %3138 }
0x164e   : > { %v3141_v24 = vadd.f32 %v3139_v6, %v3131_v4 }
0x1650   : > { %5260 = vtanh.f32 %v3141_v24  ;;  %v3036_v8 = vpop.permute.xlu1 %3035  ;;  %v3502_v24 = vld [vmem:[%s6462_s15] sm:$0x1] }
0x1651   : > { %v3038_v28 = vadd.f32 %v3036_v8, %v3028_v25  ;;  %v3600_v8 = vmul.f32 -1e+08, %v1320_v43 }
0x1653   : > { %5262 = vtanh.f32 %v3038_v28 }
0x1654   : > { %v3151_v59 = vpop.permute.xlu1 %3150 }
0x1655   : > { %v3153_v9 = vmul.f32 %v3151_v59, %v5669_v54  ;;  %v3187_v54 = vld [vmem:[%s6458_s11 + $0x38] sm:$0xff]  ;;  %v723_v59 = vld [vmem:[%s714_s22] sm:$0x1]  ;;  %s718_s22 = scalar_lea.vmem %s6468_s21, %s5475_s1 }
0x1656   : > { %5020 = vmatpush3.msra.mxu1 %v3187_v54 }
0x1657   : > { %5021 = vmatprep.subr.mxu1 %v5290_v5 }
0x165d   : > { %v5261_v57 = vpop.eup %5260 }
0x165e   : > { %3144 = vrot.lane.b32.xlu1 %v5261_v57, %s5293_s28  ;;  %v5300_v57 = vmov 48  }
0x1660   : > { %v5263_v3 = vpop.eup %5262 }
0x1661   : > { %3041 = vrot.lane.b32.xlu0 %v5263_v3, %s5293_s28 }
0x1662   : > { %3163 = vrot.lane.b32.xlu1 %v3161_v61, %s6488_s0 }
0x1665   : > { %3155 = vrot.lane.b32.xlu0 %v3153_v9, %s6488_s0 }
0x1666   : > { %1598 = vrot.lane.b32.xlu1 %v5740_v13, %s6487_s23  ;;  %v3184_v13 = vld [vmem:[%s6458_s11 + $0x20] sm:$0xff] }
0x1669   : > { %1341 = vrot.lane.b32.xlu0 %v5676_v1, %s5293_s28  ;;  %v3186_v1 = vld [vmem:[%s6458_s11 + $0x30] sm:$0xff] }
0x166a   : > { %1864 = vrot.lane.b32.xlu1 %v5804_v36, %s6487_s23  ;;  %5022 = vmatpush3.msra.mxu1 %v3186_v1  ;;  %v3182_v36 = vld [vmem:[%s6458_s11 + $0x10] sm:$0xff]  ;;  %v3607_v1 = vsub.f32 1.0, %v723_v59 }
0x166b   : > { %5023 = vmatprep.subr.mxu1 %v5290_v5 }
0x166d   : > { %1604 = vrot.lane.b32.xlu0 %v5738_v12, %s5293_s28  ;;  %v3185_v12 = vld [vmem:[%s6458_s11 + $0x28] sm:$0xff] }
0x166e   : > { %2130 = vrot.lane.b32.xlu1 %v5868_v2, %s6487_s23  ;;  %5024 = vmatpush3.msra.mxu1 %v3185_v12 }
0x166f   : > { %5025 = vmatprep.subr.mxu1 %v5290_v5 }
0x1670   : > { %5026 = vmatpush3.msra.mxu1 %v3184_v13 }
0x1671   : > { %1870 = vrot.lane.b32.xlu0 %v5802_v35, %s5293_s28  ;;  %5027 = vmatprep.subr.mxu1 %v5290_v5  ;;  %v3183_v35 = vld [vmem:[%s6458_s11 + $0x18] sm:$0xff] }
0x1672   : > { %2396 = vrot.lane.b32.xlu1 %v5932_v29, %s6487_s23  ;;  %5028 = vmatpush3.msra.mxu1 %v3183_v35  ;;  %v3180_v29 = vld [vmem:[%s6458_s11] sm:$0xff] }
0x1673   : > { %5029 = vmatprep.subr.mxu1 %v5290_v5 }
0x1674   : > { %5030 = vmatpush3.msra.mxu1 %v3182_v36 }
0x1675   : > { %2136 = vrot.lane.b32.xlu0 %v5866_v0, %s5293_s28  ;;  %v3181_v0 = vld [vmem:[%s6458_s11 + $0x8] sm:$0xff]  ;;  %5031 = vmatprep.subr.mxu1 %v5290_v5 }
0x1676   : > { %2662 = vrot.lane.b32.xlu1 %v6036_v50, %s6487_s23  ;;  %5032 = vmatpush3.msra.mxu1 %v3181_v0  ;;  %v3597_v0 = vrot.slane %v723_v59, %v5633_v7  ;;  %v3866_v59 = vld [vmem:[%s6464_s17 + $0x20] sm:$0xff] }
0x1677   : > { %5033 = vmatprep.subr.mxu1 %v5290_v5 }
0x1678   : > { %5034 = vmatpush3.msra.mxu1 %v3180_v29 }
0x1679   : > { %2402 = vrot.lane.b32.xlu0 %v5930_v10, %s5293_s28  ;;  %5062 = vmatprep.subr.mxu1 %v5290_v5 }
0x167a   : > { %2928 = vrot.lane.b32.xlu1 %v6100_v27, %s6487_s23 }
0x167d   : > { %2668 = vrot.lane.b32.xlu0 %v6034_v47, %s5293_s28 }
0x1681   : > { %2934 = vrot.lane.b32.xlu0 %v6098_v26, %s5293_s28 }
0x16d0   : > { %v3145_v2 = vpop.permute.xlu1 %3144 }
0x16d1   : > { %v3147_v10 = vmul.f32 %v6125_v46, %v3145_v2  ;;  %v3608_v2 = vmul.f32 -1e+08, %v3607_v1  ;;  %v3869_v1 = vld [vmem:[%s6464_s17 + $0x38] sm:$0xff] }
0x16d3   : > { %v3042_v47 = vpop.permute.xlu0 %3041  ;;  %v3159_v50 = vmul.f32 %v3147_v10, %v5667_v53 }
0x16d4   : > { %v3044_v26 = vmul.f32 %v6128_v51, %v3042_v47  ;;  %v3164_v27 = vpop.permute.xlu1 %3163  ;;  %v4712_v51 = vld [vmem:[%s6459_s12] ss:$0 sm:$0xff]  ;;  %v3613_v47 = vrot.slane %v3608_v2, %v5633_v7  ;;  %v3888_v2 = vld [vmem:[%s6464_s17 + $0xd0] sm:$0xff] }
0x16d5   : > { %v3166_v58 = vadd.f32 %v3164_v27, %v3159_v50 }
0x16d6   : > { %v3148_v60 = vmul.f32 %v3044_v26, %v5667_v53 }
0x16d7   : > { %v3156_v11 = vpop.permute.xlu0 %3155  ;;  %3174 = vrot.lane.b32.xlu0 %v3166_v58, %s5293_s28 }
0x16d8   : > { %v3158_v14 = vadd.f32 %v3156_v11, %v3148_v60  ;;  %v1599_v55 = vpop.permute.xlu1 %1598  ;;  %v3706_v60 = vld [vmem:[%s6466_s19 + $0x8] sm:$0xff]  ;;  %v5302_v11 = vmov 51  }
0x16d9   : > { %1602 = vst.msk [vmem:[#allocation2] sm:$0x2] %vm1601_vm6, %v1599_v55  ;;  %vm2937_vm6 = vcmask 517377   ;;  %v5304_v55 = vmov 54  }
0x16da   : > { %3168 = vrot.lane.b32.xlu1 %v3158_v14, %s6487_s23  ;;  %v5303_v14 = vmov 53  }
0x16db   : > { %v1342_v30 = vpop.permute.xlu0 %1341 }
0x16dc   : > { %1345 = vst.msk [vmem:[#allocation2] sm:$0x80] %vm1344_vm7, %v1342_v30  ;;  %v1865_v31 = vpop.permute.xlu1 %1864  ;;  %vm3177_vm7 = vcmask 516352   ;;  %v5305_v30 = vmov 56  }
0x16dd   : > { %1868 = vst.msk [vmem:[#allocation2] sm:$0x4] %vm1867_vm8, %v1865_v31  ;;  %vm3171_vm8 = vcmask 261127   ;;  %v5306_v31 = vmov 57  }
0x16df   : > { %v1605_v32 = vpop.permute.xlu0 %1604 }
0x16e0   : > { %1608 = vst.msk [vmem:[#allocation2] sm:$0x40] %vm1607_vm9, %v1605_v32  ;;  %v2131_v62 = vpop.permute.xlu1 %2130  ;;  %v5307_v32 = vmov 49  }
0x16e1   : > { %2134 = vst.msk [vmem:[#allocation2] sm:$0x8] %vm2133_vm10, %v2131_v62  ;;  %v5308_v62 = vmov 59  }
0x16e3   : > { %v1871_v37 = vpop.permute.xlu0 %1870 }
0x16e4   : > { %1874 = vst.msk [vmem:[#allocation2] sm:$0x20] %vm1873_vm11, %v1871_v37  ;;  %v2397_v38 = vpop.permute.xlu1 %2396  ;;  %v5309_v37 = vmov 60  }
0x16e7   : > { %v2137_v63 = vpop.permute.xlu0 %2136 }
0x16e8   : > { %2140 = vst.msk [vmem:[#allocation2] sm:$0x10] %vm2139_vm12, %v2137_v63  ;;  %v2663_v18 = vpop.permute.xlu1 %2662  ;;  %v5311_v63 = vmov 63  }
0x16e9   : > { %2400 = vst.msk [vmem:[#allocation2] sm:$0x10] %vm2399_vm13, %v2397_v38  ;;  %v5310_v38 = vmov 62  }
0x16ea   : > { %2666 = vst.msk [vmem:[#allocation2] sm:$0x20] %vm2665_vm14, %v2663_v18 }
0x16eb   : > { %v2403_v40 = vpop.permute.xlu0 %2402 }
0x16ec   : > { %2406 = vst.msk [vmem:[#allocation2] sm:$0x8] %vm2405_vm15, %v2403_v40  ;;  %v2929_v15 = vpop.permute.xlu1 %2928 }
0x16ed   : > { %2932 = vst.msk [vmem:[#allocation2] sm:$0x40] %vm2931_vm4, %v2929_v15 }
0x16ef   : > { %v2669_v19 = vpop.permute.xlu0 %2668 }
0x16f0   : > { %2672 = vst.msk [vmem:[#allocation2] sm:$0x4] %vm2671_vm5, %v2669_v19 }
0x16f3   : > { %v2935_v44 = vpop.permute.xlu0 %2934 }
0x16f4   : > { %2938 = vst.msk [vmem:[#allocation2] sm:$0x2] %vm2937_vm6, %v2935_v44 }
0x1749   : > { %v3175_v45 = vpop.permute.xlu0 %3174 }
0x174a   : > { %3178 = vst.msk [vmem:[#allocation2] sm:$0x1] %vm3177_vm7, %v3175_v45 }
0x174c   : > { %v3169_v16 = vpop.permute.xlu1 %3168 }
0x174d   : > { %3172 = vst.msk [vmem:[#allocation2] sm:$0x80] %vm3171_vm8, %v3169_v16  ;;  %v5312_v16 = vmov 52  }
0x1754   : > { %v3179_v46 = vld [vmem:[#allocation2] sm:$0xff] }
0x1755   : > { %5036 = vmatmul.mubr.msk.f32.vlgmr.msra.gmra.mxu1 %vm740_vm0, %v3179_v46  ;;  %v5313_v46 = vmov 55  }
0x1756   : > { %5064 = vmatprep.mubr.msk.f32.mxu1 %vm5298_vm1, %v5290_v5 }
0x1815   : > { %v3264_v52 = vpop.f32.mrf.mxu1 }
0x1816   : > { %v3265_v41 = vadd.f32 %v4712_v51, %v3264_v52  ;;  %v3879_v51 = vld [vmem:[%s6464_s17 + $0x88] sm:$0xff]  ;;  %v3878_v52 = vld [vmem:[%s6464_s17 + $0x80] sm:$0xff] }
0x1817   : > { %v5037_v33 = vpop.f32.mrf.mxu1 }
0x1818   : > { %v3269_v42 = vmul.f32 1.442695, %v3265_v41  ;;  %vm3268_vm0 = vcmp.gt.f32.partialorder %v3265_v41, 0.0 }
0x181a   : > { %5264 = vpow2.f32 %v3269_v42 }
0x1827   : > { %v5265_v17 = vpop.eup %5264 }
0x1828   : > { %v4714_v34 = vadd.f32 -1.0, %v5265_v17 }
0x182a   : > { %v6229_v56 = vsel %vm3268_vm0, %v3265_v41, %v4714_v34  ;;  %v3863_v41 = vld [vmem:[%s6464_s17 + $0x8] sm:$0xff] }
0x182b   : > { %3425 = vrot.lane.b32.xlu1 %v6229_v56, %s6489_s24  ;;  %5043 = vmatmul.mubr.msk.f32.vlgmr.msra.gmra.mxu0 %vm869_vm2, %v6229_v56 }
0x182c   : > { %5046 = vmatpush3.msra.mxu0 %v3349_v20  ;;  %5049 = vmatprep.mubr.msk.f32.mxu0 %vm5298_vm1, %v5290_v5  ;;  %v3704_v20 = vld [vmem:[%s6465_s18 + $0x8] sm:$0xff] }
0x182d   : > { %5047 = vmatprep.subr.mxu0 %v5290_v5 }
0x182e   : > { %5048 = vmatpush3.msra.mxu0 %v3348_v21 }
0x182f   : > { %3588 = vperm.xlu1 %5116, %v4721_v22   ;;  %5050 = vmatmul.mubr.msk.f32.vlgmr.msra.gmra.mxu0 %vm869_vm2, %v6229_v56 }
0x1830   : > { %5052 = vmatprep.subr.mxu0 %v5290_v5  ;;  %5054 = vmatprep.mubr.msk.f32.mxu0 %vm5298_vm1, %v5290_v5 }
0x1833   : > { %5117 = vset.pattern.permute.xlu1 %v5300_v57  ;;  %v3867_v57 = vld [vmem:[%s6464_s17 + $0x28] sm:$0xff] }
0x189d   : > { %v3426_v23 = vpop.permute.xlu1 %3425 }
0x189e   : > { %5053 = vmatpush3.xpose.msk.msra.mxu0 %vm869_vm2, %v3426_v23 }
0x189f   : > { %5057 = vmatprep.subr.mxu0 %v5290_v5 }
0x18aa   : > { %v3589_v35 = vpop.permute.xlu1 %3588 }
0x18eb   : > { %v3344_v4 = vpop.f32.mrf.mxu0 }
0x18ec   : > { %5055 = vmatmul.mubr.msk.f32.vlgmr.msra.gmra.mxu0 %vm869_vm2, %v3344_v4  ;;  %v3881_v4 = vld [vmem:[%s6464_s17 + $0x98] sm:$0xff] }
0x18ed   : > { %5058 = vmatpush3.xpose.msk.msra.mxu0 %vm869_vm2, %v3426_v23  ;;  %v5044_v6 = vpop.f32.mrf.mxu0  ;;  %5059 = vmatprep.mubr.msk.f32.mxu0 %vm5298_vm1, %v5290_v5  ;;  %v3862_v23 = vld [vmem:[%s6464_s17] sm:$0xff] }
0x18ee   : > { %5067 = vmatprep.subr.mxu0 %v5290_v5  ;;  %v3883_v6 = vld [vmem:[%s6464_s17 + $0xa8] sm:$0xff] }
0x18ef   : > { %v3416_v25 = vpop.f32.mrf.mxu0 }
0x18f0   : > { %5060 = vmatmul.mubr.msk.f32.vlgmr.msra.gmra.mxu0 %vm869_vm2, %v3502_v24  ;;  %3422 = vperm.xlu0 %5115, %v3416_v25   ;;  %v3880_v24 = vld [vmem:[%s6464_s17 + $0x90] sm:$0xff]  ;;  %v3882_v25 = vld [vmem:[%s6464_s17 + $0xa0] sm:$0xff] }
0x18f1   : > { %v5051_v28 = vpop.f32.mrf.mxu0  ;;  %5071 = vmatprep.mubr.msk.f32.mxu0 %vm5298_vm1, %v5290_v5  ;;  %5068 = vmatpush3.msra.mxu0 %v3706_v60  ;;  %v3877_v60 = vld [vmem:[%s6464_s17 + $0x78] sm:$0xff] }
0x18f2   : > { %5069 = vmatprep.subr.mxu0 %v5290_v5  ;;  %v3865_v28 = vld [vmem:[%s6464_s17 + $0x18] sm:$0xff] }
0x18f4   : > { %3603 = vperm.xlu0 %5115, %v3600_v8  }
0x18f8   : > { %5118 = vset.pattern.permute.xlu0 %v5307_v32  ;;  %v4725_v32 = vld [vmem:[%s6467_s20] ss:$0 sm:$0xff] }
0x196b   : > { %v3423_v9 = vpop.permute.xlu0 %3422 }
0x196f   : > { %v3604_v50 = vpop.permute.xlu0 %3603 }
0x19ac   : > { %v3498_v3 = vpop.f32.mrf.mxu0 }
0x19ad   : > { %v3499_v43 = vadd.f32 %v3498_v3, %v3423_v9  ;;  %v3864_v3 = vld [vmem:[%s6464_s17 + $0x10] sm:$0xff]  ;;  %v3885_v9 = vld [vmem:[%s6464_s17 + $0xb8] sm:$0xff] }
0x19ae   : > { %v5056_v61 = vpop.f32.mrf.mxu0 }
0x19b0   : > { %v3572_v39 = vpop.f32.mrf.mxu0 }
0x19b1   : > { %v3579_v54 = vrot.slane %v3572_v39, %v5633_v7  ;;  %v5301_v7 = vmov 50   ;;  %v3887_v39 = vld [vmem:[%s6464_s17 + $0xc8] sm:$0xff] }
0x19b2   : > { %v5061_v12 = vpop.f32.mrf.mxu0 }
0x19b3   : > { %v3580_v13 = vadd.f32 %v3579_v54, %v3499_v43  ;;  %v3884_v43 = vld [vmem:[%s6464_s17 + $0xb0] sm:$0xff]  ;;  %v3886_v54 = vld [vmem:[%s6464_s17 + $0xc0] sm:$0xff]  ;;  %v3871_v12 = vld [vmem:[%s6464_s17 + $0x48] sm:$0xff] }
0x19b5   : > { %v3591_v36 = vadd.f32 %v3589_v35, %v3580_v13  ;;  %v3868_v13 = vld [vmem:[%s6464_s17 + $0x30] sm:$0xff]  ;;  %v3870_v35 = vld [vmem:[%s6464_s17 + $0x40] sm:$0xff] }
0x19b7   : > { %v3592_v10 = vmul.f32 %v3591_v36, %v5667_v53  ;;  %v3705_v53 = vld [vmem:[%s6466_s19] sm:$0xff]  ;;  %v3889_v36 = vld [vmem:[%s6464_s17 + $0xd8] sm:$0xff] }
0x19b8   : > { %5070 = vmatpush3.msra.mxu0 %v3705_v53  ;;  %v3876_v53 = vld [vmem:[%s6464_s17 + $0x70] sm:$0xff] }
0x19b9   : > { %v3599_v29 = vmul.f32 %v3597_v0, %v3592_v10  ;;  %3922 = vmatprep.subr.mxu0 %v3879_v51  ;;  %v3891_v0 = vld [vmem:[%s6464_s17 + $0xe8] sm:$0xff]  ;;  %v3890_v10 = vld [vmem:[%s6464_s17 + $0xe0] sm:$0xff] }
0x19bb   : > { %v3606_v26 = vadd.f32 %v3604_v50, %v3599_v29  ;;  %v3873_v29 = vld [vmem:[%s6464_s17 + $0x58] sm:$0xff]  ;;  %v3872_v50 = vld [vmem:[%s6464_s17 + $0x50] sm:$0xff] }
0x19bd   : > { %v3615_v27 = vadd.f32 %v3613_v47, %v3606_v26  ;;  %v3875_v47 = vld [vmem:[%s6464_s17 + $0x68] sm:$0xff]  ;;  %v3874_v26 = vld [vmem:[%s6464_s17 + $0x60] sm:$0xff] }
0x19bf   : > { %v3616_v58 = vsel %vm1018_vm3, %v3615_v27, -inf }
0x19c0   : > { %3617 = vmax.xlane.f32.xlu1 %v3616_v58  ;;  %v3892_v58 = vld [vmem:[%s6464_s17 + $0xf0] sm:$0xff] }
0x19d1   : > { %3707 = vrot.lane.b32.xlu1 %v6229_v56, %s6491_s3 }
0x19d5   : > { %4463 = vperm.xlu1 %5117, %v6229_v56  }
0x19d9   : > { %5119 = vset.pattern.permute.xlu1 %v5301_v7 }
0x19da   : > { %4475 = vperm.xlu1 %5119, %v6229_v56  }
0x19de   : > { %5120 = vset.pattern.permute.xlu1 %v5302_v11 }
0x19df   : > { %4481 = vperm.xlu1 %5120, %v6229_v56  }
0x19e3   : > { %5122 = vset.pattern.permute.xlu1 %v5303_v14 }
0x19e4   : > { %4493 = vperm.xlu1 %5122, %v6229_v56  }
0x19e8   : > { %5123 = vset.pattern.permute.xlu1 %v5304_v55 }
0x19e9   : > { %4499 = vperm.xlu1 %5123, %v6229_v56  }
0x19ed   : > { %5125 = vset.pattern.permute.xlu1 %v5305_v30 }
0x19ee   : > { %4511 = vperm.xlu1 %5125, %v6229_v56  }
0x19f2   : > { %5126 = vset.pattern.permute.xlu1 %v5306_v31 }
0x19f3   : > { %4517 = vperm.xlu1 %5126, %v6229_v56  }
0x19f7   : > { %5128 = vset.pattern.permute.xlu1 %v5308_v62 }
0x19f8   : > { %4529 = vperm.xlu1 %5128, %v6229_v56  }
0x19fc   : > { %5129 = vset.pattern.permute.xlu1 %v5309_v37 }
0x19fd   : > { %4535 = vperm.xlu1 %5129, %v6229_v56  }
0x1a01   : > { %5131 = vset.pattern.permute.xlu1 %v5310_v38 }
0x1a02   : > { %4547 = vperm.xlu1 %5131, %v6229_v56  }
0x1a06   : > { %5132 = vset.pattern.permute.xlu1 %v5311_v63 }
0x1a07   : > { %4553 = vperm.xlu1 %5132, %v6229_v56  }
0x1a49   : > { %v3618_v18 = vpop.xlane.xlu1 %3617 }
0x1a4a   : > { %v3619_v40 = vsub.f32 %v3615_v27, %v3618_v18  ;;  %v3893_v27 = vld [vmem:[%s6464_s17 + $0xf8] sm:$0xff] }
0x1a4c   : > { %v3620_v15 = vmul.f32 1.442695, %v3619_v40 }
0x1a4d   : > { %v3708_v19 = vpop.permute.xlu1 %3707 }
0x1a4e   : > { %5266 = vpow2.f32 %v3620_v15  ;;  %5072 = vmatmul.mubr.msk.f32.vlgmr.msra.gmra.mxu0 %vm869_vm2, %v3708_v19 }
0x1a4f   : > { %3958 = vmatprep.mubr.f32.mxu0 %v5290_v5  ;;  %3923 = vmatpush1.msra.mxu0 %v3878_v52 }
0x1a50   : > { %3924 = vmatprep.subr.mxu0 %v3863_v41 }
0x1a51   : > { %3925 = vmatpush1.msra.mxu0 %v3862_v23  ;;  %v4464_v7 = vpop.permute.xlu1 %4463 }
0x1a52   : > { %4064 = vmatprep.subr.mxu0 %v3883_v6 }
0x1a55   : > { %v4476_v11 = vpop.permute.xlu1 %4475 }
0x1a5a   : > { %v4482_v14 = vpop.permute.xlu1 %4481 }
0x1a5b   : > { %v5267_v44 = vpop.eup %5266 }
0x1a5c   : > { %v3622_v45 = vsel %vm1018_vm3, %v5267_v44, 0.0 }
0x1a5d   : > { %3623 = vadd.xlane.f32.xlu0 %v3622_v45 }
0x1a5f   : > { %v4494_v55 = vpop.permute.xlu1 %4493 }
0x1a64   : > { %v4500_v30 = vpop.permute.xlu1 %4499 }
0x1a69   : > { %v4512_v37 = vpop.permute.xlu1 %4511 }
0x1a73   : > { %3627 = vrot.lane.b32.xlu0 %v6229_v56, %s6488_s0 }
0x1a77   : > { %4469 = vperm.xlu0 %5118, %v6229_v56  }
0x1a7b   : > { %5121 = vset.pattern.permute.xlu0 %v5312_v16 }
0x1a7c   : > { %4487 = vperm.xlu0 %5121, %v6229_v56  }
0x1a80   : > { %5124 = vset.pattern.permute.xlu0 %v5313_v46  ;;  %v4518_v46 = vpop.permute.xlu1 %4517 }
0x1a81   : > { %4505 = vperm.xlu0 %5124, %v6229_v56  }
0x1a85   : > { %5127 = vset.pattern.permute.xlu0 %v5314_v48 }
0x1a86   : > { %4523 = vperm.xlu0 %5127, %v6229_v56  }
0x1a8a   : > { %5130 = vset.pattern.permute.xlu0 %v5315_v49 }
0x1a8b   : > { %4541 = vperm.xlu0 %5130, %v6229_v56   ;;  %v3703_v56 = vld [vmem:[%s6465_s18] sm:$0xff] }
0x1a8f   : > { %5133 = vset.pattern.permute.xlu0 %v5311_v63 }
0x1ae6   : > { %v3624_v33 = vpop.xlane.xlu0 %3623 }
0x1ae7   : > { %5268 = vrcp.f32 %v3624_v33 }
0x1aea   : > { %v3628_v42 = vpop.permute.xlu0 %3627 }
0x1aeb   : > { %5063 = vmatpush3.msra.mxu1 %v3628_v42 }
0x1aec   : > { %5074 = vmatprep.subr.mxu1 %v5290_v5 }
0x1af2   : > { %v4470_v18 = vpop.permute.xlu0 %4469 }
0x1af4   : > { %v5269_v17 = vpop.eup %5268 }
0x1af5   : > { %v3626_v34 = vmul.f32 %v5269_v17, %v5267_v44 }
0x1af7   : > { %5065 = vmatmul.mubr.msk.f32.vlgmr.msra.gmra.mxu1 %vm1018_vm3, %v3626_v34  ;;  %v4488_v52 = vpop.permute.xlu0 %4487 }
0x1af8   : > { %5075 = vmatpush3.msra.mxu1 %v3704_v20  ;;  %5078 = vmatprep.mubr.msk.f32.mxu1 %vm5298_vm1, %v5290_v5 }
0x1af9   : > { %5076 = vmatprep.subr.mxu1 %v5290_v5 }
0x1afa   : > { %5077 = vmatpush3.msra.mxu1 %v3703_v56  ;;  %v4530_v56 = vpop.permute.xlu1 %4529 }
0x1afb   : > { %3993 = vmatprep.subr.mxu1 %v3881_v4 }
0x1afc   : > { %v4506_v6 = vpop.permute.xlu0 %4505 }
0x1b0e   : > { %v6320_v21 = vpop.f32.mrf.mxu0 }
0x1b10   : > { %v5073_v22 = vpop.f32.mrf.mxu0 }
0x1bb7   : > { %v6337_v8 = vpop.f32.mrf.mxu1 }
0x1bb8   : > { %5079 = vmatmul.mubr.msk.f32.vlgmr.msra.gmra.mxu1 %vm869_vm2, %v6337_v8  ;;  %4726 = vmatmul.mubr.msk.f32.vlgmr.msra.gmra.mxu0 %vm869_vm2, %v6337_v8 }
0x1bb9   : > { %v5066_v61 = vpop.f32.mrf.mxu1  ;;  %3994 = vmatpush1.msra.mxu1 %v3880_v24  ;;  %4065 = vmatpush1.msra.mxu0 %v3882_v25 }
0x1bba   : > { %3995 = vmatprep.subr.mxu1 %v3865_v28  ;;  %4066 = vmatprep.subr.mxu0 %v3867_v57  ;;  %v4536_v61 = vpop.permute.xlu1 %4535 }
0x1bbb   : > { %3996 = vmatpush1.msra.mxu1 %v3864_v3  ;;  %4029 = vmatprep.mubr.f32.mxu1 %v5290_v5 }
0x1bbc   : > { %4067 = vmatpush1.msra.mxu0 %v3866_v59  ;;  %4100 = vmatprep.mubr.f32.mxu0 %v5290_v5 }
0x1bbd   : > { %4727 = vmatmul.mubr.msk.f32.vlgmr.msra.gmra.mxu1 %vm869_vm2, %v6337_v8  ;;  %4728 = vmatmul.mubr.msk.f32.vlgmr.msra.gmra.mxu0 %vm869_vm2, %v6337_v8 }
0x1bbe   : > { %4135 = vmatprep.subr.mxu1 %v3885_v9  ;;  %4206 = vmatprep.subr.mxu0 %v3887_v39  ;;  %v4524_v39 = vpop.permute.xlu0 %4523 }
0x1bbf   : > { %4136 = vmatpush1.msra.mxu1 %v3884_v43  ;;  %4207 = vmatpush1.msra.mxu0 %v3886_v54 }
0x1bc0   : > { %4137 = vmatprep.subr.mxu1 %v3869_v1  ;;  %4208 = vmatprep.subr.mxu0 %v3871_v12 }
0x1bc1   : > { %4138 = vmatpush1.msra.mxu1 %v3868_v13  ;;  %4171 = vmatprep.mubr.f32.mxu1 %v5290_v5 }
0x1bc2   : > { %4209 = vmatpush1.msra.mxu0 %v3870_v35  ;;  %4242 = vmatprep.mubr.f32.mxu0 %v5290_v5 }
0x1bc3   : > { %4729 = vmatmul.mubr.msk.f32.vlgmr.msra.gmra.mxu1 %vm869_vm2, %v6337_v8  ;;  %4730 = vmatmul.mubr.msk.f32.vlgmr.msra.gmra.mxu0 %vm869_vm2, %v6337_v8 }
0x1bc4   : > { %4277 = vmatprep.subr.mxu1 %v3889_v36  ;;  %4348 = vmatprep.subr.mxu0 %v3891_v0  ;;  %v4548_v36 = vpop.permute.xlu1 %4547 }
0x1bc5   : > { %4278 = vmatpush1.msra.mxu1 %v3888_v2  ;;  %4349 = vmatpush1.msra.mxu0 %v3890_v10 }
0x1bc6   : > { %4279 = vmatprep.subr.mxu1 %v3873_v29  ;;  %4350 = vmatprep.subr.mxu0 %v3875_v47 }
0x1bc7   : > { %4280 = vmatpush1.msra.mxu1 %v3872_v50  ;;  %4313 = vmatprep.mubr.f32.mxu1 %v5290_v5 }
0x1bc8   : > { %4351 = vmatpush1.msra.mxu0 %v3874_v26  ;;  %4384 = vmatprep.mubr.f32.mxu0 %v5290_v5  ;;  %v4542_v26 = vpop.permute.xlu0 %4541 }
0x1bc9   : > { %4731 = vmatmul.mubr.msk.f32.vlgmr.msra.gmra.mxu1 %vm869_vm2, %v6337_v8  ;;  %4732 = vmatmul.mubr.msk.f32.vlgmr.msra.gmra.mxu0 %vm869_vm2, %v6337_v8 }
0x1bca   : > { %4419 = vmatprep.subr.mxu1 %v3893_v27  ;;  %4455 = vmatprep.mubr.f32.mxu1 %v5290_v5 }
0x1bcb   : > { %4420 = vmatpush1.msra.mxu1 %v3892_v58 }
0x1bcc   : > { %4421 = vmatprep.subr.mxu1 %v3877_v60 }
0x1bcd   : > { %4422 = vmatpush1.msra.mxu1 %v3876_v53 }
0x1bce   : > { %4733 = vmatmul.mubr.msk.f32.vlgmr.msra.gmra.mxu1 %vm869_vm2, %v6337_v8 }
0x1c78   : > { %v3850_v31 = vpop.f32.mrf.mxu1  ;;  %v3960_v62 = vpop.f32.mrf.mxu0 }
0x1c79   : > { %v3851_v5 = vadd.f32 %v3850_v31, %v6320_v21  ;;  %v4466_v15 = vmul.f32 %v4464_v7, %v3960_v62 }
0x1c7a   : > { %v5080_v38 = vpop.f32.mrf.mxu1  ;;  %v3962_v63 = vpop.f32.mrf.mxu0 }
0x1c7b   : > { %v3861_v40 = vadd.f32 %v4725_v32, %v3851_v5  ;;  %v4472_v44 = vmul.f32 %v4470_v18, %v3962_v63 }
0x1c7d   : > { %v4467_v19 = vadd.f32 %v4466_v15, %v3861_v40  ;;  %v4031_v45 = vpop.f32.mrf.mxu1  ;;  %v4102_v16 = vpop.f32.mrf.mxu0 }
0x1c7e   : > { %v4478_v49 = vmul.f32 %v4476_v11, %v4031_v45  ;;  %v4490_v17 = vmul.f32 %v4488_v52, %v4102_v16  ;;  %v4554_v11 = vpop.permute.xlu1 %4553 }
0x1c7f   : > { %v4473_v48 = vadd.f32 %v4472_v44, %v4467_v19  ;;  %v4033_v51 = vpop.f32.mrf.mxu1  ;;  %v4104_v42 = vpop.f32.mrf.mxu0 }
0x1c80   : > { %v4484_v33 = vmul.f32 %v4482_v14, %v4033_v51  ;;  %v4496_v22 = vmul.f32 %v4494_v55, %v4104_v42 }
0x1c81   : > { %v4479_v41 = vadd.f32 %v4478_v49, %v4473_v48 }
0x1c83   : > { %v4485_v34 = vadd.f32 %v4484_v33, %v4479_v41  ;;  %v4173_v20 = vpop.f32.mrf.mxu1  ;;  %v4244_v23 = vpop.f32.mrf.mxu0 }
0x1c84   : > { %v4502_v25 = vmul.f32 %v4500_v30, %v4173_v20  ;;  %v4514_v59 = vmul.f32 %v4512_v37, %v4244_v23 }
0x1c85   : > { %v4491_v21 = vadd.f32 %v4490_v17, %v4485_v34  ;;  %v4175_v4 = vpop.f32.mrf.mxu1  ;;  %v4246_v57 = vpop.f32.mrf.mxu0 }
0x1c86   : > { %v4508_v28 = vmul.f32 %v4506_v6, %v4175_v4  ;;  %v4520_v54 = vmul.f32 %v4518_v46, %v4246_v57 }
0x1c87   : > { %v4497_v24 = vadd.f32 %v4496_v22, %v4491_v21 }
0x1c89   : > { %v4503_v8 = vadd.f32 %v4502_v25, %v4497_v24  ;;  %v4315_v3 = vpop.f32.mrf.mxu1  ;;  %v4386_v1 = vpop.f32.mrf.mxu0 }
0x1c8a   : > { %v4526_v35 = vmul.f32 %v4524_v39, %v4315_v3  ;;  %v4538_v47 = vmul.f32 %v4536_v61, %v4386_v1 }
0x1c8b   : > { %v4509_v9 = vadd.f32 %v4508_v28, %v4503_v8  ;;  %v4317_v12 = vpop.f32.mrf.mxu1  ;;  %v4388_v10 = vpop.f32.mrf.mxu0 }
0x1c8c   : > { %v4532_v2 = vmul.f32 %v4530_v56, %v4317_v12  ;;  %v4544_v58 = vmul.f32 %v4542_v26, %v4388_v10 }
0x1c8d   : > { %v4515_v43 = vadd.f32 %v4514_v59, %v4509_v9 }
0x1c8e   : > { %v4457_v29 = vpop.f32.mrf.mxu1 }
0x1c8f   : > { %v4521_v13 = vadd.f32 %v4520_v54, %v4515_v43  ;;  %v4550_v7 = vmul.f32 %v4548_v36, %v4457_v29 }
0x1c90   : > { %v4459_v60 = vpop.f32.mrf.mxu1 }
0x1c91   : > { %v4527_v0 = vadd.f32 %v4526_v35, %v4521_v13  ;;  %v4556_v55 = vmul.f32 %v4554_v11, %v4459_v60 }
0x1c93   : > { %v4533_v50 = vadd.f32 %v4532_v2, %v4527_v0 }
0x1c95   : > { %v4539_v27 = vadd.f32 %v4538_v47, %v4533_v50 }
0x1c97   : > { %v4545_v53 = vadd.f32 %v4544_v58, %v4539_v27 }
0x1c99   : > { %v4551_v14 = vadd.f32 %v4550_v7, %v4545_v53 }
0x1c9b   : > { %v4557_v30 = vadd.f32 %v4556_v55, %v4551_v14 }
0x1c9d   : > { %4558 = vmax.xlane.f32.xlu0 %v4557_v30 }
0x1d26   : > { %v4559_v31 = vpop.xlane.xlu0 %4558 }
0x1d27   : > { %v4560_v32 = vsub.f32 %v4557_v30, %v4559_v31 }
0x1d29   : > { %v4561_v62 = vmul.f32 1.442695, %v4560_v32 }
0x1d2b   : > { %5270 = vpow2.f32 %v4561_v62 }
0x1d38   : > { %v5271_v37 = vpop.eup %5270 }
0x1d39   : > { %4563 = vadd.xlane.f32.xlu1 %v5271_v37 }
0x1dc2   : > { %v4564_v5 = vpop.xlane.xlu1 %4563 }
0x1dc3   : > { %5272 = vlog2.f32 %v4564_v5 }
0x1dd0   : > { %v5273_v38 = vpop.eup %5272 }
0x1dd1   : > { %v4566_v63 = vmul.f32 0.6931472, %v5273_v38 }
0x1dd3   : > { %v4567_v18 = vsub.f32 %v4560_v32, %v4566_v63 }
0x1dd5   : > { %4568 = vst [vmem:[%s718_s22] sm:$0xff] %v4567_v18 }
0x1dd6 PF: > { %s33_s26 = sadd.s32 1, %s5288_s26  }
0x1dd7   : > { %p30_p4 = scmp.ge.s32.totalorder %s33_s26, 4  }
0x1dd9   :  { %32 = sbr.rel (!%p30_p4) target bundleno = 7 (0x7), region = 146 }

</bundles_post_ra>
